<compile_context>
chip_gen: v7x
topology: tpu7x:2x2x1
jax: 0.10.0
libtpu: 0.0.40
codegen_flags: <defaults>
</compile_context>

<pallas_src>
import math
import functools

import jax
import jax.numpy as jnp
from jax import lax
from jax.experimental import pallas as pl
from jax.experimental.pallas import tpu as pltpu  # noqa: F401  (TPU backend)

D_MODEL = 32
NUM_HEADS = 8
DFF = 256
HEAD_DIM = D_MODEL // NUM_HEADS
LN_EPS = 1e-6  # matches the spec: nn.LayerNorm(d_model, eps=1e-06)


# ----------------------------- Fused Pallas kernel -----------------------------

def _decoder_layer_kernel(x_ref, enc_ref, self_mask_ref, cross_mask_ref,
                          w_qkv1_ref, w_o1_ref, w_qkv2_ref, w_o2_ref, b_qkv_ref,
                          w_ffn1_ref, b_ffn1_ref, w_ffn2_ref, misc_ref,
                          o_ref, *, num_heads, head_dim):
    """Entire decoder layer fused; every intermediate stays in VMEM/vregs.

    Activations are kept as (L*B, E) rows (row = seq*B + b) for the whole layer; the
    batch interleaving inside attention is handled with a precomputed {0,1} mask.
    """
    E = num_heads * head_dim
    scale = 1.0 / math.sqrt(head_dim)
    f32 = jnp.float32
    BIG_NEG = 1e30

    x = x_ref[...]                    # (L*B, E)
    enc = enc_ref[...]                # (S*B, E)
    self_mask = self_mask_ref[...]    # (L*B, L*B)  1.0 where same batch element
    cross_mask = cross_mask_ref[...]  # (L*B, S*B)
    b_qkv = b_qkv_ref[...]            # (2, 3E)  rows: bqkv_self, bqkv_cross
    misc = misc_ref[...]              # (9, E)   rows: bo1, bo2, ffn_b2, ln1_g, ln1_b, ln2_g, ln2_b, ln3_g, ln3_b

    # Lane index along d_model, used to head-mask V (puts each head's PV result directly
    # into its concat lanes, so one output projection suffices per MHA).
    lane = lax.broadcasted_iota(jnp.int32, (1, E), 1)

    def row(a, i):
        return a[i:i + 1, :]          # (1, cols), broadcasts over rows

    def add_layernorm(a, b_, g, beta):
        z = a + b_
        mu = jnp.mean(z, axis=-1, keepdims=True)
        var = jnp.mean(jnp.square(z - mu), axis=-1, keepdims=True)
        return (z - mu) * lax.rsqrt(var + LN_EPS) * g + beta

    def attention_core(q, k, v, w_o, b_o, mask):
        # q: (nq, E), k/v: (nkv, E), mask: (nq, nkv) {0,1} same-batch mask.
        nq = q.shape[0]
        acc = jnp.zeros((nq, E), f32)
        for h in range(num_heads):
            lo = h * head_dim
            hi = lo + head_dim
            qh = q[:, lo:hi] * scale                                       # (nq, Dh)
            kh = k[:, lo:hi]                                               # (nkv, Dh)
            # scores = qh @ kh^T -> (nq, nkv); mask out cross-batch positions.
            s = lax.dot_general(qh, kh, (((1,), (1,)), ((), ())),
                                preferred_element_type=f32)
            s = s * mask - (1.0 - mask) * BIG_NEG
            s = s - jnp.max(s, axis=-1, keepdims=True)
            p = jnp.exp(s)
            p = p * pl.reciprocal(jnp.sum(p, axis=-1, keepdims=True), approx=True)
            # Lane-masked V: only head-h columns are nonzero, so p @ vh lands the head
            # output at its concat lanes and the per-head results can simply be summed.
            vh = jnp.where((lane >= lo) & (lane < hi), v, 0.0)             # (nkv, E)
            acc = acc + jnp.dot(p, vh, preferred_element_type=f32)
        return jnp.dot(acc, w_o, preferred_element_type=f32) + b_o

    # --- self attention + residual + LayerNorm1 ---
    qkv1 = jnp.dot(x, w_qkv1_ref[...], preferred_element_type=f32) + row(b_qkv, 0)  # (L*B, 3E)
    attn1 = attention_core(qkv1[:, 0:E], qkv1[:, E:2 * E], qkv1[:, 2 * E:3 * E],
                           w_o1_ref[...], row(misc, 0), self_mask)
    out1 = add_layernorm(x, attn1, row(misc, 3), row(misc, 4))

    # --- cross attention + residual + LayerNorm2 ---
    w_qkv2 = w_qkv2_ref[...]
    q2 = jnp.dot(out1, w_qkv2[:, 0:E], preferred_element_type=f32) + b_qkv[1:2, 0:E]
    kv2 = jnp.dot(enc, w_qkv2[:, E:3 * E], preferred_element_type=f32) + b_qkv[1:2, E:3 * E]
    attn2 = attention_core(q2, kv2[:, 0:E], kv2[:, E:2 * E],
                           w_o2_ref[...], row(misc, 1), cross_mask)
    out2 = add_layernorm(out1, attn2, row(misc, 5), row(misc, 6))

    # --- FFN (Linear -> ReLU -> Linear) + residual + LayerNorm3 ---
    h1 = jnp.dot(out2, w_ffn1_ref[...], preferred_element_type=f32) + b_ffn1_ref[...]
    h1 = jnp.maximum(h1, 0.0)
    ffn_out = jnp.dot(h1, w_ffn2_ref[...], preferred_element_type=f32) + row(misc, 2)
    o_ref[...] = add_layernorm(out2, ffn_out, row(misc, 7), row(misc, 8))


# ----------------------------- Wrapper -----------------------------

def _batch_mask(n_q, n_kv, batch):
    """mask[r, c] = 1.0 iff row r (= seq*B + b) and col c belong to the same batch element."""
    rb = (jnp.arange(n_q) % batch)[:, None]
    cb = (jnp.arange(n_kv) % batch)[None, :]
    return (rb == cb).astype(jnp.float32)


def transformer_decoder_layer(x, enc_output, params):
    L, B, E = x.shape
    S = enc_output.shape[0]

    x2d = x.reshape(L * B, E)
    enc2d = enc_output.reshape(S * B, E)
    self_mask = _batch_mask(L * B, L * B, B)
    cross_mask = _batch_mask(L * B, S * B, B)

    kernel = functools.partial(_decoder_layer_kernel,
                               num_heads=NUM_HEADS, head_dim=HEAD_DIM)
    out2d = pl.pallas_call(
        kernel,
        out_shape=jax.ShapeDtypeStruct((L * B, E), jnp.float32),
    )(x2d, enc2d, self_mask, cross_mask,
      params["w_qkv1"], params["w_o1"], params["w_qkv2"], params["w_o2"], params["b_qkv"],
      params["w_ffn1"], params["b_ffn1"], params["w_ffn2"], params["misc"])
    return out2d.reshape(L, B, E)


# ----------------------------- Params & reference -----------------------------

def init_params(key):
    keys = iter(jax.random.split(key, 16))

    def w(shape, scale=0.02):
        return jax.random.normal(next(keys), shape, jnp.float32) * scale

    ones = jnp.ones((1, D_MODEL), jnp.float32)
    zeros = jnp.zeros((1, D_MODEL), jnp.float32)
    return {
        "w_qkv1": w((D_MODEL, 3 * D_MODEL)),   # columns [Wq | Wk | Wv], stored (in, out)
        "w_o1": w((D_MODEL, D_MODEL)),
        "w_qkv2": w((D_MODEL, 3 * D_MODEL)),
        "w_o2": w((D_MODEL, D_MODEL)),
        "b_qkv": w((2, 3 * D_MODEL)),          # rows: bqkv_self, bqkv_cross
        "w_ffn1": w((D_MODEL, DFF)),
        "b_ffn1": w((1, DFF)),
        "w_ffn2": w((DFF, D_MODEL)),
        # rows: bo1, bo2, ffn_b2, ln1_g, ln1_b, ln2_g, ln2_b, ln3_g, ln3_b
        "misc": jnp.concatenate(
            [w((1, D_MODEL)), w((1, D_MODEL)), w((1, D_MODEL)),
             ones, zeros, ones, zeros, ones, zeros], axis=0),
    }


def reference_decoder_layer(x, enc_output, params):
    """Pure-JAX reference mirroring PyTorch TransformerDecoderLayer eval-mode math."""
    L, B, E = x.shape
    S = enc_output.shape[0]
    H, Dh = NUM_HEADS, HEAD_DIM

    def layernorm(z, g, b):
        mu = z.mean(-1, keepdims=True)
        var = ((z - mu) ** 2).mean(-1, keepdims=True)
        return (z - mu) / jnp.sqrt(var + LN_EPS) * g + b

    def mha(q_in, kv_in, w_qkv, w_o, b_qkv, b_o):
        lq, sk = q_in.shape[0], kv_in.shape[0]
        q = q_in.reshape(lq * B, E) @ w_qkv[:, 0:E] + b_qkv[0:E]
        k = kv_in.reshape(sk * B, E) @ w_qkv[:, E:2 * E] + b_qkv[E:2 * E]
        v = kv_in.reshape(sk * B, E) @ w_qkv[:, 2 * E:3 * E] + b_qkv[2 * E:3 * E]
        q = q.reshape(lq, B, H, Dh).transpose(1, 2, 0, 3)   # (B,H,L,Dh)
        k = k.reshape(sk, B, H, Dh).transpose(1, 2, 0, 3)
        v = v.reshape(sk, B, H, Dh).transpose(1, 2, 0, 3)
        s = jnp.einsum("bhld,bhsd->bhls", q, k) / math.sqrt(Dh)
        p = jax.nn.softmax(s, axis=-1)
        o = jnp.einsum("bhls,bhsd->bhld", p, v)
        o = o.transpose(2, 0, 1, 3).reshape(lq * B, E)
        return o @ w_o + b_o

    misc, b_qkv = params["misc"], params["b_qkv"]
    x2 = x.reshape(L * B, E)
    a1 = mha(x, x, params["w_qkv1"], params["w_o1"], b_qkv[0], misc[0])
    out1 = layernorm(x2 + a1, misc[3], misc[4])
    a2 = mha(out1.reshape(L, B, E), enc_output, params["w_qkv2"], params["w_o2"],
             b_qkv[1], misc[1])
    out2 = layernorm(out1 + a2, misc[5], misc[6])
    h = jnp.maximum(out2 @ params["w_ffn1"] + params["b_ffn1"], 0.0)
    f = h @ params["w_ffn2"] + misc[2]
    return layernorm(out2 + f, misc[7], misc[8]).reshape(L, B, E)


# ----------------------------- Main -----------------------------

if __name__ == "__main__":
    key = jax.random.PRNGKey(0)
    k_p, k_x, k_e = jax.random.split(key, 3)

    L, S, B = 8, 8, 2  # tgt_len, src_len, batch
    params = init_params(k_p)
    x = jax.random.normal(k_x, (L, B, D_MODEL), jnp.float32)
    enc_output = jax.random.normal(k_e, (S, B, D_MODEL), jnp.float32)

    out = jax.jit(transformer_decoder_layer)(x, enc_output, params)
    out = jax.block_until_ready(out)

    ref = jax.jit(reference_decoder_layer)(x, enc_output, params)
    ref = jax.block_until_ready(ref)

    assert out.shape == (L, B, D_MODEL)
    assert bool(jnp.all(jnp.isfinite(out)))
    # approx reciprocal in the in-kernel softmax -> loose tolerance
    max_err = float(jnp.max(jnp.abs(out - ref)))
    assert bool(jnp.allclose(out, ref, rtol=2e-2, atol=2e-2)), max_err
    print("KERNEL_OK")
</pallas_src>

<mosaic_0001>
module attributes {stable_mosaic.version = 11 : i64} {
  func.func @_decoder_layer_kernel(%arg0: memref<16x32xf32, #tpu.memory_space<vmem>>, %arg1: memref<16x32xf32, #tpu.memory_space<vmem>>, %arg2: memref<16x16xf32, #tpu.memory_space<vmem>>, %arg3: memref<16x16xf32, #tpu.memory_space<vmem>>, %arg4: memref<32x96xf32, #tpu.memory_space<vmem>>, %arg5: memref<32x32xf32, #tpu.memory_space<vmem>>, %arg6: memref<32x96xf32, #tpu.memory_space<vmem>>, %arg7: memref<32x32xf32, #tpu.memory_space<vmem>>, %arg8: memref<2x96xf32, #tpu.memory_space<vmem>>, %arg9: memref<32x256xf32, #tpu.memory_space<vmem>>, %arg10: memref<1x256xf32, #tpu.memory_space<vmem>>, %arg11: memref<256x32xf32, #tpu.memory_space<vmem>>, %arg12: memref<9x32xf32, #tpu.memory_space<vmem>>, %arg13: memref<16x32xf32, #tpu.memory_space<vmem>>) attributes {dimension_semantics = [], scalar_prefetch = 0 : i64, scratch_operands = 0 : i64, tpu.core_type = #tpu.core_type<tc>} {
    %c0 = arith.constant 0 : index
    %c0_0 = arith.constant 0 : index
    %0 = vector.load %arg0[%c0, %c0_0] : memref<16x32xf32, #tpu.memory_space<vmem>>, vector<16x32xf32>
    %c0_1 = arith.constant 0 : index
    %c0_2 = arith.constant 0 : index
    %1 = vector.load %arg1[%c0_1, %c0_2] : memref<16x32xf32, #tpu.memory_space<vmem>>, vector<16x32xf32>
    %c0_3 = arith.constant 0 : index
    %c0_4 = arith.constant 0 : index
    %2 = vector.load %arg2[%c0_3, %c0_4] : memref<16x16xf32, #tpu.memory_space<vmem>>, vector<16x16xf32>
    %c0_5 = arith.constant 0 : index
    %c0_6 = arith.constant 0 : index
    %3 = vector.load %arg3[%c0_5, %c0_6] : memref<16x16xf32, #tpu.memory_space<vmem>>, vector<16x16xf32>
    %c0_7 = arith.constant 0 : index
    %c0_8 = arith.constant 0 : index
    %4 = vector.load %arg8[%c0_7, %c0_8] : memref<2x96xf32, #tpu.memory_space<vmem>>, vector<2x96xf32>
    %c0_9 = arith.constant 0 : index
    %c0_10 = arith.constant 0 : index
    %5 = vector.load %arg12[%c0_9, %c0_10] : memref<9x32xf32, #tpu.memory_space<vmem>>, vector<9x32xf32>
    %6 = tpu.iota {dimensions = array<i32: 1>} : vector<1x32xi32>
    %c0_11 = arith.constant 0 : index
    %c0_12 = arith.constant 0 : index
    %7 = vector.load %arg4[%c0_11, %c0_12] : memref<32x96xf32, #tpu.memory_space<vmem>>, vector<32x96xf32>
    %cst = arith.constant dense<0.000000e+00> : vector<16x96xf32>
    %8 = tpu.matmul %0, %7, %cst {dimension_numbers = #tpu.dot_dimension_numbers<[1], [0], [0], [1], [0, 0, 1, 1], [], []>} : vector<16x32xf32>, vector<32x96xf32>, vector<16x96xf32> -> vector<16x96xf32>
    %9 = vector.extract_strided_slice %4 {offsets = [0, 0], sizes = [1, 96], strides = [1, 1]} : vector<2x96xf32> to vector<1x96xf32>
    %10 = vector.broadcast %9 : vector<1x96xf32> to vector<16x96xf32>
    %11 = arith.addf %8, %10 : vector<16x96xf32>
    %12 = vector.extract_strided_slice %11 {offsets = [0, 0], sizes = [16, 32], strides = [1, 1]} : vector<16x96xf32> to vector<16x32xf32>
    %13 = vector.extract_strided_slice %11 {offsets = [0, 32], sizes = [16, 32], strides = [1, 1]} : vector<16x96xf32> to vector<16x32xf32>
    %14 = vector.extract_strided_slice %11 {offsets = [0, 64], sizes = [16, 32], strides = [1, 1]} : vector<16x96xf32> to vector<16x32xf32>
    %c0_13 = arith.constant 0 : index
    %c0_14 = arith.constant 0 : index
    %15 = vector.load %arg5[%c0_13, %c0_14] : memref<32x32xf32, #tpu.memory_space<vmem>>, vector<32x32xf32>
    %16 = vector.extract_strided_slice %5 {offsets = [0, 0], sizes = [1, 32], strides = [1, 1]} : vector<9x32xf32> to vector<1x32xf32>
    %cst_15 = arith.constant 0.000000e+00 : f32
    %17 = vector.broadcast %cst_15 : f32 to vector<16x32xf32>
    %18 = vector.extract_strided_slice %12 {offsets = [0, 0], sizes = [16, 4], strides = [1, 1]} : vector<16x32xf32> to vector<16x4xf32>
    %cst_16 = arith.constant 5.000000e-01 : f32
    %19 = vector.broadcast %cst_16 : f32 to vector<16x4xf32>
    %20 = arith.mulf %18, %19 : vector<16x4xf32>
    %21 = vector.extract_strided_slice %13 {offsets = [0, 0], sizes = [16, 4], strides = [1, 1]} : vector<16x32xf32> to vector<16x4xf32>
    %cst_17 = arith.constant dense<0.000000e+00> : vector<16x16xf32>
    %22 = tpu.matmul %20, %21, %cst_17 {dimension_numbers = #tpu.dot_dimension_numbers<[1], [1], [0], [0], [0, 0, 1, 0], [], []>} : vector<16x4xf32>, vector<16x4xf32>, vector<16x16xf32> -> vector<16x16xf32>
    %23 = arith.mulf %22, %2 : vector<16x16xf32>
    %cst_18 = arith.constant 1.000000e+00 : f32
    %24 = vector.broadcast %cst_18 : f32 to vector<16x16xf32>
    %25 = arith.subf %24, %2 : vector<16x16xf32>
    %cst_19 = arith.constant 1.000000e+30 : f32
    %26 = vector.broadcast %cst_19 : f32 to vector<16x16xf32>
    %27 = arith.mulf %25, %26 : vector<16x16xf32>
    %28 = arith.subf %23, %27 : vector<16x16xf32>
    %cst_20 = arith.constant dense<0xFF800000> : vector<16xf32>
    %29 = vector.multi_reduction <maximumf>, %28, %cst_20 [1] : vector<16x16xf32> to vector<16xf32>
    %30 = vector.shape_cast %29 : vector<16xf32> to vector<16x1xf32>
    %31 = vector.broadcast %30 : vector<16x1xf32> to vector<16x16xf32>
    %32 = arith.subf %28, %31 : vector<16x16xf32>
    %33 = math.exp %32 : vector<16x16xf32>
    %cst_21 = arith.constant dense<0.000000e+00> : vector<16xf32>
    %34 = vector.multi_reduction <add>, %33, %cst_21 [1] : vector<16x16xf32> to vector<16xf32>
    %35 = vector.shape_cast %34 : vector<16xf32> to vector<16x1xf32>
    %36 = tpu.reciprocal %35 {approx = true} : vector<16x1xf32> -> vector<16x1xf32>
    %37 = vector.broadcast %36 : vector<16x1xf32> to vector<16x16xf32>
    %38 = arith.mulf %33, %37 : vector<16x16xf32>
    %c0_i32 = arith.constant 0 : i32
    %39 = vector.broadcast %c0_i32 : i32 to vector<1x32xi32>
    %40 = arith.cmpi sge, %6, %39 : vector<1x32xi32>
    %c4_i32 = arith.constant 4 : i32
    %41 = vector.broadcast %c4_i32 : i32 to vector<1x32xi32>
    %42 = arith.cmpi slt, %6, %41 : vector<1x32xi32>
    %43 = arith.andi %40, %42 : vector<1x32xi1>
    %cst_22 = arith.constant 0.000000e+00 : f32
    %44 = vector.shape_cast %43 : vector<1x32xi1> to vector<1x32xi1>
    %45 = vector.broadcast %44 : vector<1x32xi1> to vector<16x32xi1>
    %46 = vector.broadcast %cst_22 : f32 to vector<16x32xf32>
    %47 = arith.select %45, %14, %46 : vector<16x32xi1>, vector<16x32xf32>
    %cst_23 = arith.constant dense<0.000000e+00> : vector<16x32xf32>
    %48 = tpu.matmul %38, %47, %cst_23 {dimension_numbers = #tpu.dot_dimension_numbers<[1], [0], [0], [1], [0, 0, 1, 1], [], []>} : vector<16x16xf32>, vector<16x32xf32>, vector<16x32xf32> -> vector<16x32xf32>
    %49 = arith.addf %17, %48 : vector<16x32xf32>
    %50 = vector.extract_strided_slice %12 {offsets = [0, 4], sizes = [16, 4], strides = [1, 1]} : vector<16x32xf32> to vector<16x4xf32>
    %cst_24 = arith.constant 5.000000e-01 : f32
    %51 = vector.broadcast %cst_24 : f32 to vector<16x4xf32>
    %52 = arith.mulf %50, %51 : vector<16x4xf32>
    %53 = vector.extract_strided_slice %13 {offsets = [0, 4], sizes = [16, 4], strides = [1, 1]} : vector<16x32xf32> to vector<16x4xf32>
    %cst_25 = arith.constant dense<0.000000e+00> : vector<16x16xf32>
    %54 = tpu.matmul %52, %53, %cst_25 {dimension_numbers = #tpu.dot_dimension_numbers<[1], [1], [0], [0], [0, 0, 1, 0], [], []>} : vector<16x4xf32>, vector<16x4xf32>, vector<16x16xf32> -> vector<16x16xf32>
    %55 = arith.mulf %54, %2 : vector<16x16xf32>
    %cst_26 = arith.constant 1.000000e+00 : f32
    %56 = vector.broadcast %cst_26 : f32 to vector<16x16xf32>
    %57 = arith.subf %56, %2 : vector<16x16xf32>
    %cst_27 = arith.constant 1.000000e+30 : f32
    %58 = vector.broadcast %cst_27 : f32 to vector<16x16xf32>
    %59 = arith.mulf %57, %58 : vector<16x16xf32>
    %60 = arith.subf %55, %59 : vector<16x16xf32>
    %cst_28 = arith.constant dense<0xFF800000> : vector<16xf32>
    %61 = vector.multi_reduction <maximumf>, %60, %cst_28 [1] : vector<16x16xf32> to vector<16xf32>
    %62 = vector.shape_cast %61 : vector<16xf32> to vector<16x1xf32>
    %63 = vector.broadcast %62 : vector<16x1xf32> to vector<16x16xf32>
    %64 = arith.subf %60, %63 : vector<16x16xf32>
    %65 = math.exp %64 : vector<16x16xf32>
    %cst_29 = arith.constant dense<0.000000e+00> : vector<16xf32>
    %66 = vector.multi_reduction <add>, %65, %cst_29 [1] : vector<16x16xf32> to vector<16xf32>
    %67 = vector.shape_cast %66 : vector<16xf32> to vector<16x1xf32>
    %68 = tpu.reciprocal %67 {approx = true} : vector<16x1xf32> -> vector<16x1xf32>
    %69 = vector.broadcast %68 : vector<16x1xf32> to vector<16x16xf32>
    %70 = arith.mulf %65, %69 : vector<16x16xf32>
    %c4_i32_30 = arith.constant 4 : i32
    %71 = vector.broadcast %c4_i32_30 : i32 to vector<1x32xi32>
    %72 = arith.cmpi sge, %6, %71 : vector<1x32xi32>
    %c8_i32 = arith.constant 8 : i32
    %73 = vector.broadcast %c8_i32 : i32 to vector<1x32xi32>
    %74 = arith.cmpi slt, %6, %73 : vector<1x32xi32>
    %75 = arith.andi %72, %74 : vector<1x32xi1>
    %cst_31 = arith.constant 0.000000e+00 : f32
    %76 = vector.shape_cast %75 : vector<1x32xi1> to vector<1x32xi1>
    %77 = vector.broadcast %76 : vector<1x32xi1> to vector<16x32xi1>
    %78 = vector.broadcast %cst_31 : f32 to vector<16x32xf32>
    %79 = arith.select %77, %14, %78 : vector<16x32xi1>, vector<16x32xf32>
    %cst_32 = arith.constant dense<0.000000e+00> : vector<16x32xf32>
    %80 = tpu.matmul %70, %79, %cst_32 {dimension_numbers = #tpu.dot_dimension_numbers<[1], [0], [0], [1], [0, 0, 1, 1], [], []>} : vector<16x16xf32>, vector<16x32xf32>, vector<16x32xf32> -> vector<16x32xf32>
    %81 = arith.addf %49, %80 : vector<16x32xf32>
    %82 = vector.extract_strided_slice %12 {offsets = [0, 8], sizes = [16, 4], strides = [1, 1]} : vector<16x32xf32> to vector<16x4xf32>
    %cst_33 = arith.constant 5.000000e-01 : f32
    %83 = vector.broadcast %cst_33 : f32 to vector<16x4xf32>
    %84 = arith.mulf %82, %83 : vector<16x4xf32>
    %85 = vector.extract_strided_slice %13 {offsets = [0, 8], sizes = [16, 4], strides = [1, 1]} : vector<16x32xf32> to vector<16x4xf32>
    %cst_34 = arith.constant dense<0.000000e+00> : vector<16x16xf32>
    %86 = tpu.matmul %84, %85, %cst_34 {dimension_numbers = #tpu.dot_dimension_numbers<[1], [1], [0], [0], [0, 0, 1, 0], [], []>} : vector<16x4xf32>, vector<16x4xf32>, vector<16x16xf32> -> vector<16x16xf32>
    %87 = arith.mulf %86, %2 : vector<16x16xf32>
    %cst_35 = arith.constant 1.000000e+00 : f32
    %88 = vector.broadcast %cst_35 : f32 to vector<16x16xf32>
    %89 = arith.subf %88, %2 : vector<16x16xf32>
    %cst_36 = arith.constant 1.000000e+30 : f32
    %90 = vector.broadcast %cst_36 : f32 to vector<16x16xf32>
    %91 = arith.mulf %89, %90 : vector<16x16xf32>
    %92 = arith.subf %87, %91 : vector<16x16xf32>
    %cst_37 = arith.constant dense<0xFF800000> : vector<16xf32>
    %93 = vector.multi_reduction <maximumf>, %92, %cst_37 [1] : vector<16x16xf32> to vector<16xf32>
    %94 = vector.shape_cast %93 : vector<16xf32> to vector<16x1xf32>
    %95 = vector.broadcast %94 : vector<16x1xf32> to vector<16x16xf32>
    %96 = arith.subf %92, %95 : vector<16x16xf32>
    %97 = math.exp %96 : vector<16x16xf32>
    %cst_38 = arith.constant dense<0.000000e+00> : vector<16xf32>
    %98 = vector.multi_reduction <add>, %97, %cst_38 [1] : vector<16x16xf32> to vector<16xf32>
    %99 = vector.shape_cast %98 : vector<16xf32> to vector<16x1xf32>
    %100 = tpu.reciprocal %99 {approx = true} : vector<16x1xf32> -> vector<16x1xf32>
    %101 = vector.broadcast %100 : vector<16x1xf32> to vector<16x16xf32>
    %102 = arith.mulf %97, %101 : vector<16x16xf32>
    %c8_i32_39 = arith.constant 8 : i32
    %103 = vector.broadcast %c8_i32_39 : i32 to vector<1x32xi32>
    %104 = arith.cmpi sge, %6, %103 : vector<1x32xi32>
    %c12_i32 = arith.constant 12 : i32
    %105 = vector.broadcast %c12_i32 : i32 to vector<1x32xi32>
    %106 = arith.cmpi slt, %6, %105 : vector<1x32xi32>
    %107 = arith.andi %104, %106 : vector<1x32xi1>
    %cst_40 = arith.constant 0.000000e+00 : f32
    %108 = vector.shape_cast %107 : vector<1x32xi1> to vector<1x32xi1>
    %109 = vector.broadcast %108 : vector<1x32xi1> to vector<16x32xi1>
    %110 = vector.broadcast %cst_40 : f32 to vector<16x32xf32>
    %111 = arith.select %109, %14, %110 : vector<16x32xi1>, vector<16x32xf32>
    %cst_41 = arith.constant dense<0.000000e+00> : vector<16x32xf32>
    %112 = tpu.matmul %102, %111, %cst_41 {dimension_numbers = #tpu.dot_dimension_numbers<[1], [0], [0], [1], [0, 0, 1, 1], [], []>} : vector<16x16xf32>, vector<16x32xf32>, vector<16x32xf32> -> vector<16x32xf32>
    %113 = arith.addf %81, %112 : vector<16x32xf32>
    %114 = vector.extract_strided_slice %12 {offsets = [0, 12], sizes = [16, 4], strides = [1, 1]} : vector<16x32xf32> to vector<16x4xf32>
    %cst_42 = arith.constant 5.000000e-01 : f32
    %115 = vector.broadcast %cst_42 : f32 to vector<16x4xf32>
    %116 = arith.mulf %114, %115 : vector<16x4xf32>
    %117 = vector.extract_strided_slice %13 {offsets = [0, 12], sizes = [16, 4], strides = [1, 1]} : vector<16x32xf32> to vector<16x4xf32>
    %cst_43 = arith.constant dense<0.000000e+00> : vector<16x16xf32>
    %118 = tpu.matmul %116, %117, %cst_43 {dimension_numbers = #tpu.dot_dimension_numbers<[1], [1], [0], [0], [0, 0, 1, 0], [], []>} : vector<16x4xf32>, vector<16x4xf32>, vector<16x16xf32> -> vector<16x16xf32>
    %119 = arith.mulf %118, %2 : vector<16x16xf32>
    %cst_44 = arith.constant 1.000000e+00 : f32
    %120 = vector.broadcast %cst_44 : f32 to vector<16x16xf32>
    %121 = arith.subf %120, %2 : vector<16x16xf32>
    %cst_45 = arith.constant 1.000000e+30 : f32
    %122 = vector.broadcast %cst_45 : f32 to vector<16x16xf32>
    %123 = arith.mulf %121, %122 : vector<16x16xf32>
    %124 = arith.subf %119, %123 : vector<16x16xf32>
    %cst_46 = arith.constant dense<0xFF800000> : vector<16xf32>
    %125 = vector.multi_reduction <maximumf>, %124, %cst_46 [1] : vector<16x16xf32> to vector<16xf32>
    %126 = vector.shape_cast %125 : vector<16xf32> to vector<16x1xf32>
    %127 = vector.broadcast %126 : vector<16x1xf32> to vector<16x16xf32>
    %128 = arith.subf %124, %127 : vector<16x16xf32>
    %129 = math.exp %128 : vector<16x16xf32>
    %cst_47 = arith.constant dense<0.000000e+00> : vector<16xf32>
    %130 = vector.multi_reduction <add>, %129, %cst_47 [1] : vector<16x16xf32> to vector<16xf32>
    %131 = vector.shape_cast %130 : vector<16xf32> to vector<16x1xf32>
    %132 = tpu.reciprocal %131 {approx = true} : vector<16x1xf32> -> vector<16x1xf32>
    %133 = vector.broadcast %132 : vector<16x1xf32> to vector<16x16xf32>
    %134 = arith.mulf %129, %133 : vector<16x16xf32>
    %c12_i32_48 = arith.constant 12 : i32
    %135 = vector.broadcast %c12_i32_48 : i32 to vector<1x32xi32>
    %136 = arith.cmpi sge, %6, %135 : vector<1x32xi32>
    %c16_i32 = arith.constant 16 : i32
    %137 = vector.broadcast %c16_i32 : i32 to vector<1x32xi32>
    %138 = arith.cmpi slt, %6, %137 : vector<1x32xi32>
    %139 = arith.andi %136, %138 : vector<1x32xi1>
    %cst_49 = arith.constant 0.000000e+00 : f32
    %140 = vector.shape_cast %139 : vector<1x32xi1> to vector<1x32xi1>
    %141 = vector.broadcast %140 : vector<1x32xi1> to vector<16x32xi1>
    %142 = vector.broadcast %cst_49 : f32 to vector<16x32xf32>
    %143 = arith.select %141, %14, %142 : vector<16x32xi1>, vector<16x32xf32>
    %cst_50 = arith.constant dense<0.000000e+00> : vector<16x32xf32>
    %144 = tpu.matmul %134, %143, %cst_50 {dimension_numbers = #tpu.dot_dimension_numbers<[1], [0], [0], [1], [0, 0, 1, 1], [], []>} : vector<16x16xf32>, vector<16x32xf32>, vector<16x32xf32> -> vector<16x32xf32>
    %145 = arith.addf %113, %144 : vector<16x32xf32>
    %146 = vector.extract_strided_slice %12 {offsets = [0, 16], sizes = [16, 4], strides = [1, 1]} : vector<16x32xf32> to vector<16x4xf32>
    %cst_51 = arith.constant 5.000000e-01 : f32
    %147 = vector.broadcast %cst_51 : f32 to vector<16x4xf32>
    %148 = arith.mulf %146, %147 : vector<16x4xf32>
    %149 = vector.extract_strided_slice %13 {offsets = [0, 16], sizes = [16, 4], strides = [1, 1]} : vector<16x32xf32> to vector<16x4xf32>
    %cst_52 = arith.constant dense<0.000000e+00> : vector<16x16xf32>
    %150 = tpu.matmul %148, %149, %cst_52 {dimension_numbers = #tpu.dot_dimension_numbers<[1], [1], [0], [0], [0, 0, 1, 0], [], []>} : vector<16x4xf32>, vector<16x4xf32>, vector<16x16xf32> -> vector<16x16xf32>
    %151 = arith.mulf %150, %2 : vector<16x16xf32>
    %cst_53 = arith.constant 1.000000e+00 : f32
    %152 = vector.broadcast %cst_53 : f32 to vector<16x16xf32>
    %153 = arith.subf %152, %2 : vector<16x16xf32>
    %cst_54 = arith.constant 1.000000e+30 : f32
    %154 = vector.broadcast %cst_54 : f32 to vector<16x16xf32>
    %155 = arith.mulf %153, %154 : vector<16x16xf32>
    %156 = arith.subf %151, %155 : vector<16x16xf32>
    %cst_55 = arith.constant dense<0xFF800000> : vector<16xf32>
    %157 = vector.multi_reduction <maximumf>, %156, %cst_55 [1] : vector<16x16xf32> to vector<16xf32>
    %158 = vector.shape_cast %157 : vector<16xf32> to vector<16x1xf32>
    %159 = vector.broadcast %158 : vector<16x1xf32> to vector<16x16xf32>
    %160 = arith.subf %156, %159 : vector<16x16xf32>
    %161 = math.exp %160 : vector<16x16xf32>
    %cst_56 = arith.constant dense<0.000000e+00> : vector<16xf32>
    %162 = vector.multi_reduction <add>, %161, %cst_56 [1] : vector<16x16xf32> to vector<16xf32>
    %163 = vector.shape_cast %162 : vector<16xf32> to vector<16x1xf32>
    %164 = tpu.reciprocal %163 {approx = true} : vector<16x1xf32> -> vector<16x1xf32>
    %165 = vector.broadcast %164 : vector<16x1xf32> to vector<16x16xf32>
    %166 = arith.mulf %161, %165 : vector<16x16xf32>
    %c16_i32_57 = arith.constant 16 : i32
    %167 = vector.broadcast %c16_i32_57 : i32 to vector<1x32xi32>
    %168 = arith.cmpi sge, %6, %167 : vector<1x32xi32>
    %c20_i32 = arith.constant 20 : i32
    %169 = vector.broadcast %c20_i32 : i32 to vector<1x32xi32>
    %170 = arith.cmpi slt, %6, %169 : vector<1x32xi32>
    %171 = arith.andi %168, %170 : vector<1x32xi1>
    %cst_58 = arith.constant 0.000000e+00 : f32
    %172 = vector.shape_cast %171 : vector<1x32xi1> to vector<1x32xi1>
    %173 = vector.broadcast %172 : vector<1x32xi1> to vector<16x32xi1>
    %174 = vector.broadcast %cst_58 : f32 to vector<16x32xf32>
    %175 = arith.select %173, %14, %174 : vector<16x32xi1>, vector<16x32xf32>
    %cst_59 = arith.constant dense<0.000000e+00> : vector<16x32xf32>
    %176 = tpu.matmul %166, %175, %cst_59 {dimension_numbers = #tpu.dot_dimension_numbers<[1], [0], [0], [1], [0, 0, 1, 1], [], []>} : vector<16x16xf32>, vector<16x32xf32>, vector<16x32xf32> -> vector<16x32xf32>
    %177 = arith.addf %145, %176 : vector<16x32xf32>
    %178 = vector.extract_strided_slice %12 {offsets = [0, 20], sizes = [16, 4], strides = [1, 1]} : vector<16x32xf32> to vector<16x4xf32>
    %cst_60 = arith.constant 5.000000e-01 : f32
    %179 = vector.broadcast %cst_60 : f32 to vector<16x4xf32>
    %180 = arith.mulf %178, %179 : vector<16x4xf32>
    %181 = vector.extract_strided_slice %13 {offsets = [0, 20], sizes = [16, 4], strides = [1, 1]} : vector<16x32xf32> to vector<16x4xf32>
    %cst_61 = arith.constant dense<0.000000e+00> : vector<16x16xf32>
    %182 = tpu.matmul %180, %181, %cst_61 {dimension_numbers = #tpu.dot_dimension_numbers<[1], [1], [0], [0], [0, 0, 1, 0], [], []>} : vector<16x4xf32>, vector<16x4xf32>, vector<16x16xf32> -> vector<16x16xf32>
    %183 = arith.mulf %182, %2 : vector<16x16xf32>
    %cst_62 = arith.constant 1.000000e+00 : f32
    %184 = vector.broadcast %cst_62 : f32 to vector<16x16xf32>
    %185 = arith.subf %184, %2 : vector<16x16xf32>
    %cst_63 = arith.constant 1.000000e+30 : f32
    %186 = vector.broadcast %cst_63 : f32 to vector<16x16xf32>
    %187 = arith.mulf %185, %186 : vector<16x16xf32>
    %188 = arith.subf %183, %187 : vector<16x16xf32>
    %cst_64 = arith.constant dense<0xFF800000> : vector<16xf32>
    %189 = vector.multi_reduction <maximumf>, %188, %cst_64 [1] : vector<16x16xf32> to vector<16xf32>
    %190 = vector.shape_cast %189 : vector<16xf32> to vector<16x1xf32>
    %191 = vector.broadcast %190 : vector<16x1xf32> to vector<16x16xf32>
    %192 = arith.subf %188, %191 : vector<16x16xf32>
    %193 = math.exp %192 : vector<16x16xf32>
    %cst_65 = arith.constant dense<0.000000e+00> : vector<16xf32>
    %194 = vector.multi_reduction <add>, %193, %cst_65 [1] : vector<16x16xf32> to vector<16xf32>
    %195 = vector.shape_cast %194 : vector<16xf32> to vector<16x1xf32>
    %196 = tpu.reciprocal %195 {approx = true} : vector<16x1xf32> -> vector<16x1xf32>
    %197 = vector.broadcast %196 : vector<16x1xf32> to vector<16x16xf32>
    %198 = arith.mulf %193, %197 : vector<16x16xf32>
    %c20_i32_66 = arith.constant 20 : i32
    %199 = vector.broadcast %c20_i32_66 : i32 to vector<1x32xi32>
    %200 = arith.cmpi sge, %6, %199 : vector<1x32xi32>
    %c24_i32 = arith.constant 24 : i32
    %201 = vector.broadcast %c24_i32 : i32 to vector<1x32xi32>
    %202 = arith.cmpi slt, %6, %201 : vector<1x32xi32>
    %203 = arith.andi %200, %202 : vector<1x32xi1>
    %cst_67 = arith.constant 0.000000e+00 : f32
    %204 = vector.shape_cast %203 : vector<1x32xi1> to vector<1x32xi1>
    %205 = vector.broadcast %204 : vector<1x32xi1> to vector<16x32xi1>
    %206 = vector.broadcast %cst_67 : f32 to vector<16x32xf32>
    %207 = arith.select %205, %14, %206 : vector<16x32xi1>, vector<16x32xf32>
    %cst_68 = arith.constant dense<0.000000e+00> : vector<16x32xf32>
    %208 = tpu.matmul %198, %207, %cst_68 {dimension_numbers = #tpu.dot_dimension_numbers<[1], [0], [0], [1], [0, 0, 1, 1], [], []>} : vector<16x16xf32>, vector<16x32xf32>, vector<16x32xf32> -> vector<16x32xf32>
    %209 = arith.addf %177, %208 : vector<16x32xf32>
    %210 = vector.extract_strided_slice %12 {offsets = [0, 24], sizes = [16, 4], strides = [1, 1]} : vector<16x32xf32> to vector<16x4xf32>
    %cst_69 = arith.constant 5.000000e-01 : f32
    %211 = vector.broadcast %cst_69 : f32 to vector<16x4xf32>
    %212 = arith.mulf %210, %211 : vector<16x4xf32>
    %213 = vector.extract_strided_slice %13 {offsets = [0, 24], sizes = [16, 4], strides = [1, 1]} : vector<16x32xf32> to vector<16x4xf32>
    %cst_70 = arith.constant dense<0.000000e+00> : vector<16x16xf32>
    %214 = tpu.matmul %212, %213, %cst_70 {dimension_numbers = #tpu.dot_dimension_numbers<[1], [1], [0], [0], [0, 0, 1, 0], [], []>} : vector<16x4xf32>, vector<16x4xf32>, vector<16x16xf32> -> vector<16x16xf32>
    %215 = arith.mulf %214, %2 : vector<16x16xf32>
    %cst_71 = arith.constant 1.000000e+00 : f32
    %216 = vector.broadcast %cst_71 : f32 to vector<16x16xf32>
    %217 = arith.subf %216, %2 : vector<16x16xf32>
    %cst_72 = arith.constant 1.000000e+30 : f32
    %218 = vector.broadcast %cst_72 : f32 to vector<16x16xf32>
    %219 = arith.mulf %217, %218 : vector<16x16xf32>
    %220 = arith.subf %215, %219 : vector<16x16xf32>
    %cst_73 = arith.constant dense<0xFF800000> : vector<16xf32>
    %221 = vector.multi_reduction <maximumf>, %220, %cst_73 [1] : vector<16x16xf32> to vector<16xf32>
    %222 = vector.shape_cast %221 : vector<16xf32> to vector<16x1xf32>
    %223 = vector.broadcast %222 : vector<16x1xf32> to vector<16x16xf32>
    %224 = arith.subf %220, %223 : vector<16x16xf32>
    %225 = math.exp %224 : vector<16x16xf32>
    %cst_74 = arith.constant dense<0.000000e+00> : vector<16xf32>
    %226 = vector.multi_reduction <add>, %225, %cst_74 [1] : vector<16x16xf32> to vector<16xf32>
    %227 = vector.shape_cast %226 : vector<16xf32> to vector<16x1xf32>
    %228 = tpu.reciprocal %227 {approx = true} : vector<16x1xf32> -> vector<16x1xf32>
    %229 = vector.broadcast %228 : vector<16x1xf32> to vector<16x16xf32>
    %230 = arith.mulf %225, %229 : vector<16x16xf32>
    %c24_i32_75 = arith.constant 24 : i32
    %231 = vector.broadcast %c24_i32_75 : i32 to vector<1x32xi32>
    %232 = arith.cmpi sge, %6, %231 : vector<1x32xi32>
    %c28_i32 = arith.constant 28 : i32
    %233 = vector.broadcast %c28_i32 : i32 to vector<1x32xi32>
    %234 = arith.cmpi slt, %6, %233 : vector<1x32xi32>
    %235 = arith.andi %232, %234 : vector<1x32xi1>
    %cst_76 = arith.constant 0.000000e+00 : f32
    %236 = vector.shape_cast %235 : vector<1x32xi1> to vector<1x32xi1>
    %237 = vector.broadcast %236 : vector<1x32xi1> to vector<16x32xi1>
    %238 = vector.broadcast %cst_76 : f32 to vector<16x32xf32>
    %239 = arith.select %237, %14, %238 : vector<16x32xi1>, vector<16x32xf32>
    %cst_77 = arith.constant dense<0.000000e+00> : vector<16x32xf32>
    %240 = tpu.matmul %230, %239, %cst_77 {dimension_numbers = #tpu.dot_dimension_numbers<[1], [0], [0], [1], [0, 0, 1, 1], [], []>} : vector<16x16xf32>, vector<16x32xf32>, vector<16x32xf32> -> vector<16x32xf32>
    %241 = arith.addf %209, %240 : vector<16x32xf32>
    %242 = vector.extract_strided_slice %12 {offsets = [0, 28], sizes = [16, 4], strides = [1, 1]} : vector<16x32xf32> to vector<16x4xf32>
    %cst_78 = arith.constant 5.000000e-01 : f32
    %243 = vector.broadcast %cst_78 : f32 to vector<16x4xf32>
    %244 = arith.mulf %242, %243 : vector<16x4xf32>
    %245 = vector.extract_strided_slice %13 {offsets = [0, 28], sizes = [16, 4], strides = [1, 1]} : vector<16x32xf32> to vector<16x4xf32>
    %cst_79 = arith.constant dense<0.000000e+00> : vector<16x16xf32>
    %246 = tpu.matmul %244, %245, %cst_79 {dimension_numbers = #tpu.dot_dimension_numbers<[1], [1], [0], [0], [0, 0, 1, 0], [], []>} : vector<16x4xf32>, vector<16x4xf32>, vector<16x16xf32> -> vector<16x16xf32>
    %247 = arith.mulf %246, %2 : vector<16x16xf32>
    %cst_80 = arith.constant 1.000000e+00 : f32
    %248 = vector.broadcast %cst_80 : f32 to vector<16x16xf32>
    %249 = arith.subf %248, %2 : vector<16x16xf32>
    %cst_81 = arith.constant 1.000000e+30 : f32
    %250 = vector.broadcast %cst_81 : f32 to vector<16x16xf32>
    %251 = arith.mulf %249, %250 : vector<16x16xf32>
    %252 = arith.subf %247, %251 : vector<16x16xf32>
    %cst_82 = arith.constant dense<0xFF800000> : vector<16xf32>
    %253 = vector.multi_reduction <maximumf>, %252, %cst_82 [1] : vector<16x16xf32> to vector<16xf32>
    %254 = vector.shape_cast %253 : vector<16xf32> to vector<16x1xf32>
    %255 = vector.broadcast %254 : vector<16x1xf32> to vector<16x16xf32>
    %256 = arith.subf %252, %255 : vector<16x16xf32>
    %257 = math.exp %256 : vector<16x16xf32>
    %cst_83 = arith.constant dense<0.000000e+00> : vector<16xf32>
    %258 = vector.multi_reduction <add>, %257, %cst_83 [1] : vector<16x16xf32> to vector<16xf32>
    %259 = vector.shape_cast %258 : vector<16xf32> to vector<16x1xf32>
    %260 = tpu.reciprocal %259 {approx = true} : vector<16x1xf32> -> vector<16x1xf32>
    %261 = vector.broadcast %260 : vector<16x1xf32> to vector<16x16xf32>
    %262 = arith.mulf %257, %261 : vector<16x16xf32>
    %c28_i32_84 = arith.constant 28 : i32
    %263 = vector.broadcast %c28_i32_84 : i32 to vector<1x32xi32>
    %264 = arith.cmpi sge, %6, %263 : vector<1x32xi32>
    %c32_i32 = arith.constant 32 : i32
    %265 = vector.broadcast %c32_i32 : i32 to vector<1x32xi32>
    %266 = arith.cmpi slt, %6, %265 : vector<1x32xi32>
    %267 = arith.andi %264, %266 : vector<1x32xi1>
    %cst_85 = arith.constant 0.000000e+00 : f32
    %268 = vector.shape_cast %267 : vector<1x32xi1> to vector<1x32xi1>
    %269 = vector.broadcast %268 : vector<1x32xi1> to vector<16x32xi1>
    %270 = vector.broadcast %cst_85 : f32 to vector<16x32xf32>
    %271 = arith.select %269, %14, %270 : vector<16x32xi1>, vector<16x32xf32>
    %cst_86 = arith.constant dense<0.000000e+00> : vector<16x32xf32>
    %272 = tpu.matmul %262, %271, %cst_86 {dimension_numbers = #tpu.dot_dimension_numbers<[1], [0], [0], [1], [0, 0, 1, 1], [], []>} : vector<16x16xf32>, vector<16x32xf32>, vector<16x32xf32> -> vector<16x32xf32>
    %273 = arith.addf %241, %272 : vector<16x32xf32>
    %cst_87 = arith.constant dense<0.000000e+00> : vector<16x32xf32>
    %274 = tpu.matmul %273, %15, %cst_87 {dimension_numbers = #tpu.dot_dimension_numbers<[1], [0], [0], [1], [0, 0, 1, 1], [], []>} : vector<16x32xf32>, vector<32x32xf32>, vector<16x32xf32> -> vector<16x32xf32>
    %275 = vector.broadcast %16 : vector<1x32xf32> to vector<16x32xf32>
    %276 = arith.addf %274, %275 : vector<16x32xf32>
    %277 = vector.extract_strided_slice %5 {offsets = [3, 0], sizes = [1, 32], strides = [1, 1]} : vector<9x32xf32> to vector<1x32xf32>
    %278 = vector.extract_strided_slice %5 {offsets = [4, 0], sizes = [1, 32], strides = [1, 1]} : vector<9x32xf32> to vector<1x32xf32>
    %279 = arith.addf %0, %276 : vector<16x32xf32>
    %cst_88 = arith.constant dense<0.000000e+00> : vector<16xf32>
    %280 = vector.multi_reduction <add>, %279, %cst_88 [1] : vector<16x32xf32> to vector<16xf32>
    %281 = vector.shape_cast %280 : vector<16xf32> to vector<16x1xf32>
    %cst_89 = arith.constant 3.200000e+01 : f32
    %282 = vector.broadcast %cst_89 : f32 to vector<16x1xf32>
    %283 = arith.divf %281, %282 : vector<16x1xf32>
    %284 = vector.broadcast %283 : vector<16x1xf32> to vector<16x32xf32>
    %285 = arith.subf %279, %284 : vector<16x32xf32>
    %286 = arith.mulf %285, %285 : vector<16x32xf32>
    %cst_90 = arith.constant dense<0.000000e+00> : vector<16xf32>
    %287 = vector.multi_reduction <add>, %286, %cst_90 [1] : vector<16x32xf32> to vector<16xf32>
    %288 = vector.shape_cast %287 : vector<16xf32> to vector<16x1xf32>
    %cst_91 = arith.constant 3.200000e+01 : f32
    %289 = vector.broadcast %cst_91 : f32 to vector<16x1xf32>
    %290 = arith.divf %288, %289 : vector<16x1xf32>
    %291 = vector.broadcast %283 : vector<16x1xf32> to vector<16x32xf32>
    %292 = arith.subf %279, %291 : vector<16x32xf32>
    %cst_92 = arith.constant 9.99999997E-7 : f32
    %293 = vector.broadcast %cst_92 : f32 to vector<16x1xf32>
    %294 = arith.addf %290, %293 : vector<16x1xf32>
    %295 = math.rsqrt %294 : vector<16x1xf32>
    %296 = vector.broadcast %295 : vector<16x1xf32> to vector<16x32xf32>
    %297 = arith.mulf %292, %296 : vector<16x32xf32>
    %298 = vector.broadcast %277 : vector<1x32xf32> to vector<16x32xf32>
    %299 = arith.mulf %297, %298 : vector<16x32xf32>
    %300 = vector.broadcast %278 : vector<1x32xf32> to vector<16x32xf32>
    %301 = arith.addf %299, %300 : vector<16x32xf32>
    %c0_93 = arith.constant 0 : index
    %c0_94 = arith.constant 0 : index
    %302 = vector.load %arg6[%c0_93, %c0_94] : memref<32x96xf32, #tpu.memory_space<vmem>>, vector<32x96xf32>
    %303 = vector.extract_strided_slice %302 {offsets = [0, 0], sizes = [32, 32], strides = [1, 1]} : vector<32x96xf32> to vector<32x32xf32>
    %cst_95 = arith.constant dense<0.000000e+00> : vector<16x32xf32>
    %304 = tpu.matmul %301, %303, %cst_95 {dimension_numbers = #tpu.dot_dimension_numbers<[1], [0], [0], [1], [0, 0, 1, 1], [], []>} : vector<16x32xf32>, vector<32x32xf32>, vector<16x32xf32> -> vector<16x32xf32>
    %305 = vector.extract_strided_slice %4 {offsets = [1, 0], sizes = [1, 32], strides = [1, 1]} : vector<2x96xf32> to vector<1x32xf32>
    %306 = vector.broadcast %305 : vector<1x32xf32> to vector<16x32xf32>
    %307 = arith.addf %304, %306 : vector<16x32xf32>
    %308 = vector.extract_strided_slice %302 {offsets = [0, 32], sizes = [32, 64], strides = [1, 1]} : vector<32x96xf32> to vector<32x64xf32>
    %cst_96 = arith.constant dense<0.000000e+00> : vector<16x64xf32>
    %309 = tpu.matmul %1, %308, %cst_96 {dimension_numbers = #tpu.dot_dimension_numbers<[1], [0], [0], [1], [0, 0, 1, 1], [], []>} : vector<16x32xf32>, vector<32x64xf32>, vector<16x64xf32> -> vector<16x64xf32>
    %310 = vector.extract_strided_slice %4 {offsets = [1, 32], sizes = [1, 64], strides = [1, 1]} : vector<2x96xf32> to vector<1x64xf32>
    %311 = vector.broadcast %310 : vector<1x64xf32> to vector<16x64xf32>
    %312 = arith.addf %309, %311 : vector<16x64xf32>
    %313 = vector.extract_strided_slice %312 {offsets = [0, 0], sizes = [16, 32], strides = [1, 1]} : vector<16x64xf32> to vector<16x32xf32>
    %314 = vector.extract_strided_slice %312 {offsets = [0, 32], sizes = [16, 32], strides = [1, 1]} : vector<16x64xf32> to vector<16x32xf32>
    %c0_97 = arith.constant 0 : index
    %c0_98 = arith.constant 0 : index
    %315 = vector.load %arg7[%c0_97, %c0_98] : memref<32x32xf32, #tpu.memory_space<vmem>>, vector<32x32xf32>
    %316 = vector.extract_strided_slice %5 {offsets = [1, 0], sizes = [1, 32], strides = [1, 1]} : vector<9x32xf32> to vector<1x32xf32>
    %cst_99 = arith.constant 0.000000e+00 : f32
    %317 = vector.broadcast %cst_99 : f32 to vector<16x32xf32>
    %318 = vector.extract_strided_slice %307 {offsets = [0, 0], sizes = [16, 4], strides = [1, 1]} : vector<16x32xf32> to vector<16x4xf32>
    %cst_100 = arith.constant 5.000000e-01 : f32
    %319 = vector.broadcast %cst_100 : f32 to vector<16x4xf32>
    %320 = arith.mulf %318, %319 : vector<16x4xf32>
    %321 = vector.extract_strided_slice %313 {offsets = [0, 0], sizes = [16, 4], strides = [1, 1]} : vector<16x32xf32> to vector<16x4xf32>
    %cst_101 = arith.constant dense<0.000000e+00> : vector<16x16xf32>
    %322 = tpu.matmul %320, %321, %cst_101 {dimension_numbers = #tpu.dot_dimension_numbers<[1], [1], [0], [0], [0, 0, 1, 0], [], []>} : vector<16x4xf32>, vector<16x4xf32>, vector<16x16xf32> -> vector<16x16xf32>
    %323 = arith.mulf %322, %3 : vector<16x16xf32>
    %cst_102 = arith.constant 1.000000e+00 : f32
    %324 = vector.broadcast %cst_102 : f32 to vector<16x16xf32>
    %325 = arith.subf %324, %3 : vector<16x16xf32>
    %cst_103 = arith.constant 1.000000e+30 : f32
    %326 = vector.broadcast %cst_103 : f32 to vector<16x16xf32>
    %327 = arith.mulf %325, %326 : vector<16x16xf32>
    %328 = arith.subf %323, %327 : vector<16x16xf32>
    %cst_104 = arith.constant dense<0xFF800000> : vector<16xf32>
    %329 = vector.multi_reduction <maximumf>, %328, %cst_104 [1] : vector<16x16xf32> to vector<16xf32>
    %330 = vector.shape_cast %329 : vector<16xf32> to vector<16x1xf32>
    %331 = vector.broadcast %330 : vector<16x1xf32> to vector<16x16xf32>
    %332 = arith.subf %328, %331 : vector<16x16xf32>
    %333 = math.exp %332 : vector<16x16xf32>
    %cst_105 = arith.constant dense<0.000000e+00> : vector<16xf32>
    %334 = vector.multi_reduction <add>, %333, %cst_105 [1] : vector<16x16xf32> to vector<16xf32>
    %335 = vector.shape_cast %334 : vector<16xf32> to vector<16x1xf32>
    %336 = tpu.reciprocal %335 {approx = true} : vector<16x1xf32> -> vector<16x1xf32>
    %337 = vector.broadcast %336 : vector<16x1xf32> to vector<16x16xf32>
    %338 = arith.mulf %333, %337 : vector<16x16xf32>
    %c0_i32_106 = arith.constant 0 : i32
    %339 = vector.broadcast %c0_i32_106 : i32 to vector<1x32xi32>
    %340 = arith.cmpi sge, %6, %339 : vector<1x32xi32>
    %c4_i32_107 = arith.constant 4 : i32
    %341 = vector.broadcast %c4_i32_107 : i32 to vector<1x32xi32>
    %342 = arith.cmpi slt, %6, %341 : vector<1x32xi32>
    %343 = arith.andi %340, %342 : vector<1x32xi1>
    %cst_108 = arith.constant 0.000000e+00 : f32
    %344 = vector.shape_cast %343 : vector<1x32xi1> to vector<1x32xi1>
    %345 = vector.broadcast %344 : vector<1x32xi1> to vector<16x32xi1>
    %346 = vector.broadcast %cst_108 : f32 to vector<16x32xf32>
    %347 = arith.select %345, %314, %346 : vector<16x32xi1>, vector<16x32xf32>
    %cst_109 = arith.constant dense<0.000000e+00> : vector<16x32xf32>
    %348 = tpu.matmul %338, %347, %cst_109 {dimension_numbers = #tpu.dot_dimension_numbers<[1], [0], [0], [1], [0, 0, 1, 1], [], []>} : vector<16x16xf32>, vector<16x32xf32>, vector<16x32xf32> -> vector<16x32xf32>
    %349 = arith.addf %317, %348 : vector<16x32xf32>
    %350 = vector.extract_strided_slice %307 {offsets = [0, 4], sizes = [16, 4], strides = [1, 1]} : vector<16x32xf32> to vector<16x4xf32>
    %cst_110 = arith.constant 5.000000e-01 : f32
    %351 = vector.broadcast %cst_110 : f32 to vector<16x4xf32>
    %352 = arith.mulf %350, %351 : vector<16x4xf32>
    %353 = vector.extract_strided_slice %313 {offsets = [0, 4], sizes = [16, 4], strides = [1, 1]} : vector<16x32xf32> to vector<16x4xf32>
    %cst_111 = arith.constant dense<0.000000e+00> : vector<16x16xf32>
    %354 = tpu.matmul %352, %353, %cst_111 {dimension_numbers = #tpu.dot_dimension_numbers<[1], [1], [0], [0], [0, 0, 1, 0], [], []>} : vector<16x4xf32>, vector<16x4xf32>, vector<16x16xf32> -> vector<16x16xf32>
    %355 = arith.mulf %354, %3 : vector<16x16xf32>
    %cst_112 = arith.constant 1.000000e+00 : f32
    %356 = vector.broadcast %cst_112 : f32 to vector<16x16xf32>
    %357 = arith.subf %356, %3 : vector<16x16xf32>
    %cst_113 = arith.constant 1.000000e+30 : f32
    %358 = vector.broadcast %cst_113 : f32 to vector<16x16xf32>
    %359 = arith.mulf %357, %358 : vector<16x16xf32>
    %360 = arith.subf %355, %359 : vector<16x16xf32>
    %cst_114 = arith.constant dense<0xFF800000> : vector<16xf32>
    %361 = vector.multi_reduction <maximumf>, %360, %cst_114 [1] : vector<16x16xf32> to vector<16xf32>
    %362 = vector.shape_cast %361 : vector<16xf32> to vector<16x1xf32>
    %363 = vector.broadcast %362 : vector<16x1xf32> to vector<16x16xf32>
    %364 = arith.subf %360, %363 : vector<16x16xf32>
    %365 = math.exp %364 : vector<16x16xf32>
    %cst_115 = arith.constant dense<0.000000e+00> : vector<16xf32>
    %366 = vector.multi_reduction <add>, %365, %cst_115 [1] : vector<16x16xf32> to vector<16xf32>
    %367 = vector.shape_cast %366 : vector<16xf32> to vector<16x1xf32>
    %368 = tpu.reciprocal %367 {approx = true} : vector<16x1xf32> -> vector<16x1xf32>
    %369 = vector.broadcast %368 : vector<16x1xf32> to vector<16x16xf32>
    %370 = arith.mulf %365, %369 : vector<16x16xf32>
    %c4_i32_116 = arith.constant 4 : i32
    %371 = vector.broadcast %c4_i32_116 : i32 to vector<1x32xi32>
    %372 = arith.cmpi sge, %6, %371 : vector<1x32xi32>
    %c8_i32_117 = arith.constant 8 : i32
    %373 = vector.broadcast %c8_i32_117 : i32 to vector<1x32xi32>
    %374 = arith.cmpi slt, %6, %373 : vector<1x32xi32>
    %375 = arith.andi %372, %374 : vector<1x32xi1>
    %cst_118 = arith.constant 0.000000e+00 : f32
    %376 = vector.shape_cast %375 : vector<1x32xi1> to vector<1x32xi1>
    %377 = vector.broadcast %376 : vector<1x32xi1> to vector<16x32xi1>
    %378 = vector.broadcast %cst_118 : f32 to vector<16x32xf32>
    %379 = arith.select %377, %314, %378 : vector<16x32xi1>, vector<16x32xf32>
    %cst_119 = arith.constant dense<0.000000e+00> : vector<16x32xf32>
    %380 = tpu.matmul %370, %379, %cst_119 {dimension_numbers = #tpu.dot_dimension_numbers<[1], [0], [0], [1], [0, 0, 1, 1], [], []>} : vector<16x16xf32>, vector<16x32xf32>, vector<16x32xf32> -> vector<16x32xf32>
    %381 = arith.addf %349, %380 : vector<16x32xf32>
    %382 = vector.extract_strided_slice %307 {offsets = [0, 8], sizes = [16, 4], strides = [1, 1]} : vector<16x32xf32> to vector<16x4xf32>
    %cst_120 = arith.constant 5.000000e-01 : f32
    %383 = vector.broadcast %cst_120 : f32 to vector<16x4xf32>
    %384 = arith.mulf %382, %383 : vector<16x4xf32>
    %385 = vector.extract_strided_slice %313 {offsets = [0, 8], sizes = [16, 4], strides = [1, 1]} : vector<16x32xf32> to vector<16x4xf32>
    %cst_121 = arith.constant dense<0.000000e+00> : vector<16x16xf32>
    %386 = tpu.matmul %384, %385, %cst_121 {dimension_numbers = #tpu.dot_dimension_numbers<[1], [1], [0], [0], [0, 0, 1, 0], [], []>} : vector<16x4xf32>, vector<16x4xf32>, vector<16x16xf32> -> vector<16x16xf32>
    %387 = arith.mulf %386, %3 : vector<16x16xf32>
    %cst_122 = arith.constant 1.000000e+00 : f32
    %388 = vector.broadcast %cst_122 : f32 to vector<16x16xf32>
    %389 = arith.subf %388, %3 : vector<16x16xf32>
    %cst_123 = arith.constant 1.000000e+30 : f32
    %390 = vector.broadcast %cst_123 : f32 to vector<16x16xf32>
    %391 = arith.mulf %389, %390 : vector<16x16xf32>
    %392 = arith.subf %387, %391 : vector<16x16xf32>
    %cst_124 = arith.constant dense<0xFF800000> : vector<16xf32>
    %393 = vector.multi_reduction <maximumf>, %392, %cst_124 [1] : vector<16x16xf32> to vector<16xf32>
    %394 = vector.shape_cast %393 : vector<16xf32> to vector<16x1xf32>
    %395 = vector.broadcast %394 : vector<16x1xf32> to vector<16x16xf32>
    %396 = arith.subf %392, %395 : vector<16x16xf32>
    %397 = math.exp %396 : vector<16x16xf32>
    %cst_125 = arith.constant dense<0.000000e+00> : vector<16xf32>
    %398 = vector.multi_reduction <add>, %397, %cst_125 [1] : vector<16x16xf32> to vector<16xf32>
    %399 = vector.shape_cast %398 : vector<16xf32> to vector<16x1xf32>
    %400 = tpu.reciprocal %399 {approx = true} : vector<16x1xf32> -> vector<16x1xf32>
    %401 = vector.broadcast %400 : vector<16x1xf32> to vector<16x16xf32>
    %402 = arith.mulf %397, %401 : vector<16x16xf32>
    %c8_i32_126 = arith.constant 8 : i32
    %403 = vector.broadcast %c8_i32_126 : i32 to vector<1x32xi32>
    %404 = arith.cmpi sge, %6, %403 : vector<1x32xi32>
    %c12_i32_127 = arith.constant 12 : i32
    %405 = vector.broadcast %c12_i32_127 : i32 to vector<1x32xi32>
    %406 = arith.cmpi slt, %6, %405 : vector<1x32xi32>
    %407 = arith.andi %404, %406 : vector<1x32xi1>
    %cst_128 = arith.constant 0.000000e+00 : f32
    %408 = vector.shape_cast %407 : vector<1x32xi1> to vector<1x32xi1>
    %409 = vector.broadcast %408 : vector<1x32xi1> to vector<16x32xi1>
    %410 = vector.broadcast %cst_128 : f32 to vector<16x32xf32>
    %411 = arith.select %409, %314, %410 : vector<16x32xi1>, vector<16x32xf32>
    %cst_129 = arith.constant dense<0.000000e+00> : vector<16x32xf32>
    %412 = tpu.matmul %402, %411, %cst_129 {dimension_numbers = #tpu.dot_dimension_numbers<[1], [0], [0], [1], [0, 0, 1, 1], [], []>} : vector<16x16xf32>, vector<16x32xf32>, vector<16x32xf32> -> vector<16x32xf32>
    %413 = arith.addf %381, %412 : vector<16x32xf32>
    %414 = vector.extract_strided_slice %307 {offsets = [0, 12], sizes = [16, 4], strides = [1, 1]} : vector<16x32xf32> to vector<16x4xf32>
    %cst_130 = arith.constant 5.000000e-01 : f32
    %415 = vector.broadcast %cst_130 : f32 to vector<16x4xf32>
    %416 = arith.mulf %414, %415 : vector<16x4xf32>
    %417 = vector.extract_strided_slice %313 {offsets = [0, 12], sizes = [16, 4], strides = [1, 1]} : vector<16x32xf32> to vector<16x4xf32>
    %cst_131 = arith.constant dense<0.000000e+00> : vector<16x16xf32>
    %418 = tpu.matmul %416, %417, %cst_131 {dimension_numbers = #tpu.dot_dimension_numbers<[1], [1], [0], [0], [0, 0, 1, 0], [], []>} : vector<16x4xf32>, vector<16x4xf32>, vector<16x16xf32> -> vector<16x16xf32>
    %419 = arith.mulf %418, %3 : vector<16x16xf32>
    %cst_132 = arith.constant 1.000000e+00 : f32
    %420 = vector.broadcast %cst_132 : f32 to vector<16x16xf32>
    %421 = arith.subf %420, %3 : vector<16x16xf32>
    %cst_133 = arith.constant 1.000000e+30 : f32
    %422 = vector.broadcast %cst_133 : f32 to vector<16x16xf32>
    %423 = arith.mulf %421, %422 : vector<16x16xf32>
    %424 = arith.subf %419, %423 : vector<16x16xf32>
    %cst_134 = arith.constant dense<0xFF800000> : vector<16xf32>
    %425 = vector.multi_reduction <maximumf>, %424, %cst_134 [1] : vector<16x16xf32> to vector<16xf32>
    %426 = vector.shape_cast %425 : vector<16xf32> to vector<16x1xf32>
    %427 = vector.broadcast %426 : vector<16x1xf32> to vector<16x16xf32>
    %428 = arith.subf %424, %427 : vector<16x16xf32>
    %429 = math.exp %428 : vector<16x16xf32>
    %cst_135 = arith.constant dense<0.000000e+00> : vector<16xf32>
    %430 = vector.multi_reduction <add>, %429, %cst_135 [1] : vector<16x16xf32> to vector<16xf32>
    %431 = vector.shape_cast %430 : vector<16xf32> to vector<16x1xf32>
    %432 = tpu.reciprocal %431 {approx = true} : vector<16x1xf32> -> vector<16x1xf32>
    %433 = vector.broadcast %432 : vector<16x1xf32> to vector<16x16xf32>
    %434 = arith.mulf %429, %433 : vector<16x16xf32>
    %c12_i32_136 = arith.constant 12 : i32
    %435 = vector.broadcast %c12_i32_136 : i32 to vector<1x32xi32>
    %436 = arith.cmpi sge, %6, %435 : vector<1x32xi32>
    %c16_i32_137 = arith.constant 16 : i32
    %437 = vector.broadcast %c16_i32_137 : i32 to vector<1x32xi32>
    %438 = arith.cmpi slt, %6, %437 : vector<1x32xi32>
    %439 = arith.andi %436, %438 : vector<1x32xi1>
    %cst_138 = arith.constant 0.000000e+00 : f32
    %440 = vector.shape_cast %439 : vector<1x32xi1> to vector<1x32xi1>
    %441 = vector.broadcast %440 : vector<1x32xi1> to vector<16x32xi1>
    %442 = vector.broadcast %cst_138 : f32 to vector<16x32xf32>
    %443 = arith.select %441, %314, %442 : vector<16x32xi1>, vector<16x32xf32>
    %cst_139 = arith.constant dense<0.000000e+00> : vector<16x32xf32>
    %444 = tpu.matmul %434, %443, %cst_139 {dimension_numbers = #tpu.dot_dimension_numbers<[1], [0], [0], [1], [0, 0, 1, 1], [], []>} : vector<16x16xf32>, vector<16x32xf32>, vector<16x32xf32> -> vector<16x32xf32>
    %445 = arith.addf %413, %444 : vector<16x32xf32>
    %446 = vector.extract_strided_slice %307 {offsets = [0, 16], sizes = [16, 4], strides = [1, 1]} : vector<16x32xf32> to vector<16x4xf32>
    %cst_140 = arith.constant 5.000000e-01 : f32
    %447 = vector.broadcast %cst_140 : f32 to vector<16x4xf32>
    %448 = arith.mulf %446, %447 : vector<16x4xf32>
    %449 = vector.extract_strided_slice %313 {offsets = [0, 16], sizes = [16, 4], strides = [1, 1]} : vector<16x32xf32> to vector<16x4xf32>
    %cst_141 = arith.constant dense<0.000000e+00> : vector<16x16xf32>
    %450 = tpu.matmul %448, %449, %cst_141 {dimension_numbers = #tpu.dot_dimension_numbers<[1], [1], [0], [0], [0, 0, 1, 0], [], []>} : vector<16x4xf32>, vector<16x4xf32>, vector<16x16xf32> -> vector<16x16xf32>
    %451 = arith.mulf %450, %3 : vector<16x16xf32>
    %cst_142 = arith.constant 1.000000e+00 : f32
    %452 = vector.broadcast %cst_142 : f32 to vector<16x16xf32>
    %453 = arith.subf %452, %3 : vector<16x16xf32>
    %cst_143 = arith.constant 1.000000e+30 : f32
    %454 = vector.broadcast %cst_143 : f32 to vector<16x16xf32>
    %455 = arith.mulf %453, %454 : vector<16x16xf32>
    %456 = arith.subf %451, %455 : vector<16x16xf32>
    %cst_144 = arith.constant dense<0xFF800000> : vector<16xf32>
    %457 = vector.multi_reduction <maximumf>, %456, %cst_144 [1] : vector<16x16xf32> to vector<16xf32>
    %458 = vector.shape_cast %457 : vector<16xf32> to vector<16x1xf32>
    %459 = vector.broadcast %458 : vector<16x1xf32> to vector<16x16xf32>
    %460 = arith.subf %456, %459 : vector<16x16xf32>
    %461 = math.exp %460 : vector<16x16xf32>
    %cst_145 = arith.constant dense<0.000000e+00> : vector<16xf32>
    %462 = vector.multi_reduction <add>, %461, %cst_145 [1] : vector<16x16xf32> to vector<16xf32>
    %463 = vector.shape_cast %462 : vector<16xf32> to vector<16x1xf32>
    %464 = tpu.reciprocal %463 {approx = true} : vector<16x1xf32> -> vector<16x1xf32>
    %465 = vector.broadcast %464 : vector<16x1xf32> to vector<16x16xf32>
    %466 = arith.mulf %461, %465 : vector<16x16xf32>
    %c16_i32_146 = arith.constant 16 : i32
    %467 = vector.broadcast %c16_i32_146 : i32 to vector<1x32xi32>
    %468 = arith.cmpi sge, %6, %467 : vector<1x32xi32>
    %c20_i32_147 = arith.constant 20 : i32
    %469 = vector.broadcast %c20_i32_147 : i32 to vector<1x32xi32>
    %470 = arith.cmpi slt, %6, %469 : vector<1x32xi32>
    %471 = arith.andi %468, %470 : vector<1x32xi1>
    %cst_148 = arith.constant 0.000000e+00 : f32
    %472 = vector.shape_cast %471 : vector<1x32xi1> to vector<1x32xi1>
    %473 = vector.broadcast %472 : vector<1x32xi1> to vector<16x32xi1>
    %474 = vector.broadcast %cst_148 : f32 to vector<16x32xf32>
    %475 = arith.select %473, %314, %474 : vector<16x32xi1>, vector<16x32xf32>
    %cst_149 = arith.constant dense<0.000000e+00> : vector<16x32xf32>
    %476 = tpu.matmul %466, %475, %cst_149 {dimension_numbers = #tpu.dot_dimension_numbers<[1], [0], [0], [1], [0, 0, 1, 1], [], []>} : vector<16x16xf32>, vector<16x32xf32>, vector<16x32xf32> -> vector<16x32xf32>
    %477 = arith.addf %445, %476 : vector<16x32xf32>
    %478 = vector.extract_strided_slice %307 {offsets = [0, 20], sizes = [16, 4], strides = [1, 1]} : vector<16x32xf32> to vector<16x4xf32>
    %cst_150 = arith.constant 5.000000e-01 : f32
    %479 = vector.broadcast %cst_150 : f32 to vector<16x4xf32>
    %480 = arith.mulf %478, %479 : vector<16x4xf32>
    %481 = vector.extract_strided_slice %313 {offsets = [0, 20], sizes = [16, 4], strides = [1, 1]} : vector<16x32xf32> to vector<16x4xf32>
    %cst_151 = arith.constant dense<0.000000e+00> : vector<16x16xf32>
    %482 = tpu.matmul %480, %481, %cst_151 {dimension_numbers = #tpu.dot_dimension_numbers<[1], [1], [0], [0], [0, 0, 1, 0], [], []>} : vector<16x4xf32>, vector<16x4xf32>, vector<16x16xf32> -> vector<16x16xf32>
    %483 = arith.mulf %482, %3 : vector<16x16xf32>
    %cst_152 = arith.constant 1.000000e+00 : f32
    %484 = vector.broadcast %cst_152 : f32 to vector<16x16xf32>
    %485 = arith.subf %484, %3 : vector<16x16xf32>
    %cst_153 = arith.constant 1.000000e+30 : f32
    %486 = vector.broadcast %cst_153 : f32 to vector<16x16xf32>
    %487 = arith.mulf %485, %486 : vector<16x16xf32>
    %488 = arith.subf %483, %487 : vector<16x16xf32>
    %cst_154 = arith.constant dense<0xFF800000> : vector<16xf32>
    %489 = vector.multi_reduction <maximumf>, %488, %cst_154 [1] : vector<16x16xf32> to vector<16xf32>
    %490 = vector.shape_cast %489 : vector<16xf32> to vector<16x1xf32>
    %491 = vector.broadcast %490 : vector<16x1xf32> to vector<16x16xf32>
    %492 = arith.subf %488, %491 : vector<16x16xf32>
    %493 = math.exp %492 : vector<16x16xf32>
    %cst_155 = arith.constant dense<0.000000e+00> : vector<16xf32>
    %494 = vector.multi_reduction <add>, %493, %cst_155 [1] : vector<16x16xf32> to vector<16xf32>
    %495 = vector.shape_cast %494 : vector<16xf32> to vector<16x1xf32>
    %496 = tpu.reciprocal %495 {approx = true} : vector<16x1xf32> -> vector<16x1xf32>
    %497 = vector.broadcast %496 : vector<16x1xf32> to vector<16x16xf32>
    %498 = arith.mulf %493, %497 : vector<16x16xf32>
    %c20_i32_156 = arith.constant 20 : i32
    %499 = vector.broadcast %c20_i32_156 : i32 to vector<1x32xi32>
    %500 = arith.cmpi sge, %6, %499 : vector<1x32xi32>
    %c24_i32_157 = arith.constant 24 : i32
    %501 = vector.broadcast %c24_i32_157 : i32 to vector<1x32xi32>
    %502 = arith.cmpi slt, %6, %501 : vector<1x32xi32>
    %503 = arith.andi %500, %502 : vector<1x32xi1>
    %cst_158 = arith.constant 0.000000e+00 : f32
    %504 = vector.shape_cast %503 : vector<1x32xi1> to vector<1x32xi1>
    %505 = vector.broadcast %504 : vector<1x32xi1> to vector<16x32xi1>
    %506 = vector.broadcast %cst_158 : f32 to vector<16x32xf32>
    %507 = arith.select %505, %314, %506 : vector<16x32xi1>, vector<16x32xf32>
    %cst_159 = arith.constant dense<0.000000e+00> : vector<16x32xf32>
    %508 = tpu.matmul %498, %507, %cst_159 {dimension_numbers = #tpu.dot_dimension_numbers<[1], [0], [0], [1], [0, 0, 1, 1], [], []>} : vector<16x16xf32>, vector<16x32xf32>, vector<16x32xf32> -> vector<16x32xf32>
    %509 = arith.addf %477, %508 : vector<16x32xf32>
    %510 = vector.extract_strided_slice %307 {offsets = [0, 24], sizes = [16, 4], strides = [1, 1]} : vector<16x32xf32> to vector<16x4xf32>
    %cst_160 = arith.constant 5.000000e-01 : f32
    %511 = vector.broadcast %cst_160 : f32 to vector<16x4xf32>
    %512 = arith.mulf %510, %511 : vector<16x4xf32>
    %513 = vector.extract_strided_slice %313 {offsets = [0, 24], sizes = [16, 4], strides = [1, 1]} : vector<16x32xf32> to vector<16x4xf32>
    %cst_161 = arith.constant dense<0.000000e+00> : vector<16x16xf32>
    %514 = tpu.matmul %512, %513, %cst_161 {dimension_numbers = #tpu.dot_dimension_numbers<[1], [1], [0], [0], [0, 0, 1, 0], [], []>} : vector<16x4xf32>, vector<16x4xf32>, vector<16x16xf32> -> vector<16x16xf32>
    %515 = arith.mulf %514, %3 : vector<16x16xf32>
    %cst_162 = arith.constant 1.000000e+00 : f32
    %516 = vector.broadcast %cst_162 : f32 to vector<16x16xf32>
    %517 = arith.subf %516, %3 : vector<16x16xf32>
    %cst_163 = arith.constant 1.000000e+30 : f32
    %518 = vector.broadcast %cst_163 : f32 to vector<16x16xf32>
    %519 = arith.mulf %517, %518 : vector<16x16xf32>
    %520 = arith.subf %515, %519 : vector<16x16xf32>
    %cst_164 = arith.constant dense<0xFF800000> : vector<16xf32>
    %521 = vector.multi_reduction <maximumf>, %520, %cst_164 [1] : vector<16x16xf32> to vector<16xf32>
    %522 = vector.shape_cast %521 : vector<16xf32> to vector<16x1xf32>
    %523 = vector.broadcast %522 : vector<16x1xf32> to vector<16x16xf32>
    %524 = arith.subf %520, %523 : vector<16x16xf32>
    %525 = math.exp %524 : vector<16x16xf32>
    %cst_165 = arith.constant dense<0.000000e+00> : vector<16xf32>
    %526 = vector.multi_reduction <add>, %525, %cst_165 [1] : vector<16x16xf32> to vector<16xf32>
    %527 = vector.shape_cast %526 : vector<16xf32> to vector<16x1xf32>
    %528 = tpu.reciprocal %527 {approx = true} : vector<16x1xf32> -> vector<16x1xf32>
    %529 = vector.broadcast %528 : vector<16x1xf32> to vector<16x16xf32>
    %530 = arith.mulf %525, %529 : vector<16x16xf32>
    %c24_i32_166 = arith.constant 24 : i32
    %531 = vector.broadcast %c24_i32_166 : i32 to vector<1x32xi32>
    %532 = arith.cmpi sge, %6, %531 : vector<1x32xi32>
    %c28_i32_167 = arith.constant 28 : i32
    %533 = vector.broadcast %c28_i32_167 : i32 to vector<1x32xi32>
    %534 = arith.cmpi slt, %6, %533 : vector<1x32xi32>
    %535 = arith.andi %532, %534 : vector<1x32xi1>
    %cst_168 = arith.constant 0.000000e+00 : f32
    %536 = vector.shape_cast %535 : vector<1x32xi1> to vector<1x32xi1>
    %537 = vector.broadcast %536 : vector<1x32xi1> to vector<16x32xi1>
    %538 = vector.broadcast %cst_168 : f32 to vector<16x32xf32>
    %539 = arith.select %537, %314, %538 : vector<16x32xi1>, vector<16x32xf32>
    %cst_169 = arith.constant dense<0.000000e+00> : vector<16x32xf32>
    %540 = tpu.matmul %530, %539, %cst_169 {dimension_numbers = #tpu.dot_dimension_numbers<[1], [0], [0], [1], [0, 0, 1, 1], [], []>} : vector<16x16xf32>, vector<16x32xf32>, vector<16x32xf32> -> vector<16x32xf32>
    %541 = arith.addf %509, %540 : vector<16x32xf32>
    %542 = vector.extract_strided_slice %307 {offsets = [0, 28], sizes = [16, 4], strides = [1, 1]} : vector<16x32xf32> to vector<16x4xf32>
    %cst_170 = arith.constant 5.000000e-01 : f32
    %543 = vector.broadcast %cst_170 : f32 to vector<16x4xf32>
    %544 = arith.mulf %542, %543 : vector<16x4xf32>
    %545 = vector.extract_strided_slice %313 {offsets = [0, 28], sizes = [16, 4], strides = [1, 1]} : vector<16x32xf32> to vector<16x4xf32>
    %cst_171 = arith.constant dense<0.000000e+00> : vector<16x16xf32>
    %546 = tpu.matmul %544, %545, %cst_171 {dimension_numbers = #tpu.dot_dimension_numbers<[1], [1], [0], [0], [0, 0, 1, 0], [], []>} : vector<16x4xf32>, vector<16x4xf32>, vector<16x16xf32> -> vector<16x16xf32>
    %547 = arith.mulf %546, %3 : vector<16x16xf32>
    %cst_172 = arith.constant 1.000000e+00 : f32
    %548 = vector.broadcast %cst_172 : f32 to vector<16x16xf32>
    %549 = arith.subf %548, %3 : vector<16x16xf32>
    %cst_173 = arith.constant 1.000000e+30 : f32
    %550 = vector.broadcast %cst_173 : f32 to vector<16x16xf32>
    %551 = arith.mulf %549, %550 : vector<16x16xf32>
    %552 = arith.subf %547, %551 : vector<16x16xf32>
    %cst_174 = arith.constant dense<0xFF800000> : vector<16xf32>
    %553 = vector.multi_reduction <maximumf>, %552, %cst_174 [1] : vector<16x16xf32> to vector<16xf32>
    %554 = vector.shape_cast %553 : vector<16xf32> to vector<16x1xf32>
    %555 = vector.broadcast %554 : vector<16x1xf32> to vector<16x16xf32>
    %556 = arith.subf %552, %555 : vector<16x16xf32>
    %557 = math.exp %556 : vector<16x16xf32>
    %cst_175 = arith.constant dense<0.000000e+00> : vector<16xf32>
    %558 = vector.multi_reduction <add>, %557, %cst_175 [1] : vector<16x16xf32> to vector<16xf32>
    %559 = vector.shape_cast %558 : vector<16xf32> to vector<16x1xf32>
    %560 = tpu.reciprocal %559 {approx = true} : vector<16x1xf32> -> vector<16x1xf32>
    %561 = vector.broadcast %560 : vector<16x1xf32> to vector<16x16xf32>
    %562 = arith.mulf %557, %561 : vector<16x16xf32>
    %c28_i32_176 = arith.constant 28 : i32
    %563 = vector.broadcast %c28_i32_176 : i32 to vector<1x32xi32>
    %564 = arith.cmpi sge, %6, %563 : vector<1x32xi32>
    %c32_i32_177 = arith.constant 32 : i32
    %565 = vector.broadcast %c32_i32_177 : i32 to vector<1x32xi32>
    %566 = arith.cmpi slt, %6, %565 : vector<1x32xi32>
    %567 = arith.andi %564, %566 : vector<1x32xi1>
    %cst_178 = arith.constant 0.000000e+00 : f32
    %568 = vector.shape_cast %567 : vector<1x32xi1> to vector<1x32xi1>
    %569 = vector.broadcast %568 : vector<1x32xi1> to vector<16x32xi1>
    %570 = vector.broadcast %cst_178 : f32 to vector<16x32xf32>
    %571 = arith.select %569, %314, %570 : vector<16x32xi1>, vector<16x32xf32>
    %cst_179 = arith.constant dense<0.000000e+00> : vector<16x32xf32>
    %572 = tpu.matmul %562, %571, %cst_179 {dimension_numbers = #tpu.dot_dimension_numbers<[1], [0], [0], [1], [0, 0, 1, 1], [], []>} : vector<16x16xf32>, vector<16x32xf32>, vector<16x32xf32> -> vector<16x32xf32>
    %573 = arith.addf %541, %572 : vector<16x32xf32>
    %cst_180 = arith.constant dense<0.000000e+00> : vector<16x32xf32>
    %574 = tpu.matmul %573, %315, %cst_180 {dimension_numbers = #tpu.dot_dimension_numbers<[1], [0], [0], [1], [0, 0, 1, 1], [], []>} : vector<16x32xf32>, vector<32x32xf32>, vector<16x32xf32> -> vector<16x32xf32>
    %575 = vector.broadcast %316 : vector<1x32xf32> to vector<16x32xf32>
    %576 = arith.addf %574, %575 : vector<16x32xf32>
    %577 = vector.extract_strided_slice %5 {offsets = [5, 0], sizes = [1, 32], strides = [1, 1]} : vector<9x32xf32> to vector<1x32xf32>
    %578 = vector.extract_strided_slice %5 {offsets = [6, 0], sizes = [1, 32], strides = [1, 1]} : vector<9x32xf32> to vector<1x32xf32>
    %579 = arith.addf %301, %576 : vector<16x32xf32>
    %cst_181 = arith.constant dense<0.000000e+00> : vector<16xf32>
    %580 = vector.multi_reduction <add>, %579, %cst_181 [1] : vector<16x32xf32> to vector<16xf32>
    %581 = vector.shape_cast %580 : vector<16xf32> to vector<16x1xf32>
    %cst_182 = arith.constant 3.200000e+01 : f32
    %582 = vector.broadcast %cst_182 : f32 to vector<16x1xf32>
    %583 = arith.divf %581, %582 : vector<16x1xf32>
    %584 = vector.broadcast %583 : vector<16x1xf32> to vector<16x32xf32>
    %585 = arith.subf %579, %584 : vector<16x32xf32>
    %586 = arith.mulf %585, %585 : vector<16x32xf32>
    %cst_183 = arith.constant dense<0.000000e+00> : vector<16xf32>
    %587 = vector.multi_reduction <add>, %586, %cst_183 [1] : vector<16x32xf32> to vector<16xf32>
    %588 = vector.shape_cast %587 : vector<16xf32> to vector<16x1xf32>
    %cst_184 = arith.constant 3.200000e+01 : f32
    %589 = vector.broadcast %cst_184 : f32 to vector<16x1xf32>
    %590 = arith.divf %588, %589 : vector<16x1xf32>
    %591 = vector.broadcast %583 : vector<16x1xf32> to vector<16x32xf32>
    %592 = arith.subf %579, %591 : vector<16x32xf32>
    %cst_185 = arith.constant 9.99999997E-7 : f32
    %593 = vector.broadcast %cst_185 : f32 to vector<16x1xf32>
    %594 = arith.addf %590, %593 : vector<16x1xf32>
    %595 = math.rsqrt %594 : vector<16x1xf32>
    %596 = vector.broadcast %595 : vector<16x1xf32> to vector<16x32xf32>
    %597 = arith.mulf %592, %596 : vector<16x32xf32>
    %598 = vector.broadcast %577 : vector<1x32xf32> to vector<16x32xf32>
    %599 = arith.mulf %597, %598 : vector<16x32xf32>
    %600 = vector.broadcast %578 : vector<1x32xf32> to vector<16x32xf32>
    %601 = arith.addf %599, %600 : vector<16x32xf32>
    %c0_186 = arith.constant 0 : index
    %c0_187 = arith.constant 0 : index
    %602 = vector.load %arg9[%c0_186, %c0_187] : memref<32x256xf32, #tpu.memory_space<vmem>>, vector<32x256xf32>
    %cst_188 = arith.constant dense<0.000000e+00> : vector<16x256xf32>
    %603 = tpu.matmul %601, %602, %cst_188 {dimension_numbers = #tpu.dot_dimension_numbers<[1], [0], [0], [1], [0, 0, 1, 1], [], []>} : vector<16x32xf32>, vector<32x256xf32>, vector<16x256xf32> -> vector<16x256xf32>
    %c0_189 = arith.constant 0 : index
    %c0_190 = arith.constant 0 : index
    %604 = vector.load %arg10[%c0_189, %c0_190] : memref<1x256xf32, #tpu.memory_space<vmem>>, vector<1x256xf32>
    %605 = vector.broadcast %604 : vector<1x256xf32> to vector<16x256xf32>
    %606 = arith.addf %603, %605 : vector<16x256xf32>
    %cst_191 = arith.constant 0.000000e+00 : f32
    %607 = vector.broadcast %cst_191 : f32 to vector<16x256xf32>
    %608 = arith.maximumf %606, %607 : vector<16x256xf32>
    %c0_192 = arith.constant 0 : index
    %c0_193 = arith.constant 0 : index
    %609 = vector.load %arg11[%c0_192, %c0_193] : memref<256x32xf32, #tpu.memory_space<vmem>>, vector<256x32xf32>
    %cst_194 = arith.constant dense<0.000000e+00> : vector<16x32xf32>
    %610 = tpu.matmul %608, %609, %cst_194 {dimension_numbers = #tpu.dot_dimension_numbers<[1], [0], [0], [1], [0, 0, 1, 1], [], []>} : vector<16x256xf32>, vector<256x32xf32>, vector<16x32xf32> -> vector<16x32xf32>
    %611 = vector.extract_strided_slice %5 {offsets = [2, 0], sizes = [1, 32], strides = [1, 1]} : vector<9x32xf32> to vector<1x32xf32>
    %612 = vector.broadcast %611 : vector<1x32xf32> to vector<16x32xf32>
    %613 = arith.addf %610, %612 : vector<16x32xf32>
    %614 = vector.extract_strided_slice %5 {offsets = [7, 0], sizes = [1, 32], strides = [1, 1]} : vector<9x32xf32> to vector<1x32xf32>
    %615 = vector.extract_strided_slice %5 {offsets = [8, 0], sizes = [1, 32], strides = [1, 1]} : vector<9x32xf32> to vector<1x32xf32>
    %616 = arith.addf %601, %613 : vector<16x32xf32>
    %cst_195 = arith.constant dense<0.000000e+00> : vector<16xf32>
    %617 = vector.multi_reduction <add>, %616, %cst_195 [1] : vector<16x32xf32> to vector<16xf32>
    %618 = vector.shape_cast %617 : vector<16xf32> to vector<16x1xf32>
    %cst_196 = arith.constant 3.200000e+01 : f32
    %619 = vector.broadcast %cst_196 : f32 to vector<16x1xf32>
    %620 = arith.divf %618, %619 : vector<16x1xf32>
    %621 = vector.broadcast %620 : vector<16x1xf32> to vector<16x32xf32>
    %622 = arith.subf %616, %621 : vector<16x32xf32>
    %623 = arith.mulf %622, %622 : vector<16x32xf32>
    %cst_197 = arith.constant dense<0.000000e+00> : vector<16xf32>
    %624 = vector.multi_reduction <add>, %623, %cst_197 [1] : vector<16x32xf32> to vector<16xf32>
    %625 = vector.shape_cast %624 : vector<16xf32> to vector<16x1xf32>
    %cst_198 = arith.constant 3.200000e+01 : f32
    %626 = vector.broadcast %cst_198 : f32 to vector<16x1xf32>
    %627 = arith.divf %625, %626 : vector<16x1xf32>
    %628 = vector.broadcast %620 : vector<16x1xf32> to vector<16x32xf32>
    %629 = arith.subf %616, %628 : vector<16x32xf32>
    %cst_199 = arith.constant 9.99999997E-7 : f32
    %630 = vector.broadcast %cst_199 : f32 to vector<16x1xf32>
    %631 = arith.addf %627, %630 : vector<16x1xf32>
    %632 = math.rsqrt %631 : vector<16x1xf32>
    %633 = vector.broadcast %632 : vector<16x1xf32> to vector<16x32xf32>
    %634 = arith.mulf %629, %633 : vector<16x32xf32>
    %635 = vector.broadcast %614 : vector<1x32xf32> to vector<16x32xf32>
    %636 = arith.mulf %634, %635 : vector<16x32xf32>
    %637 = vector.broadcast %615 : vector<1x32xf32> to vector<16x32xf32>
    %638 = arith.addf %636, %637 : vector<16x32xf32>
    %c0_200 = arith.constant 0 : index
    %c0_201 = arith.constant 0 : index
    %639 = vector.load %arg13[%c0_200, %c0_201] : memref<16x32xf32, #tpu.memory_space<vmem>>, vector<16x32xf32>
    tpu.vector_store %arg13[%c0_200, %c0_201], %638 {strides = array<i32>} : memref<16x32xf32, #tpu.memory_space<vmem>>, vector<16x32xf32>,
    return
  }
}

</mosaic_0001>

<bundles_post_ra>
// kernel: transformer_decoder_layer.1
= control target key start
LH: loop header
LB: loop body
LE: loop exit
PB: predicated region body
PF: predicated region fallthrough
CT: control target
= control target key end

     0   :  { %vm66_vm0 = vcmask 261120   ;;  %s6354_s0 = inlined_call_operand.vmem [shape: f32[16,32], index: 0, kind: input, shape index: {}]   ;;  %s6355_s1 = inlined_call_operand.vmem [shape: f32[16,32], index: 1, kind: input, shape index: {}]   ;;  %s6356_s2 = inlined_call_operand.vmem [shape: f32[16,16], index: 2, kind: input, shape index: {}, may-alias: {2,3}]   ;;  %s6357_s3 = inlined_call_operand.vmem [shape: f32[16,16], index: 3, kind: input, shape index: {}, may-alias: {2,3}]   ;;  %s6358_s4 = inlined_call_operand.vmem [shape: f32[32,96], index: 4, kind: input, shape index: {}]   ;;  %s6359_s5 = inlined_call_operand.vmem [shape: f32[32,32], index: 5, kind: input, shape index: {}]   ;;  %s6360_s6 = inlined_call_operand.vmem [shape: f32[32,96], index: 6, kind: input, shape index: {}]   ;;  %s6361_s7 = inlined_call_operand.vmem [shape: f32[32,32], index: 7, kind: input, shape index: {}]   ;;  %s6362_s8 = inlined_call_operand.vmem [shape: f32[2,96], index: 8, kind: input, shape index: {}]   ;;  %s6363_s9 = inlined_call_operand.vmem [shape: f32[32,256], index: 9, kind: input, shape index: {}]   ;;  %s6364_s10 = inlined_call_operand.vmem [shape: f32[1,256], index: 10, kind: input, shape index: {}]   ;;  %s6365_s11 = inlined_call_operand.vmem [shape: f32[256,32], index: 11, kind: input, shape index: {}]   ;;  %s6366_s12 = inlined_call_operand.vmem [shape: f32[9,32], index: 12, kind: input, shape index: {}]   ;;  %s6367_s13 = inlined_call_operand.hbm [shape: f32[16,32], index: 13, kind: output, shape index: {}]  }
   0x1   :  { %v58_v0 = vld [vmem:[%s6358_s4] sm:$0xff]  ;;  %v59_v1 = vld [vmem:[%s6358_s4 + $0x8] sm:$0xff]  ;;  %v60_v2 = vld [vmem:[%s6358_s4 + $0x10] sm:$0xff] }
   0x2   :  { %v4775_v3 = vpack.c.bf16 %v59_v1, %v58_v0  ;;  %v61_v4 = vld [vmem:[%s6358_s4 + $0x18] sm:$0xff]  ;;  %v5461_v5 = vld [vmem:[%s6354_s0] sm:$0xff] }
   0x3   :  { %v4779_v6 = vpack.c.bf16 %v61_v4, %v60_v2  ;;  %4504 = vmatprep.mubr.msk.f32.mxu1 %vm66_vm0, %v5461_v5 }
   0x4   :  { %18 = vsyncpa [#allocation3], 0  ;;  %4776 = vmatprep.subr.bf16.mxu1 %v4775_v3  ;;  %v5468_v7 = vld [vmem:[%s6354_s0 + $0x8] sm:$0xff]  ;;  %v56_v8 = vlaneseq  ;;  %v53_v11 = vld [vmem:[%s6362_s8] sm:$0x3]  ;;  %vm160_vm1 = vcmask 31744  }
   0x5   :  { %4778 = vmatpush3.bf16.msra.mxu1 %v4775_v3  ;;  %s5356_s0 = smov 96   ;;  %s5357_s21 = smov 124   ;;  %vm5504_vm2 = vmpackc.low %vm160_vm1, %vm160_vm1  ;;  %v5529_v39 = vld [vmem:[%s6356_s2 + $0x8] sm:$0xff]  ;;  %v5534_v40 = vld [vmem:[%s6356_s2] sm:$0xff]  ;;  %vm254_vm3 = vcmask 130048  }
   0x6   :  { %4780 = vmatprep.subr.bf16.mxu1 %v4779_v6  ;;  %v5473_v9 = vshrl.u32 %v56_v8, 7  ;;  %s5358_s22 = smov 92   ;;  %s5359_s23 = smov 88   ;;  %v249_v41 = vsub.f32 1.0, %v5529_v39  ;;  %v248_v42 = vsub.f32 1.0, %v5534_v40 }
   0x7   :  { %s5360_s24 = smov 120   ;;  %s5361_s2 = smov 84  }
   0x8   :  { %v5476_v10 = vsub.s32 0, %v5473_v9  ;;  %v5540_v48 = vmul.f32 1e+30, %v249_v41  ;;  %v5542_v49 = vmul.f32 1e+30, %v248_v42  ;;  %s5362_s29 = smov 80  }
   0x9   :  { %4782 = vmatpush3.bf16.msra.mxu1 %v4779_v6  ;;  %s5363_s30 = smov 116   ;;  %s5364_s14 = smov 64  }
   0xa   :  { %v65_v12 = vrot.slane %v53_v11, %v5476_v10  ;;  %s5365_s15 = smov 112   ;;  %s5366_s16 = smov 108  }
   0xb   :  { %s5367_s17 = smov 76   ;;  %s5368_s18 = smov 104  }
   0xc   :  { %4505 = vmatmul.mubr.msk.f32.vlgmr.msra.gmra.mrb[0].mxu1 %vm66_vm0, %v5468_v7  ;;  %s5369_s19 = smov 72   ;;  %s5370_s4 = smov 68  }
   0xd   :  { %s5371_s20 = smov 100  }
  0xdf   :  { %v4506_v13 = vpop.f32.mrb[0].mxu1 }
  0xe0   :  { %v145_v14 = vadd.f32 %v4506_v13, %v65_v12  ;;  %v139_v15 = vpop.f32.mrb[1].mxu1 }
  0xe1   :  { %v140_v16 = vadd.f32 %v139_v15, %v65_v12 }
  0xe2   :  { %v5492_v19 = vmul.f32 0.5, %v145_v14 }
  0xe3   :  { %v5482_v17 = vpack.i.bf16 %v145_v14, %v140_v16  ;;  %v5484_v18 = vmul.f32 0.5, %v140_v16 }
  0xe5   :  { %5096 = vrot.lane.b32.xlu0 %v5482_v17, %s5356_s0  ;;  %290 = vrot.lane.b32.xlu1 %v5484_v18, %s5357_s21 }
  0xe6   :  { %4511 = vmatprep.mubr.msk.f32.mxu1 %vm160_vm1, %v5484_v18 }
  0xe9   :  { %5101 = vrot.lane.b32.xlu0 %v5482_v17, %s5358_s22  ;;  %292 = vrot.lane.b32.xlu1 %v5492_v19, %s5357_s21  ;;  %s5373_s22 = smov [#allocation2]  }
  0xed   :  { %5106 = vrot.lane.b32.xlu0 %v5482_v17, %s5359_s23  ;;  %576 = vrot.lane.b32.xlu1 %v5484_v18, %s5360_s24  ;;  %s4148_s23 = sshll.u32 %s5373_s22, 4  ;;  %s4149_s23 = int_to_ptr.vmem [resolvable:$true] %s4148_s23 }
  0xee   :  { %s5332_s25 = scalar_lea.vmem %s4149_s23, 256  ;;  %p5337_p1 = scmp.lt.s32.totalorder %s4149_s23, %s4149_s23 }
  0xef   :  { %p5333_p0 = scmp.ne.s32.totalorder %s4149_s23, %s5332_s25  ;;  %p5338_p2 = scmp.lt.s32.totalorder %s5332_s25, %s5332_s25 }
  0xf1   :  { %578 = vrot.lane.b32.xlu0 %v5492_v19, %s5360_s24  ;;  %p5339_p3 = por %p5338_p2, %p5337_p1 }
  0xf3   :  { %p5340_p4 = pnand %p5339_p3, %p5333_p0 }
 0x157   :  { %v5097_v20 = vpop.permute.xlu0 %5096  ;;  %v291_v21 = vpop.permute.xlu1 %290 }
 0x158   :  { %v5099_v22 = vunpack.i.h.bf16 %v5097_v20  ;;  %v5098_v23 = vunpack.i.l.bf16 %v5097_v20 }
 0x15a   :  { %v4783_v25 = vpack.c.bf16 %v5099_v22, %v5098_v23 }
 0x15b   :  { %v5102_v26 = vpop.permute.xlu0 %5101  ;;  %v293_v27 = vpop.permute.xlu1 %292 }
 0x15c   :  { %v5104_v28 = vunpack.i.h.bf16 %v5102_v26  ;;  %v5103_v29 = vunpack.i.l.bf16 %v5102_v26  ;;  %4785 = vmatprep.subr.msk.bf16.mxu1 %vm5504_vm2, %v4783_v25 }
 0x15d   :  { %4788 = vmatpush3.bf16.xpose.msk.msra.mxu1 %vm5504_vm2, %v4783_v25 }
 0x15e   :  { %v4789_v30 = vpack.c.bf16 %v5104_v28, %v5103_v29 }
 0x15f   :  { %v5107_v31 = vpop.permute.xlu0 %5106  ;;  %v577_v32 = vpop.permute.xlu1 %576 }
 0x160   :  { %4791 = vmatprep.subr.msk.bf16.mxu1 %vm5504_vm2, %v4789_v30  ;;  %4539 = vmatprep.mubr.msk.f32.mxu0 %vm160_vm1, %v577_v32  ;;  %v5109_v33 = vunpack.i.h.bf16 %v5107_v31  ;;  %v5108_v34 = vunpack.i.l.bf16 %v5107_v31 }
 0x162   :  { %v4807_v35 = vpack.c.bf16 %v5109_v33, %v5108_v34 }
 0x163   :  { %v579_v36 = vpop.permute.xlu0 %578 }
 0x164   :  { %4512 = vmatmul.mubr.msk.f32.vlgmr.msra.gmra.mrb[2].mxu1 %vm160_vm1, %v5492_v19  ;;  %4809 = vmatprep.subr.msk.bf16.mxu0 %vm5504_vm2, %v4807_v35 }
 0x165   :  { %4794 = vmatpush3.bf16.xpose.msk.msra.mxu1 %vm5504_vm2, %v4789_v30  ;;  %4518 = vmatprep.mubr.msk.f32.mxu1 %vm160_vm1, %v291_v21 }
 0x166   :  { %4812 = vmatpush3.bf16.xpose.msk.msra.mxu0 %vm5504_vm2, %v4807_v35 }
 0x16c   :  { %4519 = vmatmul.mubr.msk.f32.vlgmr.msra.gmra.mrb[4].mxu1 %vm160_vm1, %v293_v27 }
 0x16d   :  { %4540 = vmatmul.mubr.msk.f32.vlgmr.msra.gmra.mrb[0].mxu0 %vm160_vm1, %v579_v36 }
 0x237   :  { %v4513_v37 = vpop.f32.mrb[2].mxu1 }
 0x238   :  { %v237_v38 = vpop.f32.mrb[3].mxu1  ;;  %v247_v50 = vmul.f32 %v4513_v37, %v5529_v39 }
 0x239   :  { %v246_v44 = vmul.f32 %v237_v38, %v5534_v40 }
 0x23a   :  { %v253_v60 = vsub.f32 %v247_v50, %v5540_v48 }
 0x23b   :  { %v252_v57 = vsub.f32 %v246_v44, %v5542_v49 }
 0x23c   :  { %v258_v63 = vsel %vm254_vm3, %v253_v60, -inf }
 0x23d   :  { %v255_v61 = vsel %vm254_vm3, %v252_v57, -inf }
 0x23f   :  { %v4520_v43 = vpop.f32.mrb[4].mxu1 }
 0x240   :  { %v382_v45 = vmul.f32 %v4520_v43, %v5529_v39  ;;  %v4541_v46 = vpop.f32.mrb[0].mxu0  ;;  %v372_v47 = vpop.f32.mrb[5].mxu1 }
 0x241   :  { %v381_v51 = vmul.f32 %v372_v47, %v5534_v40  ;;  %v658_v52 = vpop.f32.mrb[1].mxu0  ;;  %v668_v58 = vmul.f32 %v4541_v46, %v5529_v39  ;;  %v5606_v47 = vand.u32 127, %v56_v8 }
 0x242   :  { %v384_v53 = vsub.f32 %v382_v45, %v5540_v48  ;;  %v667_v55 = vmul.f32 %v658_v52, %v5534_v40 }
 0x243   :  { %v383_v54 = vsub.f32 %v381_v51, %v5542_v49  ;;  %v670_v0 = vsub.f32 %v668_v58, %v5540_v48  ;;  %vm407_vm4 = vcmp.ge.s32.totalorder %v5606_v47, 4  ;;  %vm408_vm5 = vcmp.lt.s32.totalorder %v5606_v47, 8 }
 0x244   :  { %v388_v56 = vsel %vm254_vm3, %v384_v53, -inf  ;;  %v669_v62 = vsub.f32 %v667_v55, %v5542_v49  ;;  %vm409_vm6 = vmand %vm407_vm4, %vm408_vm5  ;;  %vm278_vm7 = vcmp.lt.s32.totalorder %v5606_v47, 4  ;;  %vm693_vm10 = vcmp.ge.s32.totalorder %v5606_v47, 8 }
 0x245   :  { %389 = vmax.xlane.f32.xlu0 %v388_v56  ;;  %v385_v59 = vsel %vm254_vm3, %v383_v54, -inf  ;;  %v674_v2 = vsel %vm254_vm3, %v670_v0, -inf  ;;  %vm5611_vm8 = vmpackc.low %vm409_vm6, %vm409_vm6  ;;  %vm694_vm11 = vcmp.lt.s32.totalorder %v5606_v47, 12  ;;  %vm900_vm14 = vcmp.ge.s32.totalorder %v5606_v47, 12 }
 0x246   :  { %386 = vmax.xlane.f32.xlu1 %v385_v59  ;;  %v671_v1 = vsel %vm254_vm3, %v669_v62, -inf  ;;  %vm5619_vm9 = vmpackc.low %vm278_vm7, %vm278_vm7  ;;  %vm901_vm15 = vcmp.lt.s32.totalorder %v5606_v47, 16  ;;  %vm1107_vm6 = vcmp.ge.s32.totalorder %v5606_v47, 16  ;;  %vm1108_vm7 = vcmp.lt.s32.totalorder %v5606_v47, 20 }
 0x247   :  { %vm695_vm12 = vmand %vm693_vm10, %vm694_vm11 }
 0x248   :  { %vm5645_vm13 = vmpackc.low %vm695_vm12, %vm695_vm12  ;;  %vm1314_vm12 = vcmp.ge.s32.totalorder %v5606_v47, 20 }
 0x249   :  { %256 = vmax.xlane.f32.xlu0 %v255_v61  ;;  %vm902_vm4 = vmand %vm900_vm14, %vm901_vm15  ;;  %vm1315_vm14 = vcmp.lt.s32.totalorder %v5606_v47, 24 }
 0x24a   :  { %259 = vmax.xlane.f32.xlu1 %v258_v63  ;;  %vm5682_vm5 = vmpackc.low %vm902_vm4, %vm902_vm4 }
 0x24b   :  { %vm1109_vm10 = vmand %vm1107_vm6, %vm1108_vm7  ;;  %vm1521_vm6 = vcmp.ge.s32.totalorder %v5606_v47, 24  ;;  %vm1522_vm7 = vcmp.lt.s32.totalorder %v5606_v47, 28 }
 0x24c   :  { %vm5696_vm11 = vmpackc.low %vm1109_vm10, %vm1109_vm10 }
 0x24d   :  { %672 = vmax.xlane.f32.xlu0 %v671_v1  ;;  %vm1316_vm15 = vmand %vm1314_vm12, %vm1315_vm14  ;;  %vm1728_vm14 = vcmp.ge.s32.totalorder %v5606_v47, 28 }
 0x24e   :  { %675 = vmax.xlane.f32.xlu1 %v674_v2  ;;  %vm5754_vm4 = vmpackc.low %vm1316_vm15, %vm1316_vm15  ;;  %vm1729_vm15 = vcmp.lt.s32.totalorder %v5606_v47, 32 }
 0x24f   :  { %vm1523_vm10 = vmand %vm1521_vm6, %vm1522_vm7 }
 0x250   :  { %vm5768_vm12 = vmpackc.low %vm1523_vm10, %vm1523_vm10 }
 0x251   :  { %vm1730_vm6 = vmand %vm1728_vm14, %vm1729_vm15 }
 0x252   :  { %vm5792_vm7 = vmpackc.low %vm1730_vm6, %vm1730_vm6 }
 0x2d2   :  { %v390_v3 = vpop.xlane.xlu0 %389 }
 0x2d3   :  { %v392_v4 = vsub.f32 %v384_v53, %v390_v3  ;;  %v387_v6 = vpop.xlane.xlu1 %386 }
 0x2d4   :  { %v391_v16 = vsub.f32 %v383_v54, %v387_v6 }
 0x2d5   :  { %v395_v11 = vmul.f32 1.442695, %v392_v4 }
 0x2d6   :  { %v257_v12 = vpop.xlane.xlu0 %256  ;;  %v393_v27 = vmul.f32 1.442695, %v391_v16 }
 0x2d7   :  { %5190 = vpow2.f32 %v395_v11  ;;  %v261_v13 = vsub.f32 %v252_v57, %v257_v12  ;;  %v260_v14 = vpop.xlane.xlu1 %259 }
 0x2d8   :  { %v262_v15 = vsub.f32 %v253_v60, %v260_v14 }
 0x2d9   :  { %v263_v20 = vmul.f32 1.442695, %v261_v13 }
 0x2da   :  { %v265_v21 = vmul.f32 1.442695, %v262_v15  ;;  %v673_v22 = vpop.xlane.xlu0 %672 }
 0x2db   :  { %5192 = vpow2.f32 %v263_v20  ;;  %v677_v23 = vsub.f32 %v669_v62, %v673_v22  ;;  %v676_v25 = vpop.xlane.xlu1 %675 }
 0x2dc   :  { %5194 = vpow2.f32 %v265_v21  ;;  %v678_v26 = vsub.f32 %v670_v0, %v676_v25 }
 0x2dd   :  { %v679_v28 = vmul.f32 1.442695, %v677_v23 }
 0x2de   :  { %v681_v29 = vmul.f32 1.442695, %v678_v26 }
 0x2df   :  { %5196 = vpow2.f32 %v679_v28 }
 0x2e0   :  { %5198 = vpow2.f32 %v681_v29 }
 0x2e1   :  { %v5560_v30 = vpop.eup %5190  ;;  %5200 = vpow2.f32 %v393_v27 }
 0x2e2   :  { %v400_v31 = vsel %vm254_vm3, %v5560_v30, 0.0 }
 0x2e3   :  { %401 = vadd.xlane.f32.xlu1 %v400_v31 }
 0x2e5   :  { %v5564_v32 = vpop.eup %5192 }
 0x2e6   :  { %v5566_v33 = vpop.eup %5194  ;;  %v267_v34 = vsel %vm254_vm3, %v5564_v32, 0.0 }
 0x2e7   :  { %268 = vadd.xlane.f32.xlu0 %v267_v34  ;;  %v270_v35 = vsel %vm254_vm3, %v5566_v33, 0.0 }
 0x2e8   :  { %271 = vadd.xlane.f32.xlu1 %v270_v35 }
 0x2e9   :  { %v5572_v36 = vpop.eup %5196 }
 0x2ea   :  { %v5574_v37 = vpop.eup %5198  ;;  %v683_v38 = vsel %vm254_vm3, %v5572_v36, 0.0 }
 0x2eb   :  { %v5578_v41 = vpop.eup %5200  ;;  %684 = vadd.xlane.f32.xlu0 %v683_v38  ;;  %v686_v42 = vsel %vm254_vm3, %v5574_v37, 0.0 }
 0x2ec   :  { %687 = vadd.xlane.f32.xlu1 %v686_v42  ;;  %v397_v43 = vsel %vm254_vm3, %v5578_v41, 0.0 }
 0x2ef   :  { %398 = vadd.xlane.f32.xlu0 %v397_v43 }
 0x2fd   :  { %5116 = vrot.lane.b32.xlu1 %v5482_v17, %s5361_s2 }
 0x301   :  { %5121 = vrot.lane.b32.xlu1 %v5482_v17, %s5362_s29 }
 0x305   :  { %785 = vrot.lane.b32.xlu1 %v5492_v19, %s5363_s30  ;;  %5111 = vrot.lane.b32.xlu0 %v5482_v17, %s5364_s14 }
 0x309   :  { %990 = vrot.lane.b32.xlu1 %v5484_v18, %s5365_s15  ;;  %783 = vrot.lane.b32.xlu0 %v5484_v18, %s5363_s30 }
 0x30d   :  { %1197 = vrot.lane.b32.xlu1 %v5484_v18, %s5366_s16  ;;  %5126 = vrot.lane.b32.xlu0 %v5482_v17, %s5367_s17 }
 0x311   :  { %1199 = vrot.lane.b32.xlu1 %v5492_v19, %s5366_s16  ;;  %992 = vrot.lane.b32.xlu0 %v5492_v19, %s5365_s15 }
 0x315   :  { %1406 = vrot.lane.b32.xlu1 %v5492_v19, %s5368_s18  ;;  %5131 = vrot.lane.b32.xlu0 %v5482_v17, %s5369_s19 }
 0x319   :  { %1404 = vrot.lane.b32.xlu0 %v5484_v18, %s5368_s18 }
 0x370   :  { %v402_v44 = vpop.xlane.xlu1 %401 }
 0x371   :  { %5202 = vrcp.f32 %v402_v44 }
 0x374   :  { %v269_v45 = vpop.xlane.xlu0 %268 }
 0x375   :  { %v272_v46 = vpop.xlane.xlu1 %271  ;;  %5204 = vrcp.f32 %v269_v45 }
 0x378   :  { %v685_v50 = vpop.xlane.xlu0 %684 }
 0x379   :  { %v688_v51 = vpop.xlane.xlu1 %687 }
 0x37b   :  { %v5203_v0 = vpop.eup %5202 }
 0x37c   :  { %v399_v52 = vpop.xlane.xlu0 %398  ;;  %v406_v14 = vmul.f32 %v5203_v0, %v5560_v30 }
 0x37d   :  { %5206 = vrcp.f32 %v399_v52  ;;  %v5117_v53 = vpop.permute.xlu1 %5116 }
 0x37e   :  { %5208 = vrcp.f32 %v272_v46  ;;  %v5119_v26 = vunpack.i.h.bf16 %v5117_v53  ;;  %v5118_v27 = vunpack.i.l.bf16 %v5117_v53 }
 0x37f   :  { %5210 = vrcp.f32 %v685_v50  ;;  %v5205_v2 = vpop.eup %5204 }
 0x380   :  { %v5112_v54 = vpop.permute.xlu0 %5111  ;;  %v275_v15 = vmul.f32 %v5205_v2, %v5564_v32  ;;  %5212 = vrcp.f32 %v688_v51  ;;  %v4819_v34 = vpack.c.bf16 %v5119_v26, %v5118_v27 }
 0x381   :  { %v5114_v55 = vunpack.i.h.bf16 %v5112_v54  ;;  %v5113_v56 = vunpack.i.l.bf16 %v5112_v54  ;;  %v5122_v57 = vpop.permute.xlu1 %5121 }
 0x382   :  { %v5124_v8 = vunpack.i.h.bf16 %v5122_v57  ;;  %v5123_v58 = vunpack.i.l.bf16 %v5122_v57 }
 0x383   :  { %v5615_v60 = vpack.c.bf16 %v5114_v55, %v5113_v56 }
 0x384   :  { %v4831_v61 = vpack.c.bf16 %v5124_v8, %v5123_v58  ;;  %v5617_v62 = vpop.permute.xlu0 %783 }
 0x385   :  { %v5625_v1 = vpop.permute.xlu1 %785  ;;  %4797 = vmatprep.subr.msk.bf16.mxu1 %vm5611_vm8, %v5615_v60 }
 0x386   :  { %4800 = vmatpush3.bf16.msk.msra.mxu1 %vm5611_vm8, %v5615_v60  ;;  %4833 = vmatprep.subr.msk.bf16.mxu0 %vm5504_vm2, %v4831_v61 }
 0x387   :  { %v5207_v3 = vpop.eup %5206  ;;  %4803 = vmatprep.subr.msk.bf16.mxu1 %vm5619_vm9, %v5615_v60  ;;  %4836 = vmatpush3.bf16.xpose.msk.msra.mxu0 %vm5504_vm2, %v4831_v61 }
 0x388   :  { %v5127_v4 = vpop.permute.xlu0 %5126  ;;  %v405_v6 = vmul.f32 %v5207_v3, %v5578_v41  ;;  %v5209_v23 = vpop.eup %5208 }
 0x389   :  { %v5129_v11 = vunpack.i.h.bf16 %v5127_v4  ;;  %v5128_v12 = vunpack.i.l.bf16 %v5127_v4  ;;  %v991_v13 = vpop.permute.xlu1 %990  ;;  %v5211_v25 = vpop.eup %5210  ;;  %v276_v31 = vmul.f32 %v5209_v23, %v5566_v33 }
 0x38a   :  { %4525 = vmatprep.mubr.msk.f32.mxu1 %vm254_vm3, %v405_v6  ;;  %4567 = vmatprep.mubr.msk.f32.mxu0 %vm160_vm1, %v991_v13  ;;  %v691_v32 = vmul.f32 %v5211_v25, %v5572_v36  ;;  %v5213_v33 = vpop.eup %5212 }
 0x38b   :  { %v4843_v20 = vpack.c.bf16 %v5129_v11, %v5128_v12  ;;  %4526 = vmatmul.mubr.msk.f32.vlgmr.msra.gmra.mrb[6].mxu1 %vm254_vm3, %v406_v14  ;;  %v692_v41 = vmul.f32 %v5213_v33, %v5574_v37 }
 0x38c   :  { %4806 = vmatpush3.bf16.msk.msra.mxu1 %vm5619_vm9, %v5615_v60  ;;  %v993_v21 = vpop.permute.xlu0 %992  ;;  %4532 = vmatprep.mubr.msk.f32.mxu1 %vm254_vm3, %v275_v15 }
 0x38d   :  { %4815 = vmatprep.subr.msk.bf16.mxu1 %vm5645_vm13, %v5615_v60  ;;  %v1198_v22 = vpop.permute.xlu1 %1197  ;;  %4845 = vmatprep.subr.msk.bf16.mxu0 %vm5504_vm2, %v4843_v20 }
 0x38e   :  { %4568 = vmatmul.mubr.msk.f32.vlgmr.msra.gmra.mrb[2].mxu0 %vm160_vm1, %v993_v21 }
 0x38f   :  { %4848 = vmatpush3.bf16.xpose.msk.msra.mxu0 %vm5504_vm2, %v4843_v20  ;;  %4581 = vmatprep.mubr.msk.f32.mxu0 %vm160_vm1, %v1198_v22 }
 0x390   :  { %v5132_v28 = vpop.permute.xlu0 %5131 }
 0x391   :  { %v5134_v29 = vunpack.i.h.bf16 %v5132_v28  ;;  %v5133_v30 = vunpack.i.l.bf16 %v5132_v28  ;;  %v1200_v38 = vpop.permute.xlu1 %1199 }
 0x393   :  { %v4855_v35 = vpack.c.bf16 %v5134_v29, %v5133_v30  ;;  %4533 = vmatmul.mubr.msk.f32.vlgmr.msra.gmra.mrb[6].mxu1 %vm254_vm3, %v276_v31 }
 0x394   :  { %4818 = vmatpush3.bf16.msk.msra.mxu1 %vm5645_vm13, %v5615_v60  ;;  %4546 = vmatprep.mubr.msk.f32.mxu1 %vm254_vm3, %v691_v32  ;;  %v1405_v36 = vpop.permute.xlu0 %1404 }
 0x395   :  { %4821 = vmatprep.subr.msk.bf16.mxu1 %vm5504_vm2, %v4819_v34  ;;  %4857 = vmatprep.subr.msk.bf16.mxu0 %vm5504_vm2, %v4855_v35  ;;  %v1407_v43 = vpop.permute.xlu1 %1406 }
 0x396   :  { %4582 = vmatmul.mubr.msk.f32.vlgmr.msra.gmra.mrb[4].mxu0 %vm160_vm1, %v1200_v38 }
 0x397   :  { %4860 = vmatpush3.bf16.xpose.msk.msra.mxu0 %vm5504_vm2, %v4855_v35  ;;  %4595 = vmatprep.mubr.msk.f32.mxu0 %vm160_vm1, %v1405_v36 }
 0x39b   :  { %4547 = vmatmul.mubr.msk.f32.vlgmr.msra.gmra.mrb[6].mxu1 %vm254_vm3, %v692_v41 }
 0x39c   :  { %4553 = vmatprep.mubr.msk.f32.mxu1 %vm160_vm1, %v5617_v62 }
 0x39d   :  { %4824 = vmatpush3.bf16.xpose.msk.msra.mxu1 %vm5504_vm2, %v4819_v34 }
 0x39e   :  { %4827 = vmatprep.subr.msk.bf16.mxu1 %vm5682_vm5, %v5615_v60  ;;  %4596 = vmatmul.mubr.msk.f32.vlgmr.msra.gmra.mrb[6].mxu0 %vm160_vm1, %v1407_v43 }
 0x3a4   :  { %4554 = vmatmul.mubr.msk.f32.vlgmr.msra.gmra.mrb[8].mxu1 %vm160_vm1, %v5625_v1 }
 0x3a5   :  { %4830 = vmatpush3.bf16.msk.msra.mxu1 %vm5682_vm5, %v5615_v60 }
 0x3a6   :  { %4839 = vmatprep.subr.msk.bf16.mxu1 %vm5696_vm11, %v5615_v60 }
 0x461   :  { %v4569_v44 = vpop.f32.mrb[2].mxu0 }
 0x462   :  { %v1072_v45 = vpop.f32.mrb[3].mxu0  ;;  %v1082_v2 = vmul.f32 %v4569_v44, %v5529_v39 }
 0x463   :  { %v1081_v57 = vmul.f32 %v1072_v45, %v5534_v40 }
 0x464   :  { %v1084_v14 = vsub.f32 %v1082_v2, %v5540_v48 }
 0x465   :  { %v1083_v4 = vsub.f32 %v1081_v57, %v5542_v49 }
 0x466   :  { %v1088_v21 = vsel %vm254_vm3, %v1084_v14, -inf }
 0x467   :  { %v1085_v13 = vsel %vm254_vm3, %v1083_v4, -inf }
 0x469   :  { %v4583_v46 = vpop.f32.mrb[4].mxu0 }
 0x46a   :  { %v1279_v50 = vpop.f32.mrb[5].mxu0  ;;  %v1289_v12 = vmul.f32 %v4583_v46, %v5529_v39 }
 0x46b   :  { %v1288_v54 = vmul.f32 %v1279_v50, %v5534_v40 }
 0x46c   :  { %v1291_v22 = vsub.f32 %v1289_v12, %v5540_v48 }
 0x46d   :  { %v1290_v1 = vsub.f32 %v1288_v54, %v5542_v49 }
 0x46e   :  { %v1295_v23 = vsel %vm254_vm3, %v1291_v22, -inf }
 0x46f   :  { %v1292_v6 = vsel %vm254_vm3, %v1290_v1, -inf }
 0x471   :  { %v4597_v51 = vpop.f32.mrb[6].mxu0 }
 0x472   :  { %v1486_v52 = vpop.f32.mrb[7].mxu0  ;;  %v1496_v20 = vmul.f32 %v4597_v51, %v5529_v39 }
 0x473   :  { %v1495_v62 = vmul.f32 %v1486_v52, %v5534_v40 }
 0x474   :  { %v1498_v25 = vsub.f32 %v1496_v20, %v5540_v48 }
 0x475   :  { %v1497_v11 = vsub.f32 %v1495_v62, %v5542_v49 }
 0x476   :  { %v1502_v26 = vsel %vm254_vm3, %v1498_v25, -inf }
 0x477   :  { %v4555_v53 = vpop.f32.mrb[8].mxu1  ;;  %v1499_v15 = vsel %vm254_vm3, %v1497_v11, -inf }
 0x478   :  { %v875_v55 = vmul.f32 %v4555_v53, %v5529_v39  ;;  %v865_v56 = vpop.f32.mrb[9].mxu1 }
 0x479   :  { %v874_v8 = vmul.f32 %v865_v56, %v5534_v40 }
 0x47a   :  { %v877_v58 = vsub.f32 %v875_v55, %v5540_v48 }
 0x47b   :  { %v876_v61 = vsub.f32 %v874_v8, %v5542_v49 }
 0x47c   :  { %v881_v0 = vsel %vm254_vm3, %v877_v58, -inf }
 0x47d   :  { %882 = vmax.xlane.f32.xlu1 %v881_v0  ;;  %v878_v3 = vsel %vm254_vm3, %v876_v61, -inf }
 0x47e   :  { %879 = vmax.xlane.f32.xlu0 %v878_v3 }
 0x481   :  { %1293 = vmax.xlane.f32.xlu1 %v1292_v6 }
 0x482   :  { %1086 = vmax.xlane.f32.xlu0 %v1085_v13 }
 0x485   :  { %1500 = vmax.xlane.f32.xlu1 %v1499_v15 }
 0x486   :  { %1089 = vmax.xlane.f32.xlu0 %v1088_v21 }
 0x48a   :  { %1296 = vmax.xlane.f32.xlu0 %v1295_v23 }
 0x48e   :  { %1503 = vmax.xlane.f32.xlu0 %v1502_v26 }
 0x50a   :  { %v883_v27 = vpop.xlane.xlu1 %882 }
 0x50b   :  { %v885_v28 = vsub.f32 %v877_v58, %v883_v27  ;;  %v880_v29 = vpop.xlane.xlu0 %879 }
 0x50c   :  { %v884_v30 = vsub.f32 %v876_v61, %v880_v29 }
 0x50d   :  { %v888_v31 = vmul.f32 1.442695, %v885_v28 }
 0x50e   :  { %v886_v32 = vmul.f32 1.442695, %v884_v30  ;;  %v1294_v34 = vpop.xlane.xlu1 %1293 }
 0x50f   :  { %5214 = vpow2.f32 %v888_v31  ;;  %v1298_v35 = vsub.f32 %v1290_v1, %v1294_v34  ;;  %v1087_v38 = vpop.xlane.xlu0 %1086 }
 0x510   :  { %5216 = vpow2.f32 %v886_v32  ;;  %v1091_v33 = vsub.f32 %v1083_v4, %v1087_v38 }
 0x511   :  { %v1300_v36 = vmul.f32 1.442695, %v1298_v35 }
 0x512   :  { %v1093_v41 = vmul.f32 1.442695, %v1091_v33  ;;  %v1501_v43 = vpop.xlane.xlu1 %1500 }
 0x513   :  { %v1505_v44 = vsub.f32 %v1497_v11, %v1501_v43  ;;  %v1090_v45 = vpop.xlane.xlu0 %1089 }
 0x514   :  { %5218 = vpow2.f32 %v1093_v41  ;;  %v1092_v46 = vsub.f32 %v1084_v14, %v1090_v45 }
 0x515   :  { %5220 = vpow2.f32 %v1300_v36  ;;  %v1507_v50 = vmul.f32 1.442695, %v1505_v44 }
 0x516   :  { %v1095_v51 = vmul.f32 1.442695, %v1092_v46 }
 0x517   :  { %v1297_v52 = vpop.xlane.xlu0 %1296 }
 0x518   :  { %5222 = vpow2.f32 %v1095_v51  ;;  %v1299_v53 = vsub.f32 %v1291_v22, %v1297_v52 }
 0x519   :  { %v5215_v54 = vpop.eup %5214  ;;  %5224 = vpow2.f32 %v1507_v50 }
 0x51a   :  { %v5217_v55 = vpop.eup %5216  ;;  %v1302_v56 = vmul.f32 1.442695, %v1299_v53  ;;  %v893_v57 = vsel %vm254_vm3, %v5215_v54, 0.0 }
 0x51b   :  { %894 = vadd.xlane.f32.xlu0 %v893_v57  ;;  %v1504_v8 = vpop.xlane.xlu0 %1503  ;;  %v890_v58 = vsel %vm254_vm3, %v5217_v55, 0.0 }
 0x51c   :  { %5226 = vpow2.f32 %v1302_v56  ;;  %v1506_v61 = vsub.f32 %v1498_v25, %v1504_v8  ;;  %891 = vadd.xlane.f32.xlu1 %v890_v58 }
 0x51e   :  { %v5219_v62 = vpop.eup %5218  ;;  %v1509_v0 = vmul.f32 1.442695, %v1506_v61 }
 0x51f   :  { %v1097_v1 = vsel %vm254_vm3, %v5219_v62, 0.0  ;;  %v5221_v2 = vpop.eup %5220 }
 0x520   :  { %5228 = vpow2.f32 %v1509_v0  ;;  %1098 = vadd.xlane.f32.xlu1 %v1097_v1  ;;  %v1304_v4 = vsel %vm254_vm3, %v5221_v2, 0.0 }
 0x522   :  { %v5223_v3 = vpop.eup %5222 }
 0x523   :  { %v1100_v6 = vsel %vm254_vm3, %v5223_v3, 0.0  ;;  %v5737_v11 = vpop.eup %5224 }
 0x524   :  { %1305 = vadd.xlane.f32.xlu1 %v1304_v4  ;;  %1101 = vadd.xlane.f32.xlu0 %v1100_v6  ;;  %v1511_v13 = vsel %vm254_vm3, %v5737_v11, 0.0 }
 0x526   :  { %v5227_v12 = vpop.eup %5226 }
 0x527   :  { %v1307_v14 = vsel %vm254_vm3, %v5227_v12, 0.0 }
 0x528   :  { %1512 = vadd.xlane.f32.xlu1 %v1511_v13  ;;  %1308 = vadd.xlane.f32.xlu0 %v1307_v14  ;;  %v148_v14 = vld [vmem:[%s6359_s5] sm:$0xff] }
 0x52a   :  { %v5742_v15 = vpop.eup %5228 }
 0x52b   :  { %v1514_v20 = vsel %vm254_vm3, %v5742_v15, 0.0 }
 0x52c   :  { %1515 = vadd.xlane.f32.xlu0 %v1514_v20  ;;  %v150_v20 = vld [vmem:[%s6359_s5 + $0x10] sm:$0xff] }
 0x539   :  { %5136 = vrot.lane.b32.xlu1 %v5482_v17, %s5370_s4 }
 0x53d   :  { %1613 = vrot.lane.b32.xlu1 %v5492_v19, %s5371_s20 }
 0x542   :  { %1611 = vrot.lane.b32.xlu0 %v5484_v18, %s5371_s20 }
 0x5a8   :  { %v895_v21 = vpop.xlane.xlu0 %894 }
 0x5a9   :  { %5230 = vrcp.f32 %v895_v21  ;;  %v892_v22 = vpop.xlane.xlu1 %891 }
 0x5aa   :  { %5232 = vrcp.f32 %v892_v22  ;;  %v151_v22 = vld [vmem:[%s6359_s5 + $0x18] sm:$0xff] }
 0x5ad   :  { %v1099_v23 = vpop.xlane.xlu1 %1098 }
 0x5ae   :  { %5234 = vrcp.f32 %v1099_v23  ;;  %v4883_v23 = vpack.c.bf16 %v151_v22, %v150_v20 }
 0x5b1   :  { %v1306_v25 = vpop.xlane.xlu1 %1305  ;;  %v1102_v26 = vpop.xlane.xlu0 %1101 }
 0x5b2   :  { %5236 = vrcp.f32 %v1306_v25 }
 0x5b3   :  { %v5231_v17 = vpop.eup %5230  ;;  %5238 = vrcp.f32 %v1102_v26 }
 0x5b4   :  { %v5233_v27 = vpop.eup %5232  ;;  %v899_v28 = vmul.f32 %v5231_v17, %v5215_v54 }
 0x5b5   :  { %v898_v19 = vmul.f32 %v5233_v27, %v5217_v55  ;;  %v1309_v18 = vpop.xlane.xlu0 %1308  ;;  %v1513_v29 = vpop.xlane.xlu1 %1512 }
 0x5b6   :  { %5240 = vrcp.f32 %v1309_v18 }
 0x5b7   :  { %4560 = vmatprep.mubr.msk.f32.mxu1 %vm254_vm3, %v898_v19  ;;  %5242 = vrcp.f32 %v1513_v29 }
 0x5b8   :  { %v5235_v31 = vpop.eup %5234  ;;  %4561 = vmatmul.mubr.msk.f32.vlgmr.msra.gmra.mrb[6].mxu1 %vm254_vm3, %v899_v28 }
 0x5b9   :  { %4842 = vmatpush3.bf16.msk.msra.mxu1 %vm5696_vm11, %v5615_v60  ;;  %v1105_v32 = vmul.f32 %v5235_v31, %v5219_v62  ;;  %v1516_v33 = vpop.xlane.xlu0 %1515  ;;  %v5137_v43 = vpop.permute.xlu1 %5136  ;;  %v5833_v31 = vld [vmem:[%s6366_s12] sm:$0xff] }
 0x5ba   :  { %4851 = vmatprep.subr.msk.bf16.mxu1 %vm5754_vm4, %v5615_v60  ;;  %5244 = vrcp.f32 %v1516_v33  ;;  %v5139_v46 = vunpack.i.h.bf16 %v5137_v43  ;;  %v5138_v50 = vunpack.i.l.bf16 %v5137_v43 }
 0x5bb   :  { %4574 = vmatprep.mubr.msk.f32.mxu1 %vm254_vm3, %v1105_v32  ;;  %v1821_v32 = vrot.slane %v5833_v31, %v5476_v10 }
 0x5bc   :  { %v5237_v34 = vpop.eup %5236  ;;  %v4867_v53 = vpack.c.bf16 %v5139_v46, %v5138_v50 }
 0x5bd   :  { %v5239_v35 = vpop.eup %5238  ;;  %v1312_v36 = vmul.f32 %v5237_v34, %v5221_v2  ;;  %v1612_v56 = vpop.permute.xlu0 %1611 }
 0x5be   :  { %v1106_v38 = vmul.f32 %v5239_v35, %v5223_v3  ;;  %v1614_v47 = vpop.permute.xlu1 %1613 }
 0x5c0   :  { %4575 = vmatmul.mubr.msk.f32.vlgmr.msra.gmra.mrb[6].mxu1 %vm254_vm3, %v1106_v38  ;;  %v5241_v44 = vpop.eup %5240 }
 0x5c1   :  { %4854 = vmatpush3.bf16.msk.msra.mxu1 %vm5754_vm4, %v5615_v60  ;;  %4588 = vmatprep.mubr.msk.f32.mxu1 %vm254_vm3, %v1312_v36  ;;  %v5243_v45 = vpop.eup %5242  ;;  %v1313_v51 = vmul.f32 %v5241_v44, %v5227_v12 }
 0x5c2   :  { %4863 = vmatprep.subr.msk.bf16.mxu1 %vm5768_vm12, %v5615_v60  ;;  %v1519_v52 = vmul.f32 %v5243_v45, %v5737_v11 }
 0x5c4   :  { %v5245_v54 = vpop.eup %5244 }
 0x5c5   :  { %v1520_v55 = vmul.f32 %v5245_v54, %v5742_v15  ;;  %v149_v15 = vld [vmem:[%s6359_s5 + $0x8] sm:$0xff] }
 0x5c6   :  { %v4879_v21 = vpack.c.bf16 %v149_v15, %v148_v14 }
 0x5c8   :  { %4589 = vmatmul.mubr.msk.f32.vlgmr.msra.gmra.mrb[6].mxu1 %vm254_vm3, %v1313_v51  ;;  %4880 = vmatprep.subr.bf16.mxu0 %v4879_v21 }
 0x5c9   :  { %4866 = vmatpush3.bf16.msk.msra.mxu1 %vm5768_vm12, %v5615_v60  ;;  %4602 = vmatprep.mubr.msk.f32.mxu1 %vm254_vm3, %v1519_v52 }
 0x5ca   :  { %4869 = vmatprep.subr.msk.bf16.mxu1 %vm5504_vm2, %v4867_v53  ;;  %4882 = vmatpush3.bf16.msra.mxu0 %v4879_v21 }
 0x5cb   :  { %4884 = vmatprep.subr.bf16.mxu0 %v4883_v23 }
 0x5ce   :  { %4886 = vmatpush3.bf16.msra.mxu0 %v4883_v23 }
 0x5d0   :  { %4603 = vmatmul.mubr.msk.f32.vlgmr.msra.gmra.mrb[6].mxu1 %vm254_vm3, %v1520_v55 }
 0x5d1   :  { %4609 = vmatprep.mubr.msk.f32.mxu1 %vm160_vm1, %v1612_v56 }
 0x5d2   :  { %4872 = vmatpush3.bf16.xpose.msk.msra.mxu1 %vm5504_vm2, %v4867_v53 }
 0x5d3   :  { %4875 = vmatprep.subr.msk.bf16.mxu1 %vm5792_vm7, %v5615_v60 }
 0x5d9   :  { %4610 = vmatmul.mubr.msk.f32.vlgmr.msra.gmra.mrb[10].mxu1 %vm160_vm1, %v1614_v47 }
 0x5da   :  { %4878 = vmatpush3.bf16.msk.msra.mxu1 %vm5792_vm7, %v5615_v60 }
 0x6ac   :  { %v4611_v8 = vpop.f32.mrb[10].mxu1 }
 0x6ad   :  { %v1703_v58 = vmul.f32 %v4611_v8, %v5529_v39  ;;  %v1693_v61 = vpop.f32.mrb[11].mxu1  ;;  %v1947_v8 = vld [vmem:[%s6360_s6 + $0x18] sm:$0xff] }
 0x6ae   :  { %v1702_v62 = vmul.f32 %v1693_v61, %v5534_v40  ;;  %v1944_v61 = vld [vmem:[%s6360_s6] sm:$0xff] }
 0x6af   :  { %v1705_v0 = vsub.f32 %v1703_v58, %v5540_v48 }
 0x6b0   :  { %v1704_v1 = vsub.f32 %v1702_v62, %v5542_v49  ;;  %v1945_v62 = vld [vmem:[%s6360_s6 + $0x8] sm:$0xff] }
 0x6b1   :  { %v1709_v2 = vsel %vm254_vm3, %v1705_v0, -inf }
 0x6b2   :  { %1710 = vmax.xlane.f32.xlu0 %v1709_v2  ;;  %v1706_v3 = vsel %vm254_vm3, %v1704_v1, -inf  ;;  %v47_v2 = vld [vmem:[%s6355_s1] sm:$0xff] }
 0x6b3   :  { %1707 = vmax.xlane.f32.xlu1 %v1706_v3 }
 0x73f   :  { %v1711_v4 = vpop.xlane.xlu0 %1710 }
 0x740   :  { %v1713_v6 = vsub.f32 %v1705_v0, %v1711_v4  ;;  %v1708_v11 = vpop.xlane.xlu1 %1707  ;;  %v5140_v0 = vpack.i.bf16 %v1945_v62, %v1944_v61  ;;  %v5862_v4 = vsub.s32 1, %v5473_v9 }
 0x741   :  { %v1712_v60 = vsub.f32 %v1704_v1, %v1708_v11  ;;  %v4887_v1 = vpack.c.bf16 %v1945_v62, %v1944_v61 }
 0x742   :  { %v1716_v12 = vmul.f32 1.442695, %v1713_v6  ;;  %v5330_v6 = vld [vmem:[%s6362_s8] sm:$0x3] }
 0x743   :  { %v1714_v13 = vmul.f32 1.442695, %v1712_v60  ;;  %4888 = vmatprep.subr.bf16.mxu0 %v4887_v1  ;;  %v1951_v11 = vrot.slane %v5330_v6, %v5862_v4 }
 0x744   :  { %5246 = vpow2.f32 %v1716_v12 }
 0x745   :  { %5248 = vpow2.f32 %v1714_v13 }
 0x74e   :  { %v5247_v39 = vpop.eup %5246 }
 0x74f   :  { %v5249_v40 = vpop.eup %5248  ;;  %v1721_v48 = vsel %vm254_vm3, %v5247_v39, 0.0 }
 0x750   :  { %1722 = vadd.xlane.f32.xlu1 %v1721_v48  ;;  %v1718_v49 = vsel %vm254_vm3, %v5249_v40, 0.0 }
 0x751   :  { %1719 = vadd.xlane.f32.xlu0 %v1718_v49 }
 0x7dd   :  { %v1723_v25 = vpop.xlane.xlu1 %1722 }
 0x7de   :  { %5250 = vrcp.f32 %v1723_v25  ;;  %v1720_v26 = vpop.xlane.xlu0 %1719 }
 0x7df   :  { %5252 = vrcp.f32 %v1720_v26  ;;  %v1934_v26 = vsub.s32 3, %v5473_v9 }
 0x7e8   :  { %v5251_v17 = vpop.eup %5250 }
 0x7e9   :  { %v5253_v27 = vpop.eup %5252  ;;  %v1727_v28 = vmul.f32 %v5251_v17, %v5247_v39  ;;  %v1940_v17 = vsub.s32 4, %v5473_v9 }
 0x7ea   :  { %v1726_v19 = vmul.f32 %v5253_v27, %v5249_v40  ;;  %v1935_v27 = vrot.slane %v5833_v31, %v1934_v26 }
 0x7ec   :  { %4616 = vmatprep.mubr.msk.f32.mxu1 %vm254_vm3, %v1726_v19 }
 0x7ed   :  { %4617 = vmatmul.mubr.msk.f32.vlgmr.msra.gmra.mrb[6].mxu1 %vm254_vm3, %v1727_v28  ;;  %v48_v28 = vld [vmem:[%s6355_s1 + $0x8] sm:$0xff] }
 0x7ee   :  { %4649 = vmatprep.mubr.msk.f32.mxu1 %vm66_vm0, %v47_v2 }
 0x8c0   :  { %v4618_v18 = vpop.f32.mrb[6].mxu1 }
 0x8c1   :  { %v1807_v29 = vpop.f32.mrb[7].mxu1 }
 0x8c2   :  { %4627 = vmatprep.mubr.msk.f32.mxu0 %vm66_vm0, %v1807_v29 }
 0x8c3   :  { %4628 = vmatmul.mubr.msk.f32.vlgmr.msra.gmra.mrb[8].mxu0 %vm66_vm0, %v4618_v18 }
 0x8c4   :  { %4890 = vmatpush3.bf16.msra.mxu0 %v4887_v1 }
 0x996   :  { %v4629_v34 = vpop.f32.mrb[8].mxu0 }
 0x997   :  { %v1900_v35 = vadd.f32 %v4629_v34, %v1821_v32  ;;  %v1894_v38 = vpop.f32.mrb[9].mxu0  ;;  %v1941_v34 = vrot.slane %v5833_v31, %v1940_v17 }
 0x998   :  { %v1895_v33 = vadd.f32 %v1894_v38, %v1821_v32 }
 0x999   :  { %v1904_v36 = vadd.f32 %v1900_v35, %v5468_v7 }
 0x99a   :  { %v1903_v43 = vadd.f32 %v1895_v33, %v5461_v5  ;;  %v1946_v5 = vld [vmem:[%s6360_s6 + $0x10] sm:$0xff] }
 0x99b   :  { %v1908_v44 = vsel %vm66_vm0, %v1904_v36, 0.0  ;;  %v5145_v58 = vpack.i.bf16 %v1947_v8, %v1946_v5  ;;  %v4891_v3 = vpack.c.bf16 %v1947_v8, %v1946_v5 }
 0x99c   :  { %1909 = vadd.xlane.f32.xlu1 %v1908_v44  ;;  %v1905_v45 = vsel %vm66_vm0, %v1903_v43, 0.0 }
 0x99d   :  { %1906 = vadd.xlane.f32.xlu0 %v1905_v45  ;;  %4892 = vmatprep.subr.bf16.mxu0 %v4891_v3 }
 0x99e   :  { %4894 = vmatpush3.bf16.msra.mxu0 %v4891_v3 }
 0xa29   :  { %v1910_v46 = vpop.xlane.xlu1 %1909 }
 0xa2a   :  { %v1913_v50 = vmul.f32 0.03125, %v1910_v46  ;;  %v1907_v51 = vpop.xlane.xlu0 %1906 }
 0xa2b   :  { %v1912_v52 = vmul.f32 0.03125, %v1907_v51 }
 0xa2c   :  { %v1915_v53 = vsub.f32 %v1904_v36, %v1913_v50 }
 0xa2d   :  { %v1914_v54 = vsub.f32 %v1903_v43, %v1912_v52 }
 0xa2e   :  { %v1917_v55 = vmul.f32 %v1915_v53, %v1915_v53 }
 0xa2f   :  { %v1916_v56 = vmul.f32 %v1914_v54, %v1914_v54 }
 0xa30   :  { %v1921_v47 = vsel %vm66_vm0, %v1917_v55, 0.0 }
 0xa31   :  { %1922 = vadd.xlane.f32.xlu1 %v1921_v47  ;;  %v1918_v7 = vsel %vm66_vm0, %v1916_v56, 0.0 }
 0xa32   :  { %1919 = vadd.xlane.f32.xlu0 %v1918_v7 }
 0xa42   :  { %5146 = vrot.lane.b32.xlu1 %v5145_v58, %s5356_s0 }
 0xa46   :  { %2050 = vrot.lane.b32.xlu1 %v1951_v11, %s5356_s0 }
 0xa48   :  { %5141 = vrot.lane.b32.xlu0 %v5140_v0, %s5356_s0 }
 0xabe   :  { %v1923_v60 = vpop.xlane.xlu1 %1922 }
 0xabf   :  { %v1925_v12 = vmul.f32 0.03125, %v1923_v60  ;;  %v1920_v13 = vpop.xlane.xlu0 %1919 }
 0xac0   :  { %v1924_v39 = vmul.f32 0.03125, %v1920_v13 }
 0xac1   :  { %v1927_v40 = vadd.f32 1e-06, %v1925_v12 }
 0xac2   :  { %v1926_v48 = vadd.f32 1e-06, %v1924_v39  ;;  %v5147_v49 = vpop.permute.xlu1 %5146 }
 0xac3   :  { %5254 = vrsqrt.f32 %v1927_v40  ;;  %v5142_v14 = vpop.permute.xlu0 %5141  ;;  %v5149_v15 = vunpack.i.h.bf16 %v5147_v49  ;;  %v5148_v20 = vunpack.i.l.bf16 %v5147_v49 }
 0xac4   :  { %5256 = vrsqrt.f32 %v1926_v48  ;;  %v5144_v21 = vunpack.i.h.bf16 %v5142_v14  ;;  %v5143_v22 = vunpack.i.l.bf16 %v5142_v14 }
 0xac5   :  { %v4899_v25 = vpack.c.bf16 %v5149_v15, %v5148_v20  ;;  %v5938_v20 = vld [vmem:[%s6357_s3 + $0x8] sm:$0xff] }
 0xac6   :  { %v4895_v23 = vpack.c.bf16 %v5144_v21, %v5143_v22  ;;  %v2051_v43 = vpop.permute.xlu1 %2050  ;;  %v5943_v21 = vld [vmem:[%s6357_s3] sm:$0xff]  ;;  %v2230_v22 = vsub.f32 1.0, %v5938_v20 }
 0xac8   :  { %4896 = vmatprep.subr.bf16.mxu1 %v4895_v23 }
 0xac9   :  { %4898 = vmatpush3.bf16.msra.mxu1 %v4895_v23  ;;  %v2229_v23 = vsub.f32 1.0, %v5943_v21 }
 0xaca   :  { %4900 = vmatprep.subr.bf16.mxu1 %v4899_v25 }
 0xacd   :  { %v5255_v19 = vpop.eup %5254  ;;  %4902 = vmatpush3.bf16.msra.mxu1 %v4899_v25 }
 0xace   :  { %v5257_v18 = vpop.eup %5256  ;;  %v1931_v29 = vmul.f32 %v5255_v19, %v1915_v53  ;;  %v5949_v19 = vmul.f32 1e+30, %v2230_v22 }
 0xacf   :  { %v1930_v32 = vmul.f32 %v5257_v18, %v1914_v54 }
 0xad0   :  { %4650 = vmatmul.mubr.msk.f32.vlgmr.msra.gmra.mrb[12].mxu1 %vm66_vm0, %v48_v28  ;;  %v1937_v35 = vmul.f32 %v1935_v27, %v1931_v29  ;;  %v5951_v28 = vmul.f32 1e+30, %v2229_v23 }
 0xad1   :  { %v1936_v38 = vmul.f32 %v1935_v27, %v1930_v32 }
 0xad2   :  { %v5879_v36 = vadd.f32 %v1941_v34, %v1937_v35 }
 0xad3   :  { %v5877_v33 = vadd.f32 %v1941_v34, %v1936_v38 }
 0xad5   :  { %4638 = vmatprep.mubr.msk.f32.mxu0 %vm66_vm0, %v5877_v33 }
 0xad6   :  { %4639 = vmatmul.mubr.msk.f32.vlgmr.msra.gmra.mrb[10].mxu0 %vm66_vm0, %v5879_v36 }
 0xba3   :  { %v4651_v44 = vpop.f32.mrb[12].mxu1 }
 0xba4   :  { %v2131_v45 = vadd.f32 %v4651_v44, %v2051_v43  ;;  %v2125_v46 = vpop.f32.mrb[13].mxu1 }
 0xba5   :  { %v2126_v50 = vadd.f32 %v2125_v46, %v2051_v43 }
 0xba7   :  { %v5885_v51 = vpack.i.bf16 %v2131_v45, %v2126_v50  ;;  %v4903_v52 = vpack.c.bf16 %v2131_v45, %v2126_v50 }
 0xba9   :  { %v4640_v53 = vpop.f32.mrb[10].mxu0  ;;  %5151 = vrot.lane.b32.xlu0 %v5885_v51, %s5357_s21  ;;  %4905 = vmatprep.subr.msk.bf16.mxu0 %vm5504_vm2, %v4903_v52 }
 0xbaa   :  { %v2030_v54 = vadd.f32 %v4640_v53, %v1951_v11  ;;  %v2024_v55 = vpop.f32.mrb[11].mxu0  ;;  %4908 = vmatpush3.bf16.xpose.msk.msra.mxu0 %vm5504_vm2, %v4903_v52 }
 0xbab   :  { %v2025_v56 = vadd.f32 %v2024_v55, %v1951_v11 }
 0xbac   :  { %v5893_v47 = vmul.f32 0.5, %v2030_v54 }
 0xbad   :  { %v5895_v7 = vmul.f32 0.5, %v2025_v56 }
 0xbae   :  { %2267 = vrot.lane.b32.xlu0 %v5893_v47, %s5357_s21 }
 0xbaf   :  { %2265 = vrot.lane.b32.xlu1 %v5895_v7, %s5357_s21  ;;  %4656 = vmatprep.mubr.msk.f32.mxu0 %vm160_vm1, %v5895_v7 }
 0xbb1   :  { %4657 = vmatmul.mubr.msk.f32.vlgmr.msra.gmra.mrb[12].mxu0 %vm160_vm1, %v5893_v47 }
 0xbb2   :  { %2546 = vrot.lane.b32.xlu0 %v5895_v7, %s5360_s24 }
 0xbb3   :  { %5156 = vrot.lane.b32.xlu1 %v5885_v51, %s5360_s24 }
 0xbb6   :  { %2548 = vrot.lane.b32.xlu0 %v5893_v47, %s5360_s24 }
 0xbb7   :  { %5161 = vrot.lane.b32.xlu1 %v5885_v51, %s5363_s30 }
 0xbba   :  { %2750 = vrot.lane.b32.xlu0 %v5893_v47, %s5363_s30 }
 0xbbb   :  { %2748 = vrot.lane.b32.xlu1 %v5895_v7, %s5363_s30 }
 0xc1b   :  { %v5152_v5 = vpop.permute.xlu0 %5151 }
 0xc1c   :  { %v5154_v8 = vunpack.i.h.bf16 %v5152_v5  ;;  %v5153_v58 = vunpack.i.l.bf16 %v5152_v5 }
 0xc1e   :  { %v4909_v61 = vpack.c.bf16 %v5154_v8, %v5153_v58 }
 0xc20   :  { %4911 = vmatprep.subr.msk.bf16.mxu1 %vm5504_vm2, %v4909_v61  ;;  %v2268_v0 = vpop.permute.xlu0 %2267 }
 0xc21   :  { %v2266_v62 = vpop.permute.xlu1 %2265  ;;  %4914 = vmatpush3.bf16.xpose.msk.msra.mxu1 %vm5504_vm2, %v4909_v61 }
 0xc22   :  { %4663 = vmatprep.mubr.msk.f32.mxu1 %vm160_vm1, %v2266_v62 }
 0xc24   :  { %v2547_v6 = vpop.permute.xlu0 %2546 }
 0xc25   :  { %v5157_v1 = vpop.permute.xlu1 %5156 }
 0xc26   :  { %v5159_v2 = vunpack.i.h.bf16 %v5157_v1  ;;  %v5158_v3 = vunpack.i.l.bf16 %v5157_v1 }
 0xc28   :  { %v4927_v11 = vpack.c.bf16 %v5159_v2, %v5158_v3  ;;  %4664 = vmatmul.mubr.msk.f32.vlgmr.msra.gmra.mrb[14].mxu1 %vm160_vm1, %v2268_v0  ;;  %v2549_v40 = vpop.permute.xlu0 %2548 }
 0xc29   :  { %v5162_v60 = vpop.permute.xlu1 %5161  ;;  %4684 = vmatprep.mubr.msk.f32.mxu1 %vm160_vm1, %v2547_v6 }
 0xc2a   :  { %v5164_v12 = vunpack.i.h.bf16 %v5162_v60  ;;  %v5163_v13 = vunpack.i.l.bf16 %v5162_v60  ;;  %4929 = vmatprep.subr.msk.bf16.mxu1 %vm5504_vm2, %v4927_v11 }
 0xc2b   :  { %4932 = vmatpush3.bf16.xpose.msk.msra.mxu1 %vm5504_vm2, %v4927_v11 }
 0xc2c   :  { %v4939_v39 = vpack.c.bf16 %v5164_v12, %v5163_v13  ;;  %v2751_v49 = vpop.permute.xlu0 %2750 }
 0xc2d   :  { %v2749_v48 = vpop.permute.xlu1 %2748 }
 0xc2e   :  { %4941 = vmatprep.subr.msk.bf16.mxu1 %vm5504_vm2, %v4939_v39 }
 0xc32   :  { %4685 = vmatmul.mubr.msk.f32.vlgmr.msra.gmra.mrb[16].mxu1 %vm160_vm1, %v2549_v40 }
 0xc33   :  { %4944 = vmatpush3.bf16.xpose.msk.msra.mxu1 %vm5504_vm2, %v4939_v39  ;;  %4698 = vmatprep.mubr.msk.f32.mxu1 %vm160_vm1, %v2749_v48 }
 0xc3a   :  { %4699 = vmatmul.mubr.msk.f32.vlgmr.msra.gmra.mrb[18].mxu1 %vm160_vm1, %v2751_v49 }
 0xc84   :  { %v4658_v14 = vpop.f32.mrb[12].mxu0 }
 0xc85   :  { %v2218_v15 = vpop.f32.mrb[13].mxu0  ;;  %v2228_v18 = vmul.f32 %v4658_v14, %v5938_v20 }
 0xc86   :  { %v2227_v26 = vmul.f32 %v2218_v15, %v5943_v21 }
 0xc87   :  { %v2234_v44 = vsub.f32 %v2228_v18, %v5949_v19 }
 0xc88   :  { %v2233_v38 = vsub.f32 %v2227_v26, %v5951_v28 }
 0xc89   :  { %v2238_v50 = vsel %vm254_vm3, %v2234_v44, -inf }
 0xc8a   :  { %v2235_v45 = vsel %vm254_vm3, %v2233_v38, -inf }
 0xcfb   :  { %v4665_v25 = vpop.f32.mrb[14].mxu1 }
 0xcfc   :  { %v2357_v17 = vmul.f32 %v4665_v25, %v5938_v20  ;;  %v2347_v27 = vpop.f32.mrb[15].mxu1 }
 0xcfd   :  { %v2356_v29 = vmul.f32 %v2347_v27, %v5943_v21 }
 0xcfe   :  { %v2359_v32 = vsub.f32 %v2357_v17, %v5949_v19 }
 0xcff   :  { %v2358_v34 = vsub.f32 %v2356_v29, %v5951_v28 }
 0xd00   :  { %v2363_v35 = vsel %vm254_vm3, %v2359_v32, -inf }
 0xd01   :  { %2364 = vmax.xlane.f32.xlu0 %v2363_v35  ;;  %v2360_v43 = vsel %vm254_vm3, %v2358_v34, -inf }
 0xd02   :  { %2361 = vmax.xlane.f32.xlu1 %v2360_v43 }
 0xd05   :  { %v4686_v46 = vpop.f32.mrb[16].mxu1  ;;  %2236 = vmax.xlane.f32.xlu0 %v2235_v45 }
 0xd06   :  { %v2638_v52 = vmul.f32 %v4686_v46, %v5938_v20  ;;  %v2628_v53 = vpop.f32.mrb[17].mxu1  ;;  %2239 = vmax.xlane.f32.xlu1 %v2238_v50 }
 0xd07   :  { %v2637_v54 = vmul.f32 %v2628_v53, %v5943_v21 }
 0xd08   :  { %v2640_v55 = vsub.f32 %v2638_v52, %v5949_v19 }
 0xd09   :  { %v2639_v56 = vsub.f32 %v2637_v54, %v5951_v28 }
 0xd0a   :  { %v2644_v5 = vsel %vm254_vm3, %v2640_v55, -inf }
 0xd0b   :  { %2645 = vmax.xlane.f32.xlu1 %v2644_v5  ;;  %v2641_v8 = vsel %vm254_vm3, %v2639_v56, -inf }
 0xd0c   :  { %2642 = vmax.xlane.f32.xlu0 %v2641_v8 }
 0xd0d   :  { %v4700_v58 = vpop.f32.mrb[18].mxu1 }
 0xd0e   :  { %v2840_v61 = vmul.f32 %v4700_v58, %v5938_v20  ;;  %v2830_v62 = vpop.f32.mrb[19].mxu1 }
 0xd0f   :  { %v2839_v0 = vmul.f32 %v2830_v62, %v5943_v21 }
 0xd10   :  { %v2842_v1 = vsub.f32 %v2840_v61, %v5949_v19 }
 0xd11   :  { %v2841_v2 = vsub.f32 %v2839_v0, %v5951_v28 }
 0xd12   :  { %v2846_v3 = vsel %vm254_vm3, %v2842_v1, -inf }
 0xd13   :  { %2847 = vmax.xlane.f32.xlu1 %v2846_v3  ;;  %v2843_v6 = vsel %vm254_vm3, %v2841_v2, -inf }
 0xd14   :  { %2844 = vmax.xlane.f32.xlu0 %v2843_v6 }
 0xd8e   :  { %v2365_v11 = vpop.xlane.xlu0 %2364 }
 0xd8f   :  { %v2362_v60 = vpop.xlane.xlu1 %2361  ;;  %v2367_v13 = vsub.f32 %v2359_v32, %v2365_v11 }
 0xd90   :  { %v2366_v12 = vsub.f32 %v2358_v34, %v2362_v60 }
 0xd91   :  { %v2370_v22 = vmul.f32 1.442695, %v2367_v13 }
 0xd92   :  { %v2237_v39 = vpop.xlane.xlu0 %2236  ;;  %v2368_v14 = vmul.f32 1.442695, %v2366_v12 }
 0xd93   :  { %v2241_v40 = vsub.f32 %v2233_v38, %v2237_v39  ;;  %v2240_v48 = vpop.xlane.xlu1 %2239 }
 0xd94   :  { %v2242_v49 = vsub.f32 %v2234_v44, %v2240_v48 }
 0xd95   :  { %v2243_v15 = vmul.f32 1.442695, %v2241_v40 }
 0xd96   :  { %v2245_v23 = vmul.f32 1.442695, %v2242_v49 }
 0xd97   :  { %5258 = vpow2.f32 %v2243_v15 }
 0xd98   :  { %5260 = vpow2.f32 %v2245_v23  ;;  %v2646_v25 = vpop.xlane.xlu1 %2645 }
 0xd99   :  { %5262 = vpow2.f32 %v2368_v14  ;;  %v2648_v26 = vsub.f32 %v2640_v55, %v2646_v25  ;;  %v2643_v17 = vpop.xlane.xlu0 %2642 }
 0xd9a   :  { %5264 = vpow2.f32 %v2370_v22  ;;  %v2647_v27 = vsub.f32 %v2639_v56, %v2643_v17 }
 0xd9b   :  { %v2651_v18 = vmul.f32 1.442695, %v2648_v26 }
 0xd9c   :  { %v2649_v29 = vmul.f32 1.442695, %v2647_v27 }
 0xd9d   :  { %5266 = vpow2.f32 %v2651_v18 }
 0xd9e   :  { %5268 = vpow2.f32 %v2649_v29 }
 0xda0   :  { %v2848_v55 = vpop.xlane.xlu1 %2847 }
 0xda1   :  { %v5975_v32 = vpop.eup %5258  ;;  %v2850_v56 = vsub.f32 %v2842_v1, %v2848_v55  ;;  %v2845_v5 = vpop.xlane.xlu0 %2844 }
 0xda2   :  { %v5977_v34 = vpop.eup %5260  ;;  %v2247_v35 = vsel %vm254_vm3, %v5975_v32, 0.0  ;;  %v2849_v58 = vsub.f32 %v2841_v2, %v2845_v5 }
 0xda3   :  { %v5263_v38 = vpop.eup %5262  ;;  %2248 = vadd.xlane.f32.xlu0 %v2247_v35  ;;  %v2250_v43 = vsel %vm254_vm3, %v5977_v34, 0.0  ;;  %v2853_v8 = vmul.f32 1.442695, %v2850_v56 }
 0xda4   :  { %v5983_v44 = vpop.eup %5264  ;;  %2251 = vadd.xlane.f32.xlu1 %v2250_v43  ;;  %v2372_v45 = vsel %vm254_vm3, %v5263_v38, 0.0  ;;  %v2851_v61 = vmul.f32 1.442695, %v2849_v58 }
 0xda5   :  { %v2375_v50 = vsel %vm254_vm3, %v5983_v44, 0.0  ;;  %5270 = vpow2.f32 %v2853_v8 }
 0xda6   :  { %5272 = vpow2.f32 %v2851_v61 }
 0xda7   :  { %v5986_v46 = vpop.eup %5266  ;;  %2373 = vadd.xlane.f32.xlu0 %v2372_v45 }
 0xda8   :  { %v5990_v52 = vpop.eup %5268  ;;  %2376 = vadd.xlane.f32.xlu1 %v2375_v50  ;;  %v2656_v54 = vsel %vm254_vm3, %v5986_v46, 0.0 }
 0xda9   :  { %v2653_v53 = vsel %vm254_vm3, %v5990_v52, 0.0 }
 0xdab   :  { %2654 = vadd.xlane.f32.xlu0 %v2653_v53 }
 0xdac   :  { %2657 = vadd.xlane.f32.xlu1 %v2656_v54 }
 0xdaf   :  { %v6012_v62 = vpop.eup %5270 }
 0xdb0   :  { %v2858_v0 = vsel %vm254_vm3, %v6012_v62, 0.0  ;;  %v6016_v1 = vpop.eup %5272 }
 0xdb1   :  { %v2855_v2 = vsel %vm254_vm3, %v6016_v1, 0.0 }
 0xdbd   :  { %5171 = vrot.lane.b32.xlu1 %v5885_v51, %s5365_s15 }
 0xdc1   :  { %5166 = vrot.lane.b32.xlu0 %v5885_v51, %s5356_s0 }
 0xdc5   :  { %5176 = vrot.lane.b32.xlu0 %v5885_v51, %s5366_s16 }
 0xdc9   :  { %2950 = vrot.lane.b32.xlu0 %v5895_v7, %s5365_s15 }
 0xdcd   :  { %5181 = vrot.lane.b32.xlu0 %v5885_v51, %s5368_s18 }
 0xdd1   :  { %3154 = vrot.lane.b32.xlu0 %v5893_v47, %s5366_s16 }
 0xdd5   :  { %3354 = vrot.lane.b32.xlu0 %v5895_v7, %s5368_s18 }
 0xdd9   :  { %3556 = vrot.lane.b32.xlu0 %v5895_v7, %s5371_s20 }
 0xde1   :  { %2859 = vadd.xlane.f32.xlu1 %v2858_v0 }
 0xde5   :  { %2856 = vadd.xlane.f32.xlu1 %v2855_v2 }
 0xdf6   :  { %2952 = vrot.lane.b32.xlu1 %v5893_v47, %s5365_s15 }
 0xdfa   :  { %3152 = vrot.lane.b32.xlu1 %v5895_v7, %s5366_s16 }
 0xdfe   :  { %5186 = vrot.lane.b32.xlu1 %v5885_v51, %s5371_s20 }
 0xe02   :  { %3356 = vrot.lane.b32.xlu1 %v5893_v47, %s5368_s18 }
 0xe06   :  { %3558 = vrot.lane.b32.xlu1 %v5893_v47, %s5371_s20 }
 0xe30   :  { %v2249_v3 = vpop.xlane.xlu0 %2248 }
 0xe31   :  { %v2252_v6 = vpop.xlane.xlu1 %2251 }
 0xe34   :  { %v2374_v11 = vpop.xlane.xlu0 %2373 }
 0xe35   :  { %5274 = vrcp.f32 %v2374_v11  ;;  %v2377_v60 = vpop.xlane.xlu1 %2376 }
 0xe36   :  { %5276 = vrcp.f32 %v2377_v60 }
 0xe37   :  { %5278 = vrcp.f32 %v2249_v3 }
 0xe38   :  { %v2655_v12 = vpop.xlane.xlu0 %2654  ;;  %5280 = vrcp.f32 %v2252_v6 }
 0xe39   :  { %5282 = vrcp.f32 %v2655_v12  ;;  %v2658_v25 = vpop.xlane.xlu1 %2657 }
 0xe3a   :  { %5284 = vrcp.f32 %v2658_v25 }
 0xe3c   :  { %v5167_v13 = vpop.permute.xlu0 %5166 }
 0xe3d   :  { %v5169_v39 = vunpack.i.h.bf16 %v5167_v13  ;;  %v5168_v7 = vunpack.i.l.bf16 %v5167_v13 }
 0xe3f   :  { %v5275_v40 = vpop.eup %5274  ;;  %v6030_v51 = vpack.c.bf16 %v5169_v39, %v5168_v7 }
 0xe40   :  { %v5277_v48 = vpop.eup %5276  ;;  %v5177_v49 = vpop.permute.xlu0 %5176  ;;  %v2380_v14 = vmul.f32 %v5275_v40, %v5263_v38 }
 0xe41   :  { %v5279_v47 = vpop.eup %5278  ;;  %v5179_v15 = vunpack.i.h.bf16 %v5177_v49  ;;  %v5178_v22 = vunpack.i.l.bf16 %v5177_v49  ;;  %4917 = vmatprep.subr.msk.bf16.mxu0 %vm5611_vm8, %v6030_v51  ;;  %v2381_v23 = vmul.f32 %v5277_v48, %v5983_v44  ;;  %v5172_v44 = vpop.permute.xlu1 %5171 }
 0xe42   :  { %4920 = vmatpush3.bf16.msk.msra.mxu0 %vm5611_vm8, %v6030_v51  ;;  %4670 = vmatprep.mubr.msk.f32.mxu0 %vm254_vm3, %v2380_v14  ;;  %v2255_v27 = vmul.f32 %v5279_v47, %v5975_v32  ;;  %v5281_v59 = vpop.eup %5280  ;;  %v5174_v45 = vunpack.i.h.bf16 %v5172_v44  ;;  %v5173_v50 = vunpack.i.l.bf16 %v5172_v44 }
 0xe43   :  { %v4963_v26 = vpack.c.bf16 %v5179_v15, %v5178_v22  ;;  %4923 = vmatprep.subr.msk.bf16.mxu0 %vm5619_vm9, %v6030_v51  ;;  %v5283_v29 = vpop.eup %5282  ;;  %v2256_v38 = vmul.f32 %v5281_v59, %v5977_v34 }
 0xe44   :  { %v2951_v17 = vpop.permute.xlu0 %2950  ;;  %v2661_v63 = vmul.f32 %v5283_v29, %v5990_v52  ;;  %v5285_v34 = vpop.eup %5284  ;;  %v4951_v53 = vpack.c.bf16 %v5174_v45, %v5173_v50 }
 0xe45   :  { %4671 = vmatmul.mubr.msk.f32.vlgmr.msra.gmra.mrb[14].mxu0 %vm254_vm3, %v2381_v23  ;;  %4965 = vmatprep.subr.msk.bf16.mxu1 %vm5504_vm2, %v4963_v26  ;;  %v2662_v52 = vmul.f32 %v5285_v34, %v5986_v46 }
 0xe46   :  { %4926 = vmatpush3.bf16.msk.msra.mxu0 %vm5619_vm9, %v6030_v51  ;;  %4677 = vmatprep.mubr.msk.f32.mxu0 %vm254_vm3, %v2255_v27 }
 0xe47   :  { %4968 = vmatpush3.bf16.xpose.msk.msra.mxu1 %vm5504_vm2, %v4963_v26  ;;  %4935 = vmatprep.subr.msk.bf16.mxu0 %vm5645_vm13, %v6030_v51 }
 0xe48   :  { %v5182_v18 = vpop.permute.xlu0 %5181 }
 0xe49   :  { %v5184_v32 = vunpack.i.h.bf16 %v5182_v18  ;;  %v5183_v35 = vunpack.i.l.bf16 %v5182_v18 }
 0xe4b   :  { %v4975_v43 = vpack.c.bf16 %v5184_v32, %v5183_v35 }
 0xe4c   :  { %v3155_v55 = vpop.permute.xlu0 %3154 }
 0xe4d   :  { %4678 = vmatmul.mubr.msk.f32.vlgmr.msra.gmra.mrb[14].mxu0 %vm254_vm3, %v2256_v38  ;;  %4977 = vmatprep.subr.msk.bf16.mxu1 %vm5504_vm2, %v4975_v43 }
 0xe4e   :  { %4938 = vmatpush3.bf16.msk.msra.mxu0 %vm5645_vm13, %v6030_v51  ;;  %4691 = vmatprep.mubr.msk.f32.mxu0 %vm254_vm3, %v2661_v63 }
 0xe4f   :  { %4947 = vmatprep.subr.msk.bf16.mxu0 %vm5682_vm5, %v6030_v51 }
 0xe50   :  { %v3355_v8 = vpop.permute.xlu0 %3354 }
 0xe55   :  { %4692 = vmatmul.mubr.msk.f32.vlgmr.msra.gmra.mrb[14].mxu0 %vm254_vm3, %v2662_v52 }
 0xe56   :  { %4950 = vmatpush3.bf16.msk.msra.mxu0 %vm5682_vm5, %v6030_v51 }
 0xe57   :  { %4953 = vmatprep.subr.msk.bf16.mxu0 %vm5504_vm2, %v4951_v53 }
 0xe6e   :  { %v2860_v16 = vpop.xlane.xlu1 %2859 }
 0xe6f   :  { %5286 = vrcp.f32 %v2860_v16 }
 0xe72   :  { %v2857_v54 = vpop.xlane.xlu1 %2856 }
 0xe73   :  { %5288 = vrcp.f32 %v2857_v54 }
 0xe76   :  { %v2953_v56 = vpop.permute.xlu1 %2952 }
 0xe79   :  { %v5287_v46 = vpop.eup %5286 }
 0xe7a   :  { %v3153_v5 = vpop.permute.xlu1 %3152  ;;  %v2864_v0 = vmul.f32 %v5287_v46, %v6012_v62  ;;  %v3557_v62 = vpop.permute.xlu0 %3556 }
 0xe7b   :  { %4726 = vmatprep.mubr.msk.f32.mxu1 %vm160_vm1, %v3153_v5 }
 0xe7c   :  { %4727 = vmatmul.mubr.msk.f32.vlgmr.msra.gmra.mrb[20].mxu1 %vm160_vm1, %v3155_v55 }
 0xe7d   :  { %v5289_v58 = vpop.eup %5288  ;;  %4980 = vmatpush3.bf16.xpose.msk.msra.mxu1 %vm5504_vm2, %v4975_v43  ;;  %4740 = vmatprep.mubr.msk.f32.mxu1 %vm160_vm1, %v3355_v8 }
 0xe7e   :  { %v5187_v42 = vpop.permute.xlu1 %5186  ;;  %v2863_v61 = vmul.f32 %v5289_v58, %v6016_v1 }
 0xe7f   :  { %v5189_v2 = vunpack.i.h.bf16 %v5187_v42  ;;  %v5188_v3 = vunpack.i.l.bf16 %v5187_v42 }
 0xe80   :  { %4705 = vmatprep.mubr.msk.f32.mxu0 %vm254_vm3, %v2863_v61 }
 0xe81   :  { %v4987_v6 = vpack.c.bf16 %v5189_v2, %v5188_v3  ;;  %4706 = vmatmul.mubr.msk.f32.vlgmr.msra.gmra.mrb[14].mxu0 %vm254_vm3, %v2864_v0 }
 0xe82   :  { %4956 = vmatpush3.bf16.xpose.msk.msra.mxu0 %vm5504_vm2, %v4951_v53  ;;  %v3357_v11 = vpop.permute.xlu1 %3356  ;;  %4712 = vmatprep.mubr.msk.f32.mxu0 %vm160_vm1, %v2951_v17 }
 0xe83   :  { %4959 = vmatprep.subr.msk.bf16.mxu0 %vm5696_vm11, %v6030_v51  ;;  %4989 = vmatprep.subr.msk.bf16.mxu1 %vm5504_vm2, %v4987_v6 }
 0xe84   :  { %4741 = vmatmul.mubr.msk.f32.vlgmr.msra.gmra.mrb[22].mxu1 %vm160_vm1, %v3357_v11 }
 0xe85   :  { %4992 = vmatpush3.bf16.xpose.msk.msra.mxu1 %vm5504_vm2, %v4987_v6  ;;  %4754 = vmatprep.mubr.msk.f32.mxu1 %vm160_vm1, %v3557_v62 }
 0xe86   :  { %v3559_v1 = vpop.permute.xlu1 %3558 }
 0xe89   :  { %4713 = vmatmul.mubr.msk.f32.vlgmr.msra.gmra.mrb[16].mxu0 %vm160_vm1, %v2953_v56 }
 0xe8a   :  { %4962 = vmatpush3.bf16.msk.msra.mxu0 %vm5696_vm11, %v6030_v51 }
 0xe8b   :  { %4971 = vmatprep.subr.msk.bf16.mxu0 %vm5754_vm4, %v6030_v51 }
 0xe8c   :  { %4755 = vmatmul.mubr.msk.f32.vlgmr.msra.gmra.mrb[24].mxu1 %vm160_vm1, %v3559_v1 }
 0xf4f   :  { %v4728_v60 = vpop.f32.mrb[20].mxu1 }
 0xf50   :  { %v3234_v12 = vpop.f32.mrb[21].mxu1  ;;  %v3244_v17 = vmul.f32 %v4728_v60, %v5938_v20 }
 0xf51   :  { %v3243_v37 = vmul.f32 %v3234_v12, %v5943_v21 }
 0xf52   :  { %v3246_v32 = vsub.f32 %v3244_v17, %v5949_v19 }
 0xf53   :  { %v3245_v27 = vsub.f32 %v3243_v37, %v5951_v28 }
 0xf54   :  { %v3250_v44 = vsel %vm254_vm3, %v3246_v32, -inf }
 0xf57   :  { %v4742_v13 = vpop.f32.mrb[22].mxu1 }
 0xf58   :  { %v3436_v24 = vpop.f32.mrb[23].mxu1  ;;  %v3446_v35 = vmul.f32 %v4742_v13, %v5938_v20 }
 0xf59   :  { %v3445_v7 = vmul.f32 %v3436_v24, %v5943_v21 }
 0xf5a   :  { %v3448_v43 = vsub.f32 %v3446_v35, %v5949_v19 }
 0xf5b   :  { %v3447_v23 = vsub.f32 %v3445_v7, %v5951_v28 }
 0xf5c   :  { %v4714_v39 = vpop.f32.mrb[16].mxu0  ;;  %v3452_v34 = vsel %vm254_vm3, %v3448_v43, -inf }
 0xf5d   :  { %v3042_v40 = vmul.f32 %v4714_v39, %v5938_v20  ;;  %v3032_v48 = vpop.f32.mrb[17].mxu0  ;;  %v3449_v29 = vsel %vm254_vm3, %v3447_v23, -inf }
 0xf5e   :  { %v3041_v49 = vmul.f32 %v3032_v48, %v5943_v21 }
 0xf5f   :  { %v3044_v14 = vsub.f32 %v3042_v40, %v5949_v19  ;;  %v4756_v47 = vpop.f32.mrb[24].mxu1 }
 0xf60   :  { %v3043_v15 = vsub.f32 %v3041_v49, %v5951_v28  ;;  %v3638_v22 = vpop.f32.mrb[25].mxu1  ;;  %v3648_v63 = vmul.f32 %v4756_v47, %v5938_v20 }
 0xf61   :  { %v3647_v25 = vmul.f32 %v3638_v22, %v5943_v21  ;;  %v3048_v26 = vsel %vm254_vm3, %v3044_v14, -inf  ;;  %v3247_v21 = vsel %vm254_vm3, %v3245_v27, -inf }
 0xf62   :  { %3049 = vmax.xlane.f32.xlu1 %v3048_v26  ;;  %v3045_v59 = vsel %vm254_vm3, %v3043_v15, -inf }
 0xf63   :  { %3046 = vmax.xlane.f32.xlu0 %v3045_v59  ;;  %v3649_v18 = vsub.f32 %v3647_v25, %v5951_v28  ;;  %v3650_v28 = vsub.f32 %v3648_v63, %v5949_v19 }
 0xf65   :  { %v3651_v38 = vsel %vm254_vm3, %v3649_v18, -inf  ;;  %v3654_v45 = vsel %vm254_vm3, %v3650_v28, -inf }
 0xf66   :  { %3450 = vmax.xlane.f32.xlu1 %v3449_v29 }
 0xf67   :  { %3248 = vmax.xlane.f32.xlu0 %v3247_v21 }
 0xf6a   :  { %3652 = vmax.xlane.f32.xlu1 %v3651_v38 }
 0xf6b   :  { %3251 = vmax.xlane.f32.xlu0 %v3250_v44 }
 0xf6f   :  { %3453 = vmax.xlane.f32.xlu0 %v3452_v34 }
 0xf73   :  { %3655 = vmax.xlane.f32.xlu0 %v3654_v45 }
 0xfef   :  { %v3050_v50 = vpop.xlane.xlu1 %3049 }
 0xff0   :  { %v3052_v52 = vsub.f32 %v3044_v14, %v3050_v50  ;;  %v3047_v53 = vpop.xlane.xlu0 %3046 }
 0xff1   :  { %v3051_v16 = vsub.f32 %v3043_v15, %v3047_v53 }
 0xff2   :  { %v3055_v54 = vmul.f32 1.442695, %v3052_v52 }
 0xff3   :  { %v3053_v55 = vmul.f32 1.442695, %v3051_v16  ;;  %v3451_v56 = vpop.xlane.xlu1 %3450 }
 0xff4   :  { %5290 = vpow2.f32 %v3055_v54  ;;  %v3455_v20 = vsub.f32 %v3447_v23, %v3451_v56  ;;  %v3249_v5 = vpop.xlane.xlu0 %3248  ;;  %v2134_v54 = vld [vmem:[%s6361_s7] sm:$0xff] }
 0xff5   :  { %5292 = vpow2.f32 %v3053_v55  ;;  %v3253_v46 = vsub.f32 %v3245_v27, %v3249_v5  ;;  %v2135_v55 = vld [vmem:[%s6361_s7 + $0x8] sm:$0xff] }
 0xff6   :  { %v3457_v8 = vmul.f32 1.442695, %v3455_v20  ;;  %v4999_v5 = vpack.c.bf16 %v2135_v55, %v2134_v54  ;;  %v3995_v54 = vld [vmem:[%s6365_s11 + $0x28] sm:$0xff]  ;;  %v4012_v55 = vld [vmem:[%s6365_s11 + $0xb0] sm:$0xff] }
 0xff7   :  { %v3255_v19 = vmul.f32 1.442695, %v3253_v46  ;;  %v3653_v58 = vpop.xlane.xlu1 %3652 }
 0xff8   :  { %v3657_v42 = vsub.f32 %v3649_v18, %v3653_v58  ;;  %v3252_v61 = vpop.xlane.xlu0 %3251 }
 0xff9   :  { %5294 = vpow2.f32 %v3255_v19  ;;  %v3254_v0 = vsub.f32 %v3246_v32, %v3252_v61  ;;  %v2137_v19 = vld [vmem:[%s6361_s7 + $0x18] sm:$0xff]  ;;  %v3761_v61 = vrot.slane %v5833_v31, %v5862_v4 }
 0xffa   :  { %5296 = vpow2.f32 %v3457_v8  ;;  %v3659_v2 = vmul.f32 1.442695, %v3657_v42  ;;  %v2136_v8 = vld [vmem:[%s6361_s7 + $0x10] sm:$0xff] }
 0xffb   :  { %v3257_v3 = vmul.f32 1.442695, %v3254_v0  ;;  %v5003_v42 = vpack.c.bf16 %v2137_v19, %v2136_v8  ;;  %v4014_v8 = vld [vmem:[%s6365_s11 + $0xc0] sm:$0xff]  ;;  %v4015_v19 = vld [vmem:[%s6365_s11 + $0xc8] sm:$0xff] }
 0xffc   :  { %v3454_v6 = vpop.xlane.xlu0 %3453 }
 0xffd   :  { %5298 = vpow2.f32 %v3257_v3  ;;  %v3456_v11 = vsub.f32 %v3448_v43, %v3454_v6 }
 0xffe   :  { %v5291_v62 = vpop.eup %5290  ;;  %5300 = vpow2.f32 %v3659_v2 }
 0xfff   :  { %v5293_v1 = vpop.eup %5292  ;;  %v3459_v60 = vmul.f32 1.442695, %v3456_v11  ;;  %v3060_v12 = vsel %vm254_vm3, %v5291_v62, 0.0 }
0x1000   :  { %3061 = vadd.xlane.f32.xlu0 %v3060_v12  ;;  %v3656_v13 = vpop.xlane.xlu0 %3655  ;;  %v3057_v24 = vsel %vm254_vm3, %v5293_v1, 0.0 }
0x1001   :  { %5302 = vpow2.f32 %v3459_v60  ;;  %v3658_v39 = vsub.f32 %v3650_v28, %v3656_v13  ;;  %3058 = vadd.xlane.f32.xlu1 %v3057_v24 }
0x1003   :  { %v5295_v7 = vpop.eup %5294  ;;  %v3661_v40 = vmul.f32 1.442695, %v3658_v39 }
0x1004   :  { %v3259_v48 = vsel %vm254_vm3, %v5295_v7, 0.0  ;;  %v5297_v37 = vpop.eup %5296 }
0x1005   :  { %5304 = vpow2.f32 %v3661_v40  ;;  %3260 = vadd.xlane.f32.xlu1 %v3259_v48  ;;  %v3461_v14 = vsel %vm254_vm3, %v5297_v37, 0.0 }
0x1007   :  { %v5299_v49 = vpop.eup %5298 }
0x1008   :  { %v3262_v47 = vsel %vm254_vm3, %v5299_v49, 0.0  ;;  %v5301_v15 = vpop.eup %5300 }
0x1009   :  { %3462 = vadd.xlane.f32.xlu1 %v3461_v14  ;;  %3263 = vadd.xlane.f32.xlu0 %v3262_v47  ;;  %v3663_v23 = vsel %vm254_vm3, %v5301_v15, 0.0  ;;  %v3883_v47 = vld [vmem:[%s6363_s9] sm:$0xff] }
0x100b   :  { %v5303_v22 = vpop.eup %5302 }
0x100c   :  { %v3464_v25 = vsel %vm254_vm3, %v5303_v22, 0.0 }
0x100d   :  { %3664 = vadd.xlane.f32.xlu1 %v3663_v23  ;;  %3465 = vadd.xlane.f32.xlu0 %v3464_v25  ;;  %v3888_v23 = vld [vmem:[%s6363_s9 + $0x28] sm:$0xff]  ;;  %v3890_v25 = vld [vmem:[%s6363_s9 + $0x38] sm:$0xff] }
0x100f   :  { %v5305_v26 = vpop.eup %5304 }
0x1010   :  { %v3666_v17 = vsel %vm254_vm3, %v5305_v26, 0.0 }
0x1011   :  { %3667 = vadd.xlane.f32.xlu0 %v3666_v17  ;;  %v5011_v17 = vpack.c.bf16 %v3890_v25, %v3888_v23 }
0x108d   :  { %v3062_v27 = vpop.xlane.xlu0 %3061 }
0x108e   :  { %5306 = vrcp.f32 %v3062_v27  ;;  %v3059_v59 = vpop.xlane.xlu1 %3058  ;;  %v3889_v27 = vld [vmem:[%s6363_s9 + $0x30] sm:$0xff] }
0x108f   :  { %5308 = vrcp.f32 %v3059_v59  ;;  %v5372_v59 = vmov 0.0  }
0x1090   :  { %3973 = vmatprep.mubr.f32.mxu1 %v5372_v59 }
0x1092   :  { %v3261_v18 = vpop.xlane.xlu1 %3260 }
0x1093   :  { %5310 = vrcp.f32 %v3261_v18 }
0x1096   :  { %v3463_v29 = vpop.xlane.xlu1 %3462  ;;  %v3264_v32 = vpop.xlane.xlu0 %3263 }
0x1097   :  { %5312 = vrcp.f32 %v3463_v29  ;;  %v4006_v29 = vld [vmem:[%s6365_s11 + $0x80] sm:$0xff] }
0x1098   :  { %v5307_v35 = vpop.eup %5306  ;;  %5314 = vrcp.f32 %v3264_v32  ;;  %v4007_v32 = vld [vmem:[%s6365_s11 + $0x88] sm:$0xff] }
0x1099   :  { %v5309_v21 = vpop.eup %5308  ;;  %v3066_v43 = vmul.f32 %v5307_v35, %v5291_v62  ;;  %v3990_v35 = vld [vmem:[%s6365_s11] sm:$0xff] }
0x109a   :  { %v3065_v38 = vmul.f32 %v5309_v21, %v5293_v1  ;;  %v3466_v63 = vpop.xlane.xlu0 %3465  ;;  %v3665_v44 = vpop.xlane.xlu1 %3664  ;;  %v5015_v21 = vpack.c.bf16 %v4007_v32, %v4006_v29  ;;  %v4002_v29 = vld [vmem:[%s6365_s11 + $0x60] sm:$0xff] }
0x109b   :  { %5316 = vrcp.f32 %v3466_v63  ;;  %v4009_v63 = vld [vmem:[%s6365_s11 + $0x98] sm:$0xff] }
0x109c   :  { %4719 = vmatprep.mubr.msk.f32.mxu0 %vm254_vm3, %v3065_v38  ;;  %5318 = vrcp.f32 %v3665_v44  ;;  %v3991_v38 = vld [vmem:[%s6365_s11 + $0x8] sm:$0xff] }
0x109d   :  { %v5311_v28 = vpop.eup %5310  ;;  %4720 = vmatmul.mubr.msk.f32.vlgmr.msra.gmra.mrb[14].mxu0 %vm254_vm3, %v3066_v43  ;;  %v4008_v43 = vld [vmem:[%s6365_s11 + $0x90] sm:$0xff]  ;;  %v5017_v44 = vpack.c.bf16 %v3991_v38, %v3990_v35  ;;  %v4005_v38 = vld [vmem:[%s6365_s11 + $0x78] sm:$0xff] }
0x109e   :  { %4974 = vmatpush3.bf16.msk.msra.mxu0 %vm5754_vm4, %v6030_v51  ;;  %v3267_v34 = vmul.f32 %v5311_v28, %v5295_v7  ;;  %v3668_v53 = vpop.xlane.xlu0 %3667  ;;  %v5019_v28 = vpack.c.bf16 %v4009_v63, %v4008_v43  ;;  %v3891_v63 = vld [vmem:[%s6364_s10] sm:$0x3] }
0x109f   :  { %4983 = vmatprep.subr.msk.bf16.mxu0 %vm5768_vm12, %v6030_v51  ;;  %5320 = vrcp.f32 %v3668_v53 }
0x10a0   :  { %4733 = vmatprep.mubr.msk.f32.mxu0 %vm254_vm3, %v3267_v34  ;;  %v3992_v34 = vld [vmem:[%s6365_s11 + $0x10] sm:$0xff] }
0x10a1   :  { %v5313_v45 = vpop.eup %5312 }
0x10a2   :  { %v5315_v50 = vpop.eup %5314  ;;  %v3469_v16 = vmul.f32 %v5313_v45, %v5297_v37  ;;  %v3884_v37 = vld [vmem:[%s6363_s9 + $0x8] sm:$0xff]  ;;  %v3993_v45 = vld [vmem:[%s6365_s11 + $0x18] sm:$0xff] }
0x10a3   :  { %v3268_v52 = vmul.f32 %v5315_v50, %v5299_v49  ;;  %v3886_v49 = vld [vmem:[%s6363_s9 + $0x18] sm:$0xff]  ;;  %v4010_v50 = vld [vmem:[%s6365_s11 + $0xa0] sm:$0xff]  ;;  %v5021_v53 = vpack.c.bf16 %v3993_v45, %v3992_v34 }
0x10a4   :  { %v5007_v14 = vpack.c.bf16 %v3886_v49, %v3884_v37  ;;  %v3879_v37 = vsub.s32 6, %v5473_v9 }
0x10a5   :  { %4734 = vmatmul.mubr.msk.f32.vlgmr.msra.gmra.mrb[14].mxu0 %vm254_vm3, %v3268_v52  ;;  %v5317_v30 = vpop.eup %5316  ;;  %v4011_v52 = vld [vmem:[%s6365_s11 + $0xa8] sm:$0xff] }
0x10a6   :  { %4986 = vmatpush3.bf16.msk.msra.mxu0 %vm5768_vm12, %v6030_v51  ;;  %4747 = vmatprep.mubr.msk.f32.mxu0 %vm254_vm3, %v3469_v16  ;;  %v5319_v56 = vpop.eup %5318  ;;  %v3470_v20 = vmul.f32 %v5317_v30, %v5303_v22  ;;  %v5023_v16 = vpack.c.bf16 %v4011_v52, %v4010_v50  ;;  %v3994_v30 = vld [vmem:[%s6365_s11 + $0x20] sm:$0xff] }
0x10a7   :  { %4995 = vmatprep.subr.msk.bf16.mxu0 %vm5792_vm7, %v6030_v51  ;;  %v3671_v41 = vmul.f32 %v5319_v56, %v5301_v15  ;;  %v3885_v15 = vld [vmem:[%s6363_s9 + $0x10] sm:$0xff]  ;;  %5008 = vmatprep.subr.bf16.mxu1 %v5007_v14  ;;  %v4013_v56 = vld [vmem:[%s6365_s11 + $0xb8] sm:$0xff]  ;;  %v6297_v14 = vld [vmem:[%s6366_s12] sm:$0xff] }
0x10a8   :  { %v5009_v22 = vpack.c.bf16 %v3885_v15, %v3883_v47  ;;  %v3880_v23 = vrot.slane %v6297_v14, %v3879_v37 }
0x10a9   :  { %v5321_v46 = vpop.eup %5320 }
0x10aa   :  { %v3672_v58 = vmul.f32 %v5321_v46, %v5305_v26  ;;  %5010 = vmatpush1.bf16.msra.mxu1 %v5009_v22  ;;  %v3887_v26 = vld [vmem:[%s6363_s9 + $0x20] sm:$0xff]  ;;  %v3997_v46 = vld [vmem:[%s6365_s11 + $0x38] sm:$0xff] }
0x10ab   :  { %v5013_v18 = vpack.c.bf16 %v3889_v27, %v3887_v26  ;;  %5012 = vmatprep.subr.bf16.mxu1 %v5011_v17 }
0x10ad   :  { %4748 = vmatmul.mubr.msk.f32.vlgmr.msra.gmra.mrb[14].mxu0 %vm254_vm3, %v3470_v20  ;;  %v5025_v20 = vpack.c.bf16 %v3995_v54, %v3994_v30 }
0x10ae   :  { %4998 = vmatpush3.bf16.msk.msra.mxu0 %vm5792_vm7, %v6030_v51  ;;  %4761 = vmatprep.mubr.msk.f32.mxu0 %vm254_vm3, %v3671_v41  ;;  %v3996_v41 = vld [vmem:[%s6365_s11 + $0x30] sm:$0xff] }
0x10af   :  { %5000 = vmatprep.subr.bf16.mxu0 %v4999_v5  ;;  %5014 = vmatpush1.bf16.msra.mxu1 %v5013_v18 }
0x10b5   :  { %4762 = vmatmul.mubr.msk.f32.vlgmr.msra.gmra.mrb[14].mxu0 %vm254_vm3, %v3672_v58  ;;  %v5029_v58 = vpack.c.bf16 %v3997_v46, %v3996_v41 }
0x10b6   :  { %5002 = vmatpush3.bf16.msra.mxu0 %v4999_v5  ;;  %v5027_v5 = vpack.c.bf16 %v4013_v56, %v4012_v55 }
0x10b7   :  { %5004 = vmatprep.subr.bf16.mxu0 %v5003_v42 }
0x10ba   :  { %5006 = vmatpush3.bf16.msra.mxu0 %v5003_v42  ;;  %v5031_v42 = vpack.c.bf16 %v4015_v19, %v4014_v8 }
0x10bb   :  { %5016 = vmatprep.subr.bf16.mxu0 %v5015_v21  ;;  %v4004_v21 = vld [vmem:[%s6365_s11 + $0x70] sm:$0xff] }
0x10bc   :  { %v5045_v43 = vpack.c.bf16 %v4005_v38, %v4004_v21 }
0x1188   :  { %v4763_v57 = vpop.f32.mrb[14].mxu0 }
0x1189   :  { %v3747_v51 = vpop.f32.mrb[15].mxu0 }
0x118a   :  { %4772 = vmatprep.mubr.msk.f32.mxu0 %vm66_vm0, %v3747_v51  ;;  %v3999_v51 = vld [vmem:[%s6365_s11 + $0x48] sm:$0xff] }
0x118b   :  { %4773 = vmatmul.mubr.msk.f32.vlgmr.msra.gmra.mrb[18].mxu0 %vm66_vm0, %v4763_v57  ;;  %v3998_v57 = vld [vmem:[%s6365_s11 + $0x40] sm:$0xff] }
0x118c   :  { %5018 = vmatpush3.bf16.msra.mxu0 %v5017_v44  ;;  %v3896_v44 = vrot.slane %v3891_v63, %v5476_v10  ;;  %v4024_v10 = vsub.s32 2, %v5473_v9 }
0x118d   :  { %5020 = vmatprep.subr.bf16.mxu0 %v5019_v28  ;;  %v3900_v28 = vrot.slane %v3891_v63, %v5862_v4 }
0x118e   :  { %v4025_v4 = vrot.slane %v6297_v14, %v4024_v10 }
0x1190   :  { %5022 = vmatpush3.bf16.msra.mxu0 %v5021_v53 }
0x1191   :  { %5024 = vmatprep.subr.bf16.mxu0 %v5023_v16 }
0x1194   :  { %5026 = vmatpush3.bf16.msra.mxu0 %v5025_v20 }
0x1195   :  { %5028 = vmatprep.subr.bf16.mxu0 %v5027_v5 }
0x1198   :  { %5030 = vmatpush3.bf16.msra.mxu0 %v5029_v58 }
0x1199   :  { %5032 = vmatprep.subr.bf16.mxu0 %v5031_v42 }
0x125e   :  { %v4774_v0 = vpop.f32.mrb[18].mxu0 }
0x125f   :  { %v3840_v2 = vadd.f32 %v4774_v0, %v3761_v61  ;;  %v3834_v3 = vpop.f32.mrb[19].mxu0  ;;  %v4017_v0 = vld [vmem:[%s6365_s11 + $0xd8] sm:$0xff] }
0x1260   :  { %v3835_v6 = vadd.f32 %v3834_v3, %v3761_v61  ;;  %v4016_v61 = vld [vmem:[%s6365_s11 + $0xd0] sm:$0xff] }
0x1261   :  { %v3844_v11 = vadd.f32 %v3840_v2, %v5879_v36  ;;  %v5033_v2 = vpack.c.bf16 %v3999_v51, %v3998_v57  ;;  %v5035_v3 = vpack.c.bf16 %v4017_v0, %v4016_v61 }
0x1262   :  { %v3843_v62 = vadd.f32 %v3835_v6, %v5877_v33  ;;  %v4000_v6 = vld [vmem:[%s6365_s11 + $0x50] sm:$0xff] }
0x1263   :  { %v3848_v1 = vsel %vm66_vm0, %v3844_v11, 0.0  ;;  %5034 = vmatpush3.bf16.msra.mxu0 %v5033_v2 }
0x1264   :  { %3849 = vadd.xlane.f32.xlu0 %v3848_v1  ;;  %v3845_v60 = vsel %vm66_vm0, %v3843_v62, 0.0  ;;  %v4019_v1 = vld [vmem:[%s6365_s11 + $0xe8] sm:$0xff]  ;;  %5036 = vmatprep.subr.bf16.mxu0 %v5035_v3 }
0x1265   :  { %3846 = vadd.xlane.f32.xlu1 %v3845_v60 }
0x12f1   :  { %v3850_v12 = vpop.xlane.xlu0 %3849 }
0x12f2   :  { %v3852_v13 = vmul.f32 0.03125, %v3850_v12  ;;  %v3847_v24 = vpop.xlane.xlu1 %3846 }
0x12f3   :  { %v3851_v39 = vmul.f32 0.03125, %v3847_v24 }
0x12f4   :  { %v6179_v7 = vsub.f32 %v3844_v11, %v3852_v13  ;;  %v4001_v11 = vld [vmem:[%s6365_s11 + $0x58] sm:$0xff] }
0x12f5   :  { %v6181_v31 = vsub.f32 %v3843_v62, %v3851_v39  ;;  %v4018_v62 = vld [vmem:[%s6365_s11 + $0xe0] sm:$0xff]  ;;  %v5037_v60 = vpack.c.bf16 %v4001_v11, %v4000_v6 }
0x12f6   :  { %v3856_v40 = vmul.f32 %v6179_v7, %v6179_v7  ;;  %v5039_v12 = vpack.c.bf16 %v4019_v1, %v4018_v62 }
0x12f7   :  { %v3855_v33 = vmul.f32 %v6181_v31, %v6181_v31  ;;  %5038 = vmatpush3.bf16.msra.mxu0 %v5037_v60 }
0x12f8   :  { %v3860_v36 = vsel %vm66_vm0, %v3856_v40, 0.0  ;;  %5040 = vmatprep.subr.bf16.mxu0 %v5039_v12 }
0x12f9   :  { %3861 = vadd.xlane.f32.xlu0 %v3860_v36  ;;  %v3857_v48 = vsel %vm66_vm0, %v3855_v33, 0.0 }
0x12fa   :  { %3858 = vadd.xlane.f32.xlu1 %v3857_v48  ;;  %v3873_v48 = vsub.s32 5, %v5473_v9 }
0x12fc   :  { %v3874_v47 = vrot.slane %v6297_v14, %v3873_v48 }
0x1386   :  { %v3862_v13 = vpop.xlane.xlu0 %3861 }
0x1387   :  { %v3864_v24 = vmul.f32 0.03125, %v3862_v13  ;;  %v3859_v39 = vpop.xlane.xlu1 %3858 }
0x1388   :  { %v3863_v40 = vmul.f32 0.03125, %v3859_v39 }
0x1389   :  { %v3866_v33 = vadd.f32 1e-06, %v3864_v24 }
0x138a   :  { %v3865_v36 = vadd.f32 1e-06, %v3863_v40 }
0x138b   :  { %5322 = vrsqrt.f32 %v3866_v33 }
0x138c   :  { %5324 = vrsqrt.f32 %v3865_v36 }
0x1395   :  { %v5323_v49 = vpop.eup %5322 }
0x1396   :  { %v5325_v15 = vpop.eup %5324  ;;  %v3870_v25 = vmul.f32 %v5323_v49, %v6179_v7  ;;  %v4020_v7 = vld [vmem:[%s6365_s11 + $0xf0] sm:$0xff] }
0x1397   :  { %v3869_v22 = vmul.f32 %v5325_v15, %v6181_v31  ;;  %v4003_v31 = vld [vmem:[%s6365_s11 + $0x68] sm:$0xff]  ;;  %v4131_v15 = vsub.s32 7, %v5473_v9 }
0x1398   :  { %v3876_v27 = vmul.f32 %v3874_v47, %v3870_v25  ;;  %v5041_v32 = vpack.c.bf16 %v4003_v31, %v4002_v29 }
0x1399   :  { %v3875_v26 = vmul.f32 %v3874_v47, %v3869_v22  ;;  %v4132_v22 = vrot.slane %v6297_v14, %v4131_v15 }
0x139a   :  { %v3882_v18 = vadd.f32 %v3880_v23, %v3876_v27  ;;  %5042 = vmatpush3.bf16.msra.mxu0 %v5041_v32 }
0x139b   :  { %v3881_v17 = vadd.f32 %v3880_v23, %v3875_v26  ;;  %v4299_v26 = vld [vmem:[%s6366_s12 + $0x8] ss:$0 sm:$0xff] }
0x139d   :  { %4297 = vmatmul.mubr.msk.f32.vlgmr.msra.gmra.mrb[26].mxu1 %vm66_vm0, %v3881_v17 }
0x139e   :  { %3979 = vmatprep.mubr.f32.mxu1 %v5372_v59  ;;  %v4021_v59 = vld [vmem:[%s6365_s11 + $0xf8] sm:$0xff] }
0x139f   :  { %v5043_v35 = vpack.c.bf16 %v4021_v59, %v4020_v7 }
0x13a1   :  { %4298 = vmatmul.mubr.msk.f32.gmra.mrb[28].mxu1 %vm66_vm0, %v3882_v18  ;;  %5044 = vmatprep.subr.bf16.mxu0 %v5043_v35 }
0x13a2   :  { %5046 = vmatpush3.bf16.msra.mxu0 %v5045_v43 }
0x1470   :  { %v3975_v34 = vpop.f32.mrb[26].mxu1 }
0x1471   :  { %v3976_v45 = vadd.f32 %v3975_v34, %v3896_v44  ;;  %v3977_v50 = vpop.f32.mrb[27].mxu1 }
0x1472   :  { %v3978_v52 = vadd.f32 %v3977_v50, %v3900_v28 }
0x1473   :  { %v3986_v30 = vmax.f32 %v3976_v45, 0.0 }
0x1474   :  { %v3987_v53 = vmax.f32 %v3978_v52, 0.0  ;;  %v3981_v16 = vpop.f32.mrb[28].mxu1 }
0x1475   :  { %v3982_v54 = vadd.f32 %v3981_v16, %v3896_v44  ;;  %v3983_v55 = vpop.f32.mrb[29].mxu1 }
0x1476   :  { %v3984_v56 = vadd.f32 %v3983_v55, %v3900_v28  ;;  %4090 = vmatprep.mubr.f32.mxu0 %v3987_v53 }
0x1477   :  { %4091 = vmatmul.mubr.f32.vlgmr.msra.gmra.mrb[20].mxu0 %v3986_v30  ;;  %v3988_v5 = vmax.f32 %v3982_v54, 0.0 }
0x1478   :  { %v3989_v20 = vmax.f32 %v3984_v56, 0.0 }
0x147a   :  { %4095 = vmatprep.mubr.f32.mxu0 %v3989_v20 }
0x147b   :  { %4096 = vmatmul.mubr.f32.gmra.mrb[22].mxu0 %v3988_v5 }
0x154a   :  { %v4490_v41 = vpop.f32.mrb[20].mxu0 }
0x154b   :  { %v4491_v46 = vpop.f32.mrb[21].mxu0 }
0x154c   :  { %v4492_v8 = vadd.f32 %v4491_v46, %v4490_v41 }
0x154e   :  { %v4093_v19 = vadd.f32 %v4492_v8, %v4025_v4  ;;  %v4493_v58 = vpop.f32.mrb[22].mxu0 }
0x154f   :  { %v4494_v42 = vpop.f32.mrb[23].mxu0 }
0x1550   :  { %v4495_v57 = vadd.f32 %v4494_v42, %v4493_v58  ;;  %v4101_v51 = vadd.f32 %v4093_v19, %v3881_v17 }
0x1552   :  { %v4098_v61 = vadd.f32 %v4495_v57, %v4025_v4  ;;  %v4103_v0 = vsel %vm66_vm0, %v4101_v51, 0.0 }
0x1553   :  { %4104 = vadd.xlane.f32.xlu1 %v4103_v0 }
0x1554   :  { %v4102_v2 = vadd.f32 %v4098_v61, %v3882_v18 }
0x1556   :  { %v4106_v3 = vsel %vm66_vm0, %v4102_v2, 0.0 }
0x1557   :  { %4107 = vadd.xlane.f32.xlu0 %v4106_v3 }
0x15e0   :  { %v4105_v6 = vpop.xlane.xlu1 %4104 }
0x15e1   :  { %v4109_v11 = vmul.f32 0.03125, %v4105_v6 }
0x15e3   :  { %v4111_v62 = vsub.f32 %v4101_v51, %v4109_v11 }
0x15e4   :  { %v4108_v1 = vpop.xlane.xlu0 %4107 }
0x15e5   :  { %v4110_v60 = vmul.f32 0.03125, %v4108_v1  ;;  %v4113_v12 = vmul.f32 %v4111_v62, %v4111_v62 }
0x15e7   :  { %v4112_v13 = vsub.f32 %v4102_v2, %v4110_v60  ;;  %v4115_v24 = vsel %vm66_vm0, %v4113_v12, 0.0 }
0x15e8   :  { %4116 = vadd.xlane.f32.xlu1 %v4115_v24 }
0x15e9   :  { %v4114_v39 = vmul.f32 %v4112_v13, %v4112_v13 }
0x15eb   :  { %v4118_v40 = vsel %vm66_vm0, %v4114_v39, 0.0 }
0x15ec   :  { %4119 = vadd.xlane.f32.xlu0 %v4118_v40 }
0x1675   :  { %v4117_v33 = vpop.xlane.xlu1 %4116 }
0x1676   :  { %v4121_v36 = vmul.f32 0.03125, %v4117_v33 }
0x1678   :  { %v4123_v48 = vadd.f32 1e-06, %v4121_v36 }
0x1679   :  { %v4120_v37 = vpop.xlane.xlu0 %4119 }
0x167a   :  { %5326 = vrsqrt.f32 %v4123_v48  ;;  %v4122_v49 = vmul.f32 0.03125, %v4120_v37 }
0x167c   :  { %v4124_v47 = vadd.f32 1e-06, %v4122_v49 }
0x167e   :  { %5328 = vrsqrt.f32 %v4124_v47 }
0x1684   :  { %v5327_v23 = vpop.eup %5326 }
0x1685   :  { %v4127_v25 = vmul.f32 %v5327_v23, %v4111_v62 }
0x1687   :  { %v4133_v17 = vmul.f32 %v4132_v22, %v4127_v25 }
0x1688   :  { %v5329_v27 = vpop.eup %5328 }
0x1689   :  { %v4128_v18 = vmul.f32 %v5329_v27, %v4112_v13  ;;  %v4139_v29 = vadd.f32 %v4299_v26, %v4133_v17 }
0x168b   :  { %v4134_v31 = vmul.f32 %v4132_v22, %v4128_v18  ;;  %4141 = vst.msk [vmem:[#allocation2] sm:$0xff] %vm66_vm0, %v4139_v29 }
0x168d   :  { %v4140_v32 = vadd.f32 %v4299_v26, %v4134_v31 }
0x168f   :  { %4142 = vst.msk [vmem:[#allocation2 + $0x8] sm:$0xff] %vm66_vm0, %v4140_v32 }
0x1690   :  { %5343 = shalt.err (!%p5340_p4)
}
0x1691   :  { %s5344_s27 = scalar_lea.hbm %s6367_s13, 256 }
0x1692   :  { %p5345_p5 = scmp.ne.s32.totalorder %s6367_s13, %s5344_s27  ;;  %p5348_p6 = scmp.lt.u32.totalorder %s5344_s27, %s6367_s13 }
0x1694   :  { %p5350_p7 = pnand %p5348_p6, %p5345_p5 }
0x1696   :  { %5353 = shalt.err (!%p5350_p7)
}
0x1697   :  { %s5374_s8 = smov 128   ;;  %s5375_s5 = smov 8  }
0x1698   :  { %4154 = dma.vmem_to_hbm [thread:$0]  %s4149_s23, 256, %s6367_s13, [#allocation3], %s5374_s8, %s5374_s8, %s5375_s5  }
0x1699   :  { %5354 = dma.done.wait [#allocation3], 256  }
0x169a   :  { %5355 = vsyncadd [#allocation3], 4294967040 }
0x169b   :  { %4158 = vsyncpa [#allocation3], 1 }

</bundles_post_ra>
